<compile_context>
chip_gen: v6e
topology: v6e:2x2x1
jax: 0.10.0
libtpu: 0.0.40
codegen_flags: <defaults>
</compile_context>

<pallas_src>
import functools

import jax
import jax.numpy as jnp
from jax.experimental import pallas as pl
from jax.experimental.pallas import tpu as pltpu

_VMEM_LIMIT = 32 * 1024 * 1024


def _round_up(x, m):
    return (x + m - 1) // m * m


# ---------------------------------------------------------------------------
# ConvBlock5x5: conv5x5(pad=2, no bias) -> BN(eval, folded) -> ReLU -> 2x2 pool
# ---------------------------------------------------------------------------
def _conv_bn_pool_kernel(x_ref, w_ref, shift_ref, o_ref, xpad_ref, colw_ref, *,
                         H, W, Cin, Cout, ph, pw, pool_type):
    """One grid step = one image (NHWC).

    x_ref    : (1, H, W, Cin)          input tile (f32 or bf16)
    w_ref    : (25*Cin, Cout)          bf16 weights, BN scale folded, (kh, kw, ci) rows
    shift_ref: (1, Cout)               f32 folded BN shift
    o_ref    : (1, H//ph, W//pw, Cout) bf16 pooled output
    xpad_ref : (H+4, W+4, Cin)         bf16 scratch (zero halo built in VMEM)
    colw_ref : (H+4, W, 5*Cin)         bf16 scratch (kw-folded taps)
    """
    # Zero only the halo strips; the interior is fully overwritten below.
    xpad_ref[0:2] = jnp.zeros((2, W + 4, Cin), xpad_ref.dtype)
    xpad_ref[H + 2:H + 4] = jnp.zeros((2, W + 4, Cin), xpad_ref.dtype)
    xpad_ref[2:H + 2, 0:2] = jnp.zeros((H, 2, Cin), xpad_ref.dtype)
    xpad_ref[2:H + 2, W + 2:W + 4] = jnp.zeros((H, 2, Cin), xpad_ref.dtype)
    xpad_ref[2:H + 2, 2:W + 2] = x_ref[0].astype(xpad_ref.dtype)

    # Stage 1: fold the 5 kw taps onto the lane axis -> (H+4, W, 5*Cin), bf16.
    for kw in range(5):
        colw_ref[:, :, kw * Cin:(kw + 1) * Cin] = xpad_ref[:, kw:kw + W, :]

    # Accumulating MXU matmuls over the 5 kh taps; LHS slices of colw are contiguous
    # (leading-dim slice + free leading-dim reshape), so there is no stage-2 im2col copy.
    acc = None
    for kh in range(5):
        lhs = colw_ref[kh:kh + H].reshape(H * W, 5 * Cin)
        part = jnp.dot(lhs, w_ref[kh * 5 * Cin:(kh + 1) * 5 * Cin, :],
                       preferred_element_type=jnp.float32)
        acc = part if acc is None else acc + part

    # Epilogue in f32: BN shift (scale already folded) + ReLU + two-stage 2x2 pool.
    y = jnp.maximum(acc + shift_ref[...], 0.0)              # (H*W, Cout)
    OH, OW = H // ph, W // pw
    yh = y.reshape(OH, ph, W, Cout)                          # free leading-dim split
    if pool_type == 'avg':
        yr = jnp.sum(yh, axis=1).reshape(OH, OW, pw, Cout)
        out = jnp.sum(yr, axis=2) * (1.0 / (ph * pw))
    elif pool_type == 'max':
        yr = jnp.max(yh, axis=1).reshape(OH, OW, pw, Cout)
        out = jnp.max(yr, axis=2)
    elif pool_type == 'avg+max':
        ys = jnp.sum(yh, axis=1).reshape(OH, OW, pw, Cout)
        ym = jnp.max(yh, axis=1).reshape(OH, OW, pw, Cout)
        out = jnp.sum(ys, axis=2) * (1.0 / (ph * pw)) + jnp.max(ym, axis=2)
    else:
        raise Exception('Incorrect argument!')
    o_ref[0] = out.astype(o_ref.dtype)


def conv_block_5x5(x, conv_w, bn_gamma, bn_beta, bn_mean, bn_var, *,
                   eps=1e-5, pool_size=(2, 2), pool_type='avg'):
    """x: (N, H, W, Cin) NHWC (f32 or bf16); conv_w: (Cout, Cin, 5, 5) PyTorch OIHW.
    Returns (N, H//ph, W//pw, Cout) bf16 NHWC.  Eval-mode BatchNorm (running stats)."""
    N, H, W, Cin = x.shape
    Cout = conv_w.shape[0]
    ph, pw = pool_size
    assert H % ph == 0 and W % pw == 0, "pooling needs divisible spatial dims"
    OH, OW = H // ph, W // pw

    # Fold BN scale into the conv weights; only the shift stays in the kernel epilogue.
    scale = bn_gamma / jnp.sqrt(bn_var + eps)
    shift = bn_beta - bn_mean * scale
    w2d = (jnp.transpose(conv_w, (2, 3, 1, 0)) * scale).reshape(25 * Cin, Cout)

    # Pad Cout to a lane-dense multiple of 128 (unmasked stores); sliced off below.
    Cpad = _round_up(Cout, 128)
    if Cpad != Cout:
        w2d = jnp.pad(w2d, ((0, 0), (0, Cpad - Cout)))
        shift = jnp.pad(shift, (0, Cpad - Cout))
    w2d = w2d.astype(jnp.bfloat16)
    shift = shift.reshape(1, Cpad).astype(jnp.float32)

    kernel = functools.partial(_conv_bn_pool_kernel, H=H, W=W, Cin=Cin, Cout=Cpad,
                               ph=ph, pw=pw, pool_type=pool_type)
    flops = 2 * N * H * W * 25 * Cin * Cpad
    bytes_accessed = (N * H * W * Cin) * x.dtype.itemsize \
        + (25 * Cin * Cpad) * 2 + (N * OH * OW * Cpad) * 2

    out = pl.pallas_call(
        kernel,
        out_shape=jax.ShapeDtypeStruct((N, OH, OW, Cpad), jnp.bfloat16),
        grid=(N,),
        in_specs=[
            pl.BlockSpec((1, H, W, Cin), lambda n: (n, 0, 0, 0)),
            pl.BlockSpec((25 * Cin, Cpad), lambda n: (0, 0)),
            pl.BlockSpec((1, Cpad), lambda n: (0, 0)),
        ],
        out_specs=pl.BlockSpec((1, OH, OW, Cpad), lambda n: (n, 0, 0, 0)),
        scratch_shapes=[
            pltpu.VMEM((H + 4, W + 4, Cin), jnp.bfloat16),
            pltpu.VMEM((H + 4, W, 5 * Cin), jnp.bfloat16),
        ],
        compiler_params=pltpu.CompilerParams(
            dimension_semantics=("parallel",),
            vmem_limit_bytes=_VMEM_LIMIT),
        cost_estimate=pl.CostEstimate(flops=flops, transcendentals=0,
                                      bytes_accessed=bytes_accessed),
    )(x, w2d, shift)

    return out[..., :Cout] if Cpad != Cout else out


# ---------------------------------------------------------------------------
# deConvBlock5x5: ConvTranspose2d(kernel=2, stride=2, no bias) [+ BN + ReLU]
# ---------------------------------------------------------------------------
def _deconv_bn_kernel(x_ref, w_ref, shift_ref, o_ref, *, H, W, Cin, Cout, apply_relu):
    """x_ref: (1,H,W,Cin); w_ref: (Cin, 4*Cout) bf16 with column order (di, dj, co);
    shift_ref: (1, 2*Cout) f32 folded BN shift tiled over dj;
    o_ref: (1, H, 2, W, 2*Cout) — the wrapper reshapes it to (N, 2H, 2W, Cout)
    (contiguous, metadata-only).  Stride-2 kernel-2 transpose conv == per-pixel matmul."""
    x = x_ref[0].reshape(H * W, Cin).astype(jnp.bfloat16)
    y = jnp.dot(x, w_ref[...], preferred_element_type=jnp.float32)   # (H*W, 4*Cout)
    for di in range(2):
        yd = y[:, di * 2 * Cout:(di + 1) * 2 * Cout] + shift_ref[...]
        if apply_relu:
            yd = jnp.maximum(yd, 0.0)
        o_ref[0, :, di] = yd.reshape(H, W, 2 * Cout).astype(o_ref.dtype)


def deconv_block_2x2(x, deconv_w, bn_gamma=None, bn_beta=None, bn_mean=None, bn_var=None,
                     *, eps=1e-5, apply_bn_relu=True):
    """x: (N,H,W,Cin) NHWC (f32 or bf16); deconv_w: (Cin, Cout, 2, 2) ConvTranspose2d layout.
    Returns (N, 2H, 2W, Cout): bf16 for the BN+ReLU blocks, f32 for the out_layer."""
    N, H, W, Cin = x.shape
    Cout = deconv_w.shape[1]

    w = jnp.transpose(deconv_w, (0, 2, 3, 1))          # (Cin, di, dj, Cout)
    if apply_bn_relu:
        scale = bn_gamma / jnp.sqrt(bn_var + eps)
        shift = bn_beta - bn_mean * scale
        w = w * scale                                   # fold BN scale into weights
        out_dtype = jnp.bfloat16
    else:
        shift = jnp.zeros((Cout,), jnp.float32)
        out_dtype = jnp.float32
    w2d = w.reshape(Cin, 4 * Cout).astype(jnp.bfloat16)
    shift2 = jnp.tile(shift, 2).reshape(1, 2 * Cout).astype(jnp.float32)   # (dj, co)

    kernel = functools.partial(_deconv_bn_kernel, H=H, W=W, Cin=Cin, Cout=Cout,
                               apply_relu=apply_bn_relu)
    out = pl.pallas_call(
        kernel,
        out_shape=jax.ShapeDtypeStruct((N, H, 2, W, 2 * Cout), out_dtype),
        grid=(N,),
        in_specs=[
            pl.BlockSpec((1, H, W, Cin), lambda n: (n, 0, 0, 0)),
            pl.BlockSpec((Cin, 4 * Cout), lambda n: (0, 0)),
            pl.BlockSpec((1, 2 * Cout), lambda n: (0, 0)),
        ],
        out_specs=pl.BlockSpec((1, H, 2, W, 2 * Cout), lambda n: (n, 0, 0, 0, 0)),
        compiler_params=pltpu.CompilerParams(
            dimension_semantics=("parallel",),
            vmem_limit_bytes=_VMEM_LIMIT),
        cost_estimate=pl.CostEstimate(
            flops=2 * N * H * W * Cin * 4 * Cout, transcendentals=0,
            bytes_accessed=(N * H * W * Cin) * x.dtype.itemsize + (Cin * 4 * Cout) * 2
                           + (N * 4 * H * W * Cout) * jnp.dtype(out_dtype).itemsize),
    )(x, w2d, shift2)
    # (N, H, 2, W, 2*Cout) -> (N, 2H, 2W, Cout): contiguous, metadata-only reshape.
    return out.reshape(N, 2 * H, 2 * W, Cout)


# ---------------------------------------------------------------------------
# Full CNN6AutoEncoder forward (eval mode), starting from log-mel features.
# ---------------------------------------------------------------------------
def cnn6_autoencoder_forward(logmel, params, *, eps=1e-5):
    """logmel: (N, T, M) f32 — the (already cropped) log-mel spectrogram, i.e. everything
    after the module's Spectrogram/LogmelFilterBank front-end and the x[:, :, :128, :] crop.
    Returns {'loss', 'x', 'y'} matching the module (x/y kept in (N, T, M) layout)."""
    # TODO(synk): Spectrogram + LogmelFilterBank (STFT) front-end not implemented in Pallas.
    input_spec = logmel

    # bn0 (eval mode) is a per-mel-bin affine; element-wise glue in plain JAX.
    p0 = params['bn0']
    s0 = p0['gamma'] / jnp.sqrt(p0['var'] + eps)
    x = logmel * s0 + (p0['beta'] - p0['mean'] * s0)

    x = x[..., None].astype(jnp.bfloat16)              # NHWC, Cin = 1, bf16 activations
    # Encoder.  TODO(synk): dropout(p=0.2)/training-mode BN not implemented (eval forward).
    for i in range(1, 5):
        p = params[f'conv{i}']
        x = conv_block_5x5(x, p['w'], p['gamma'], p['beta'], p['mean'], p['var'],
                           eps=eps, pool_size=(2, 2), pool_type='avg')
    # Decoder.
    for i in range(1, 4):
        p = params[f'deconv{i}']
        x = deconv_block_2x2(x, p['w'], p['gamma'], p['beta'], p['mean'], p['var'],
                             eps=eps, apply_bn_relu=True)
    y = deconv_block_2x2(x, params['deconv4']['w'], apply_bn_relu=False)   # f32 out layer
    y = y[..., 0]                                      # (N, T, M)

    loss = jnp.mean((y - input_spec) ** 2)
    return {'loss': loss, 'x': input_spec, 'y': y}


# ---------------------------------------------------------------------------
# Pure-JAX references (same bf16-matmul / f32-accumulate / bf16-activation policy).
# ---------------------------------------------------------------------------
def _conv_block_ref(x, conv_w, bn_gamma, bn_beta, bn_mean, bn_var,
                    eps=1e-5, pool_size=(2, 2), pool_type='avg'):
    scale = bn_gamma / jnp.sqrt(bn_var + eps)
    shift = bn_beta - bn_mean * scale
    w = (jnp.transpose(conv_w, (2, 3, 1, 0)) * scale).astype(jnp.bfloat16)
    y = jax.lax.conv_general_dilated(
        x.astype(jnp.bfloat16), w, window_strides=(1, 1), padding=((2, 2), (2, 2)),
        dimension_numbers=('NHWC', 'HWIO', 'NHWC'),
        preferred_element_type=jnp.float32)
    y = jnp.maximum(y + shift, 0.0)
    N, H, W, C = y.shape
    ph, pw = pool_size
    yr = y.reshape(N, H // ph, ph, W // pw, pw, C)
    if pool_type == 'avg':
        return yr.mean(axis=(2, 4))
    if pool_type == 'max':
        return yr.max(axis=(2, 4))
    return yr.mean(axis=(2, 4)) + yr.max(axis=(2, 4))


def _deconv_block_ref(x, deconv_w, bn_gamma=None, bn_beta=None, bn_mean=None,
                      bn_var=None, eps=1e-5, apply_bn_relu=True):
    Cout = deconv_w.shape[1]
    w = jnp.transpose(deconv_w, (0, 2, 3, 1))          # (Cin, 2, 2, Cout)
    if apply_bn_relu:
        scale = bn_gamma / jnp.sqrt(bn_var + eps)
        shift = bn_beta - bn_mean * scale
        w = w * scale
    else:
        shift = jnp.zeros((Cout,), jnp.float32)
    y = jnp.einsum('nhwi,iabo->nhawbo', x.astype(jnp.bfloat16), w.astype(jnp.bfloat16),
                   preferred_element_type=jnp.float32)
    N, H, _, W, _, C = y.shape
    y = y.reshape(N, 2 * H, 2 * W, C) + shift
    if apply_bn_relu:
        y = jnp.maximum(y, 0.0)
    return y


def _cnn6_forward_ref(logmel, params, eps=1e-5):
    input_spec = logmel
    p0 = params['bn0']
    s0 = p0['gamma'] / jnp.sqrt(p0['var'] + eps)
    x = logmel * s0 + (p0['beta'] - p0['mean'] * s0)
    x = x[..., None].astype(jnp.bfloat16)
    for i in range(1, 5):
        p = params[f'conv{i}']
        x = _conv_block_ref(x, p['w'], p['gamma'], p['beta'], p['mean'],
                            p['var'], eps).astype(jnp.bfloat16)
    for i in range(1, 4):
        p = params[f'deconv{i}']
        x = _deconv_block_ref(x, p['w'], p['gamma'], p['beta'], p['mean'], p['var'], eps,
                              apply_bn_relu=True).astype(jnp.bfloat16)
    y = _deconv_block_ref(x, params['deconv4']['w'], apply_bn_relu=False)
    y = y[..., 0].astype(jnp.float32)
    loss = jnp.mean((y - input_spec) ** 2)
    return {'loss': loss, 'x': input_spec, 'y': y}


if __name__ == "__main__":
    key = jax.random.PRNGKey(0)
    keys = iter(jax.random.split(key, 64))

    def xavier(k, shape, fan_in, fan_out):
        bound = (6.0 / (fan_in + fan_out)) ** 0.5
        return jax.random.uniform(k, shape, jnp.float32, -bound, bound)

    def bn_params(n):  # non-trivial eval-mode running stats to exercise the BN fold
        return dict(
            gamma=jax.random.uniform(next(keys), (n,), jnp.float32, 0.5, 1.5),
            beta=0.1 * jax.random.normal(next(keys), (n,), jnp.float32),
            mean=0.1 * jax.random.normal(next(keys), (n,), jnp.float32),
            var=jax.random.uniform(next(keys), (n,), jnp.float32, 0.5, 1.5))

    # --- (1) standalone ConvBlock5x5 check ------------------------------------------
    N, H, W, Cin, Cout = 2, 16, 16, 4, 8
    x1 = jax.random.normal(next(keys), (N, H, W, Cin), jnp.float32)
    w1 = xavier(next(keys), (Cout, Cin, 5, 5), Cin * 25, Cout * 25)
    b1 = bn_params(Cout)
    got = conv_block_5x5(x1, w1, b1['gamma'], b1['beta'], b1['mean'], b1['var'],
                         pool_type='avg')
    got = jax.block_until_ready(got)
    ref = _conv_block_ref(x1, w1, b1['gamma'], b1['beta'], b1['mean'], b1['var'])
    assert got.shape == (N, H // 2, W // 2, Cout), got.shape
    err = float(jnp.max(jnp.abs(got.astype(jnp.float32) - ref)))
    assert err < 2e-2, f"conv block mismatch: {err}"

    # --- (2) standalone deConvBlock5x5 check ----------------------------------------
    N2, H2, W2, Ci2, Co2 = 2, 8, 8, 16, 8
    x2 = jax.random.normal(next(keys), (N2, H2, W2, Ci2), jnp.float32)
    w2 = xavier(next(keys), (Ci2, Co2, 2, 2), Ci2 * 4, Co2 * 4)
    b2 = bn_params(Co2)
    got2 = deconv_block_2x2(x2, w2, b2['gamma'], b2['beta'], b2['mean'], b2['var'])
    got2 = jax.block_until_ready(got2)
    ref2 = _deconv_block_ref(x2, w2, b2['gamma'], b2['beta'], b2['mean'], b2['var'])
    assert got2.shape == (N2, 2 * H2, 2 * W2, Co2), got2.shape
    err2 = float(jnp.max(jnp.abs(got2.astype(jnp.float32) - ref2)))
    assert err2 < 2e-2, f"deconv block mismatch: {err2}"

    # --- (3) full CNN6AutoEncoder forward (scaled-down channels, small spectrogram) --
    Nb, T, M = 2, 32, 32          # real model: T crop = 128, M = 64 mel bins
    enc = [1, 8, 16, 32, 64]      # real model: [1, 64, 128, 256, 512]
    dec = list(reversed(enc))     # mirror decoder, last layer -> 1 channel

    params = {'bn0': bn_params(M)}
    for i, (ci, co) in enumerate(zip(enc[:-1], enc[1:]), 1):
        params[f'conv{i}'] = dict(w=xavier(next(keys), (co, ci, 5, 5), ci * 25, co * 25),
                                  **bn_params(co))
    for i, (ci, co) in enumerate(zip(dec[:-1], dec[1:]), 1):
        p = dict(w=xavier(next(keys), (ci, co, 2, 2), ci * 4, co * 4))
        if i < 4:
            p.update(bn_params(co))
        params[f'deconv{i}'] = p

    logmel = jax.random.normal(next(keys), (Nb, T, M), jnp.float32)
    out = cnn6_autoencoder_forward(logmel, params)
    out = jax.block_until_ready(out)
    ref_out = _cnn6_forward_ref(logmel, params)

    assert out['y'].shape == (Nb, T, M), out['y'].shape
    err_y = float(jnp.max(jnp.abs(out['y'] - ref_out['y'])))
    err_l = abs(float(out['loss']) - float(ref_out['loss']))
    assert err_y < 5e-2, f"autoencoder output mismatch: {err_y}"
    assert err_l < 5e-2 * max(1.0, float(ref_out['loss'])), f"loss mismatch: {err_l}"

    print("KERNEL_OK")
</pallas_src>

<mosaic_0001>
module attributes {stable_mosaic.version = 11 : i64} {
  func.func @_conv_bn_pool_kernel(%arg0: i32, %arg1: memref<1x16x16x4xf32, #tpu.memory_space<vmem>>, %arg2: memref<100x128xbf16, #tpu.memory_space<vmem>>, %arg3: memref<1x128xf32, #tpu.memory_space<vmem>>, %arg4: memref<1x8x8x128xbf16, #tpu.memory_space<vmem>>, %arg5: memref<20x20x4xbf16, #tpu.memory_space<vmem>>, %arg6: memref<20x16x20xbf16, #tpu.memory_space<vmem>>) attributes {dimension_semantics = [#tpu.dimension_semantics<parallel>], iteration_bounds = array<i64: 2>, scalar_prefetch = 0 : i64, scratch_operands = 2 : i64, tpu.core_type = #tpu.core_type<tc>, window_params = [{transform_indices = @transform_0, window_bounds = array<i64: 1, 16, 16, 4>}, {pipeline_mode = #tpu.pipeline_mode<synchronous>, transform_indices = @transform_1, window_bounds = array<i64: 100, 128>}, {pipeline_mode = #tpu.pipeline_mode<synchronous>, transform_indices = @transform_2, window_bounds = array<i64: 1, 128>}, {transform_indices = @transform_3, window_bounds = array<i64: 1, 8, 8, 128>}]} {
    %cst = arith.constant 0.000000e+00 : bf16
    %0 = vector.broadcast %cst : bf16 to vector<2x20x4xbf16>
    %c0 = arith.constant 0 : index
    %c0_0 = arith.constant 0 : index
    %c0_1 = arith.constant 0 : index
    %1 = vector.load %arg5[%c0, %c0_0, %c0_1] : memref<20x20x4xbf16, #tpu.memory_space<vmem>>, vector<2x20x4xbf16>
    tpu.vector_store %arg5[%c0, %c0_0, %c0_1], %0 {strides = array<i32>} : memref<20x20x4xbf16, #tpu.memory_space<vmem>>, vector<2x20x4xbf16>,
    %cst_2 = arith.constant 0.000000e+00 : bf16
    %2 = vector.broadcast %cst_2 : bf16 to vector<2x20x4xbf16>
    %c18 = arith.constant 18 : index
    %c0_3 = arith.constant 0 : index
    %c0_4 = arith.constant 0 : index
    %3 = vector.load %arg5[%c18, %c0_3, %c0_4] : memref<20x20x4xbf16, #tpu.memory_space<vmem>>, vector<2x20x4xbf16>
    tpu.vector_store %arg5[%c18, %c0_3, %c0_4], %2 {strides = array<i32>} : memref<20x20x4xbf16, #tpu.memory_space<vmem>>, vector<2x20x4xbf16>,
    %cst_5 = arith.constant 0.000000e+00 : bf16
    %4 = vector.broadcast %cst_5 : bf16 to vector<16x2x4xbf16>
    %c2 = arith.constant 2 : index
    %c0_6 = arith.constant 0 : index
    %c0_7 = arith.constant 0 : index
    %5 = vector.load %arg5[%c2, %c0_6, %c0_7] : memref<20x20x4xbf16, #tpu.memory_space<vmem>>, vector<16x2x4xbf16>
    tpu.vector_store %arg5[%c2, %c0_6, %c0_7], %4 {strides = array<i32>} : memref<20x20x4xbf16, #tpu.memory_space<vmem>>, vector<16x2x4xbf16>,
    %cst_8 = arith.constant 0.000000e+00 : bf16
    %6 = vector.broadcast %cst_8 : bf16 to vector<16x2x4xbf16>
    %c2_9 = arith.constant 2 : index
    %c18_10 = arith.constant 18 : index
    %c0_11 = arith.constant 0 : index
    %7 = vector.load %arg5[%c2_9, %c18_10, %c0_11] : memref<20x20x4xbf16, #tpu.memory_space<vmem>>, vector<16x2x4xbf16>
    tpu.vector_store %arg5[%c2_9, %c18_10, %c0_11], %6 {strides = array<i32>} : memref<20x20x4xbf16, #tpu.memory_space<vmem>>, vector<16x2x4xbf16>,
    %c0_12 = arith.constant 0 : index
    %c0_13 = arith.constant 0 : index
    %c0_14 = arith.constant 0 : index
    %c0_15 = arith.constant 0 : index
    %8 = vector.load %arg1[%c0_12, %c0_13, %c0_14, %c0_15] : memref<1x16x16x4xf32, #tpu.memory_space<vmem>>, vector<1x16x16x4xf32>
    %9 = vector.shape_cast %8 : vector<1x16x16x4xf32> to vector<16x16x4xf32>
    %10 = arith.truncf %9 : vector<16x16x4xf32> to vector<16x16x4xbf16>
    %c2_16 = arith.constant 2 : index
    %c2_17 = arith.constant 2 : index
    %c0_18 = arith.constant 0 : index
    %11 = vector.load %arg5[%c2_16, %c2_17, %c0_18] : memref<20x20x4xbf16, #tpu.memory_space<vmem>>, vector<16x16x4xbf16>
    tpu.vector_store %arg5[%c2_16, %c2_17, %c0_18], %10 {strides = array<i32>} : memref<20x20x4xbf16, #tpu.memory_space<vmem>>, vector<16x16x4xbf16>,
    %c0_19 = arith.constant 0 : index
    %c0_20 = arith.constant 0 : index
    %c0_21 = arith.constant 0 : index
    %12 = vector.load %arg5[%c0_19, %c0_20, %c0_21] : memref<20x20x4xbf16, #tpu.memory_space<vmem>>, vector<20x16x4xbf16>
    %c0_22 = arith.constant 0 : index
    %c0_23 = arith.constant 0 : index
    %c0_24 = arith.constant 0 : index
    %13 = vector.load %arg6[%c0_22, %c0_23, %c0_24] : memref<20x16x20xbf16, #tpu.memory_space<vmem>>, vector<20x16x4xbf16>
    tpu.vector_store %arg6[%c0_22, %c0_23, %c0_24], %12 {strides = array<i32>} : memref<20x16x20xbf16, #tpu.memory_space<vmem>>, vector<20x16x4xbf16>,
    %c0_25 = arith.constant 0 : index
    %c1 = arith.constant 1 : index
    %c0_26 = arith.constant 0 : index
    %14 = vector.load %arg5[%c0_25, %c1, %c0_26] : memref<20x20x4xbf16, #tpu.memory_space<vmem>>, vector<20x16x4xbf16>
    %c0_27 = arith.constant 0 : index
    %c0_28 = arith.constant 0 : index
    %c4 = arith.constant 4 : index
    %15 = vector.load %arg6[%c0_27, %c0_28, %c4] : memref<20x16x20xbf16, #tpu.memory_space<vmem>>, vector<20x16x4xbf16>
    tpu.vector_store %arg6[%c0_27, %c0_28, %c4], %14 {strides = array<i32>} : memref<20x16x20xbf16, #tpu.memory_space<vmem>>, vector<20x16x4xbf16>,
    %c0_29 = arith.constant 0 : index
    %c2_30 = arith.constant 2 : index
    %c0_31 = arith.constant 0 : index
    %16 = vector.load %arg5[%c0_29, %c2_30, %c0_31] : memref<20x20x4xbf16, #tpu.memory_space<vmem>>, vector<20x16x4xbf16>
    %c0_32 = arith.constant 0 : index
    %c0_33 = arith.constant 0 : index
    %c8 = arith.constant 8 : index
    %17 = vector.load %arg6[%c0_32, %c0_33, %c8] : memref<20x16x20xbf16, #tpu.memory_space<vmem>>, vector<20x16x4xbf16>
    tpu.vector_store %arg6[%c0_32, %c0_33, %c8], %16 {strides = array<i32>} : memref<20x16x20xbf16, #tpu.memory_space<vmem>>, vector<20x16x4xbf16>,
    %c0_34 = arith.constant 0 : index
    %c3 = arith.constant 3 : index
    %c0_35 = arith.constant 0 : index
    %18 = vector.load %arg5[%c0_34, %c3, %c0_35] : memref<20x20x4xbf16, #tpu.memory_space<vmem>>, vector<20x16x4xbf16>
    %c0_36 = arith.constant 0 : index
    %c0_37 = arith.constant 0 : index
    %c12 = arith.constant 12 : index
    %19 = vector.load %arg6[%c0_36, %c0_37, %c12] : memref<20x16x20xbf16, #tpu.memory_space<vmem>>, vector<20x16x4xbf16>
    tpu.vector_store %arg6[%c0_36, %c0_37, %c12], %18 {strides = array<i32>} : memref<20x16x20xbf16, #tpu.memory_space<vmem>>, vector<20x16x4xbf16>,
    %c0_38 = arith.constant 0 : index
    %c4_39 = arith.constant 4 : index
    %c0_40 = arith.constant 0 : index
    %20 = vector.load %arg5[%c0_38, %c4_39, %c0_40] : memref<20x20x4xbf16, #tpu.memory_space<vmem>>, vector<20x16x4xbf16>
    %c0_41 = arith.constant 0 : index
    %c0_42 = arith.constant 0 : index
    %c16 = arith.constant 16 : index
    %21 = vector.load %arg6[%c0_41, %c0_42, %c16] : memref<20x16x20xbf16, #tpu.memory_space<vmem>>, vector<20x16x4xbf16>
    tpu.vector_store %arg6[%c0_41, %c0_42, %c16], %20 {strides = array<i32>} : memref<20x16x20xbf16, #tpu.memory_space<vmem>>, vector<20x16x4xbf16>,
    %c0_43 = arith.constant 0 : index
    %c0_44 = arith.constant 0 : index
    %c0_45 = arith.constant 0 : index
    %22 = vector.load %arg6[%c0_43, %c0_44, %c0_45] : memref<20x16x20xbf16, #tpu.memory_space<vmem>>, vector<16x16x20xbf16>
    %23 = vector.shape_cast %22 : vector<16x16x20xbf16> to vector<256x20xbf16>
    %c0_46 = arith.constant 0 : index
    %c0_47 = arith.constant 0 : index
    %24 = vector.load %arg2[%c0_46, %c0_47] : memref<100x128xbf16, #tpu.memory_space<vmem>>, vector<20x128xbf16>
    %cst_48 = arith.constant dense<0.000000e+00> : vector<256x128xf32>
    %25 = tpu.matmul %23, %24, %cst_48 {dimension_numbers = #tpu.dot_dimension_numbers<[1], [0], [0], [1], [0, 0, 1, 1], [], []>} : vector<256x20xbf16>, vector<20x128xbf16>, vector<256x128xf32> -> vector<256x128xf32>
    %c1_49 = arith.constant 1 : index
    %c0_50 = arith.constant 0 : index
    %c0_51 = arith.constant 0 : index
    %26 = vector.load %arg6[%c1_49, %c0_50, %c0_51] : memref<20x16x20xbf16, #tpu.memory_space<vmem>>, vector<16x16x20xbf16>
    %27 = vector.shape_cast %26 : vector<16x16x20xbf16> to vector<256x20xbf16>
    %c20 = arith.constant 20 : index
    %c0_52 = arith.constant 0 : index
    %28 = vector.load %arg2[%c20, %c0_52] : memref<100x128xbf16, #tpu.memory_space<vmem>>, vector<20x128xbf16>
    %cst_53 = arith.constant dense<0.000000e+00> : vector<256x128xf32>
    %29 = tpu.matmul %27, %28, %cst_53 {dimension_numbers = #tpu.dot_dimension_numbers<[1], [0], [0], [1], [0, 0, 1, 1], [], []>} : vector<256x20xbf16>, vector<20x128xbf16>, vector<256x128xf32> -> vector<256x128xf32>
    %30 = arith.addf %25, %29 : vector<256x128xf32>
    %c2_54 = arith.constant 2 : index
    %c0_55 = arith.constant 0 : index
    %c0_56 = arith.constant 0 : index
    %31 = vector.load %arg6[%c2_54, %c0_55, %c0_56] : memref<20x16x20xbf16, #tpu.memory_space<vmem>>, vector<16x16x20xbf16>
    %32 = vector.shape_cast %31 : vector<16x16x20xbf16> to vector<256x20xbf16>
    %c40 = arith.constant 40 : index
    %c0_57 = arith.constant 0 : index
    %33 = vector.load %arg2[%c40, %c0_57] : memref<100x128xbf16, #tpu.memory_space<vmem>>, vector<20x128xbf16>
    %cst_58 = arith.constant dense<0.000000e+00> : vector<256x128xf32>
    %34 = tpu.matmul %32, %33, %cst_58 {dimension_numbers = #tpu.dot_dimension_numbers<[1], [0], [0], [1], [0, 0, 1, 1], [], []>} : vector<256x20xbf16>, vector<20x128xbf16>, vector<256x128xf32> -> vector<256x128xf32>
    %35 = arith.addf %30, %34 : vector<256x128xf32>
    %c3_59 = arith.constant 3 : index
    %c0_60 = arith.constant 0 : index
    %c0_61 = arith.constant 0 : index
    %36 = vector.load %arg6[%c3_59, %c0_60, %c0_61] : memref<20x16x20xbf16, #tpu.memory_space<vmem>>, vector<16x16x20xbf16>
    %37 = vector.shape_cast %36 : vector<16x16x20xbf16> to vector<256x20xbf16>
    %c60 = arith.constant 60 : index
    %c0_62 = arith.constant 0 : index
    %38 = vector.load %arg2[%c60, %c0_62] : memref<100x128xbf16, #tpu.memory_space<vmem>>, vector<20x128xbf16>
    %cst_63 = arith.constant dense<0.000000e+00> : vector<256x128xf32>
    %39 = tpu.matmul %37, %38, %cst_63 {dimension_numbers = #tpu.dot_dimension_numbers<[1], [0], [0], [1], [0, 0, 1, 1], [], []>} : vector<256x20xbf16>, vector<20x128xbf16>, vector<256x128xf32> -> vector<256x128xf32>
    %40 = arith.addf %35, %39 : vector<256x128xf32>
    %c4_64 = arith.constant 4 : index
    %c0_65 = arith.constant 0 : index
    %c0_66 = arith.constant 0 : index
    %41 = vector.load %arg6[%c4_64, %c0_65, %c0_66] : memref<20x16x20xbf16, #tpu.memory_space<vmem>>, vector<16x16x20xbf16>
    %42 = vector.shape_cast %41 : vector<16x16x20xbf16> to vector<256x20xbf16>
    %c80 = arith.constant 80 : index
    %c0_67 = arith.constant 0 : index
    %43 = vector.load %arg2[%c80, %c0_67] : memref<100x128xbf16, #tpu.memory_space<vmem>>, vector<20x128xbf16>
    %cst_68 = arith.constant dense<0.000000e+00> : vector<256x128xf32>
    %44 = tpu.matmul %42, %43, %cst_68 {dimension_numbers = #tpu.dot_dimension_numbers<[1], [0], [0], [1], [0, 0, 1, 1], [], []>} : vector<256x20xbf16>, vector<20x128xbf16>, vector<256x128xf32> -> vector<256x128xf32>
    %45 = arith.addf %40, %44 : vector<256x128xf32>
    %c0_69 = arith.constant 0 : index
    %c0_70 = arith.constant 0 : index
    %46 = vector.load %arg3[%c0_69, %c0_70] : memref<1x128xf32, #tpu.memory_space<vmem>>, vector<1x128xf32>
    %47 = vector.broadcast %46 : vector<1x128xf32> to vector<256x128xf32>
    %48 = arith.addf %45, %47 : vector<256x128xf32>
    %cst_71 = arith.constant 0.000000e+00 : f32
    %49 = vector.broadcast %cst_71 : f32 to vector<256x128xf32>
    %50 = arith.maximumf %48, %49 : vector<256x128xf32>
    %51 = vector.shape_cast %50 : vector<256x128xf32> to vector<8x2x16x128xf32>
    %cst_72 = arith.constant dense<0.000000e+00> : vector<8x16x128xf32>
    %52 = vector.multi_reduction <add>, %51, %cst_72 [1] : vector<8x2x16x128xf32> to vector<8x16x128xf32>
    %53 = vector.shape_cast %52 : vector<8x16x128xf32> to vector<8x8x2x128xf32>
    %cst_73 = arith.constant dense<0.000000e+00> : vector<8x8x128xf32>
    %54 = vector.multi_reduction <add>, %53, %cst_73 [2] : vector<8x8x2x128xf32> to vector<8x8x128xf32>
    %cst_74 = arith.constant 2.500000e-01 : f32
    %55 = vector.broadcast %cst_74 : f32 to vector<8x8x128xf32>
    %56 = arith.mulf %54, %55 : vector<8x8x128xf32>
    %57 = arith.truncf %56 : vector<8x8x128xf32> to vector<8x8x128xbf16>
    %c0_75 = arith.constant 0 : index
    %c0_76 = arith.constant 0 : index
    %c0_77 = arith.constant 0 : index
    %c0_78 = arith.constant 0 : index
    %58 = vector.load %arg4[%c0_75, %c0_76, %c0_77, %c0_78] : memref<1x8x8x128xbf16, #tpu.memory_space<vmem>>, vector<1x8x8x128xbf16>
    %59 = vector.shape_cast %58 : vector<1x8x8x128xbf16> to vector<8x8x128xbf16>
    %60 = vector.shape_cast %57 : vector<8x8x128xbf16> to vector<1x8x8x128xbf16>
    tpu.vector_store %arg4[%c0_75, %c0_76, %c0_77, %c0_78], %60 {strides = array<i32>} : memref<1x8x8x128xbf16, #tpu.memory_space<vmem>>, vector<1x8x8x128xbf16>,
    return
  }
  func.func @transform_0(%arg0: i32) -> (i32, i32, i32, i32) {
    %c0_i32 = arith.constant 0 : i32
    %c0_i32_0 = arith.constant 0 : i32
    %c0_i32_1 = arith.constant 0 : i32
    %c0_i32_2 = arith.constant 0 : i32
    return %arg0, %c0_i32, %c0_i32_0, %c0_i32_1 : i32, i32, i32, i32
  }
  func.func @transform_1(%arg0: i32) -> (i32, i32) {
    %c0_i32 = arith.constant 0 : i32
    %c0_i32_0 = arith.constant 0 : i32
    %c0_i32_1 = arith.constant 0 : i32
    return %c0_i32, %c0_i32_0 : i32, i32
  }
  func.func @transform_2(%arg0: i32) -> (i32, i32) {
    %c0_i32 = arith.constant 0 : i32
    %c0_i32_0 = arith.constant 0 : i32
    %c0_i32_1 = arith.constant 0 : i32
    return %c0_i32, %c0_i32_0 : i32, i32
  }
  func.func @transform_3(%arg0: i32) -> (i32, i32, i32, i32) {
    %c0_i32 = arith.constant 0 : i32
    %c0_i32_0 = arith.constant 0 : i32
    %c0_i32_1 = arith.constant 0 : i32
    %c0_i32_2 = arith.constant 0 : i32
    return %arg0, %c0_i32, %c0_i32_0, %c0_i32_1 : i32, i32, i32, i32
  }
}

</mosaic_0001>

<bundles_post_ra>
// kernel: tpu_custom_call.1
= control target key start
LH: loop header
LB: loop body
LE: loop exit
PB: predicated region body
PF: predicated region fallthrough
CT: control target
= control target key end

     0   :  { %8 = vsyncpa [#allocation5], 0  ;;  %s9141_s0 = inlined_call_operand.vmem [shape: f32[2,16,16,4], index: 0, kind: input, shape index: {}]   ;;  %s9142_s1 = inlined_call_operand.vmem [shape: bf16[100,128], index: 1, kind: input, shape index: {}]   ;;  %s9143_s2 = inlined_call_operand.vmem [shape: f32[1,128], index: 2, kind: input, shape index: {}]   ;;  %s9144_s3 = inlined_call_operand.hbm [shape: bf16[2,8,8,128], index: 3, kind: output, shape index: {}]  }
   0x1   :  { %10 = vsyncpa [#allocation5 + $0x1], 0  ;;  %s7091_s12 = smov 0   ;;  %s7093_s13 = smov 0  }
   0x2   :  { %s7095_s14 = smov 0   ;;  %s7097_s15 = smov 0  }
   0x3 LB: > { %s7112_s16 = sadd.s32 4294967295, %s7061_s15   ;;  %s6167_s17 = sadd.s32 4294967294, %s7061_s15   ;;  %s7061_s15 = sphi %s7097_s15, %s9161_s15   ;;  %s7057_s14 = sphi %s7095_s14, %s9160_s14   ;;  %s7053_s13 = sphi %s7093_s13, %s9159_s13   ;;  %s7049_s12 = sphi %s7091_s12, %s9158_s12  }
   0x4   : > { %s7116_s18 = sadd.s32 1, %s7061_s15   ;;  %s91_s19 = sadd.s32 1, %s7057_s14 }
   0x5   : > { %s88_s20 = ssub.s32 %s7061_s15, %s7116_s18  ;;  %p101_p0 = scmp.ne.s32.totalorder %s7057_s14, %s7053_s13 }
   0x6   : > { %p89_p1 = scmp.eq.s32.totalorder %s88_s20, 0  ;;  %p102_p2 = scmp.eq.s32.totalorder %s7112_s16, 1 }
   0x7   : > { %p107_p3 = scmp.ne.s32.totalorder %s7053_s13, %s7049_s12  ;;  %p108_p4 = scmp.eq.s32.totalorder %s6167_s17, 1 }
   0x8   : > { %s7127_s21 = scalar_select %p89_p1, %s7057_s14, %s91_s19  }
   0x9   : > { %p7129_p5 = por %p102_p2, %p101_p0  ;;  %p7133_p6 = por %p108_p4, %p107_p3 }
   0xa   : > { %p6170_p7 = scmp.ge.s32.totalorder %s7061_s15, 1  ;;  %p140_p8 = scmp.lt.s32.totalorder %s7061_s15, 3 }
   0xc   : > { %p141_p9 = pnand %p6170_p7, %p140_p8 }
   0xd   : > { %p164_p10 = scmp.lt.s32.totalorder (!%p141_p9), %s7112_s16, 1  ;;  %s7064_s29 = smov (!%p141_p9), 8  }
   0xe   : > { %144 = sbr.rel (%p141_p9) target bundleno = 970 (0x3ca), region = 32  ;;  %s7065_s30 = smov (!%p141_p9), 4  }
   0xf   : > { %s7066_s4 = smov (!%p141_p9), 12   ;;  %s7067_s5 = smov (!%p141_p9), 16  }
  0x10   : > { %s161_s11 = sand.u32 (!%p141_p9), 1, %s7053_s13  }
  0x11   : > { %s6171_s17 = sshll.u32 (!%p141_p9), %s161_s11, 5 }
  0x12   : > { %s8858_s19 = scalar_lea.vmem (!%p141_p9), [#allocation4], %s6171_s17 }
  0x13   : > { %vm170_vm0 = vcmask 27648   ;;  %vm173_vm1 = vcmask 25600   ;;  %v7063_v0 = vmov 0   ;;  %vm186_vm2 = vcmask 24576   ;;  %s7149_s24 = scalar_select %p164_p10, %s7112_s16, 1 }
  0x14   : > { %176 = vst.msk [vmem:[#allocation2 + $0x10] sm:$0xf] %vm170_vm0, %v7063_v0  ;;  %171 = vst.msk [vmem:[#allocation2] sm:$0xf] %vm170_vm0, %v7063_v0  ;;  %vm1432_vm3 = vcmask 1042432   ;;  %vm1433_vm4 = vcmask 1046532  }
  0x15   : > { %177 = vst.msk [vmem:[#allocation2 + $0x14] sm:$0x3] %vm173_vm1, %v7063_v0  ;;  %174 = vst.msk [vmem:[#allocation2 + $0x8] sm:$0x3] %vm173_vm1, %v7063_v0  ;;  %vm203_vm5 = vcmask 25601   ;;  %s6486_s25 = sshll.u32 %s7149_s24, 8 }
  0x16   : > { %172 = vst.msk [vmem:[#allocation2 + $0x4] sm:$0xf] %vm170_vm0, %v7063_v0  ;;  %175 = vst.msk [vmem:[#allocation2 + $0xc] sm:$0xf] %vm170_vm0, %v7063_v0  ;;  %vm668_vm6 = vsmask.f32 3328  ;;  %s7193_s28 = scalar_lea.vmem %s9141_s0, %s6486_s25 }
  0x17   : > { %179 = vst.msk [vmem:[#allocation2 + $0xd8] sm:$0xf] %vm170_vm0, %v7063_v0  ;;  %180 = vst.msk [vmem:[#allocation2 + $0xdc] sm:$0xf] %vm170_vm0, %v7063_v0  ;;  %vm669_vm8 = vsmask.f32 7440 }
  0x18   : > { %181 = vst.msk [vmem:[#allocation2 + $0xe0] sm:$0x3] %vm173_vm1, %v7063_v0  ;;  %184 = vst.msk [vmem:[#allocation2 + $0xec] sm:$0x3] %vm173_vm1, %v7063_v0  ;;  %v234_v2 = vld [vmem:[%s7193_s28 + $0x70] sm:$0xff]  ;;  %v235_v3 = vld [vmem:[%s7193_s28 + $0x78] sm:$0xff] }
  0x19   : > { %182 = vst.msk [vmem:[#allocation2 + $0xe4] sm:$0xf] %vm170_vm0, %v7063_v0  ;;  %183 = vst.msk [vmem:[#allocation2 + $0xe8] sm:$0xf] %vm170_vm0, %v7063_v0  ;;  %vm348_vm9 = vcmask 1040384   ;;  %vm349_vm10 = vcmask 1044484   ;;  %v6501_v8 = vpack.c.bf16 %v234_v2, %v234_v2  ;;  %v6502_v13 = vpack.c.bf16 %v235_v3, %v235_v3 }
  0x1a   : > { %187 = vst.msk [vmem:[#allocation2 + $0x18] sm:$0x1] %vm186_vm2, %v7063_v0  ;;  %188 = vst.msk [vmem:[#allocation2 + $0x24] sm:$0x1] %vm186_vm2, %v7063_v0  ;;  %vm479_vm11 = vcmask 27649   ;;  %v236_v4 = vld [vmem:[%s7193_s28 + $0x80] sm:$0xff] }
  0x1b   : > { %189 = vst.msk [vmem:[#allocation2 + $0x30] sm:$0x1] %vm186_vm2, %v7063_v0  ;;  %190 = vst.msk [vmem:[#allocation2 + $0x3c] sm:$0x1] %vm186_vm2, %v7063_v0  ;;  %v1316_v5 = vld [vmem:[#allocation2 + $0x10] sm:$0xf]  ;;  %v6503_v19 = vpack.c.bf16 %v236_v4, %v236_v4 }
  0x1c   : > { %191 = vst.msk [vmem:[#allocation2 + $0x48] sm:$0x1] %vm186_vm2, %v7063_v0  ;;  %192 = vst.msk [vmem:[#allocation2 + $0x54] sm:$0x1] %vm186_vm2, %v7063_v0  ;;  %v1317_v6 = vld [vmem:[#allocation2 + $0x14] sm:$0x1] }
  0x1d   : > { %193 = vst.msk [vmem:[#allocation2 + $0x60] sm:$0x1] %vm186_vm2, %v7063_v0  ;;  %194 = vst.msk [vmem:[#allocation2 + $0x6c] sm:$0x1] %vm186_vm2, %v7063_v0  ;;  %v1315_v7 = vld [vmem:[#allocation2 + $0xc] sm:$0xe] }
  0x1e   : > { %195 = vst.msk [vmem:[#allocation2 + $0x78] sm:$0x1] %vm186_vm2, %v7063_v0  ;;  %196 = vst.msk [vmem:[#allocation2 + $0x84] sm:$0x1] %vm186_vm2, %v7063_v0  ;;  %v1444_v9 = vrot.slane %v1316_v5, 5  ;;  %v1447_v10 = vrot.slane %v1317_v6, 5 }
  0x1f   : > { %197 = vst.msk [vmem:[#allocation2 + $0x90] sm:$0x1] %vm186_vm2, %v7063_v0  ;;  %198 = vst.msk [vmem:[#allocation2 + $0x9c] sm:$0x1] %vm186_vm2, %v7063_v0  ;;  %v6207_v11 = vrot.slane %v1315_v7, 9  ;;  %v237_v14 = vld [vmem:[%s7193_s28 + $0x88] sm:$0xff] }
  0x20   : > { %199 = vst.msk [vmem:[#allocation2 + $0xa8] sm:$0x1] %vm186_vm2, %v7063_v0  ;;  %200 = vst.msk [vmem:[#allocation2 + $0xb4] sm:$0x1] %vm186_vm2, %v7063_v0  ;;  %v612_v12 = vld [vmem:[#allocation2 + $0x10] sm:$0xf]  ;;  %v6504_v20 = vpack.c.bf16 %v237_v14, %v237_v14 }
  0x21   : > { %201 = vst.msk [vmem:[#allocation2 + $0xc0] sm:$0x1] %vm186_vm2, %v7063_v0  ;;  %202 = vst.msk [vmem:[#allocation2 + $0xcc] sm:$0x1] %vm186_vm2, %v7063_v0  ;;  %v613_v15 = vld [vmem:[#allocation2 + $0x14] sm:$0x1] }
  0x22   : > { %211 = vst.msk [vmem:[#allocation2 + $0x74] sm:$0x2] %vm203_vm5, %v7063_v0  ;;  %204 = vst.msk [vmem:[#allocation2 + $0x20] sm:$0x2] %vm203_vm5, %v7063_v0  ;;  %v705_v16 = vshll.u32 %v612_v12, 16  ;;  %v709_v17 = vshrl.u32 %v612_v12, 16 }
  0x23   : > { %205 = vst.msk [vmem:[#allocation2 + $0x2c] sm:$0x2] %vm203_vm5, %v7063_v0  ;;  %206 = vst.msk [vmem:[#allocation2 + $0x38] sm:$0x2] %vm203_vm5, %v7063_v0  ;;  %v611_v18 = vld [vmem:[#allocation2 + $0xc] sm:$0xf] }
  0x24   : > { %207 = vst.msk [vmem:[#allocation2 + $0x44] sm:$0x2] %vm203_vm5, %v7063_v0  ;;  %208 = vst.msk [vmem:[#allocation2 + $0x50] sm:$0x2] %vm203_vm5, %v7063_v0  ;;  %v1446_v21 = vrot.slane %v1444_v9, 4  ;;  %v715_v23 = vshll.u32 %v613_v15, 16 }
  0x25   : > { %209 = vst.msk [vmem:[#allocation2 + $0x5c] sm:$0x2] %vm203_vm5, %v7063_v0  ;;  %210 = vst.msk [vmem:[#allocation2 + $0x68] sm:$0x2] %vm203_vm5, %v7063_v0  ;;  %v696_v24 = vshrl.u32 %v611_v18, 16  ;;  %v707_v25 = vrot.slane %v705_v16, 5 }
  0x26   : > { %212 = vst.msk [vmem:[#allocation2 + $0x80] sm:$0x2] %vm203_vm5, %v7063_v0  ;;  %213 = vst.msk [vmem:[#allocation2 + $0x8c] sm:$0x2] %vm203_vm5, %v7063_v0  ;;  %v711_v26 = vrot.slane %v709_v17, 4  ;;  %v699_v27 = vshll.u32 %v611_v18, 16 }
  0x27   : > { %214 = vst.msk [vmem:[#allocation2 + $0x98] sm:$0x2] %vm203_vm5, %v7063_v0  ;;  %215 = vst.msk [vmem:[#allocation2 + $0xa4] sm:$0x2] %vm203_vm5, %v7063_v0  ;;  %v386_v28 = vrot.slane %v6501_v8, 7  ;;  %v220_v29 = vld [vmem:[%s7193_s28] sm:$0xff] }
  0x28   : > { %216 = vst.msk [vmem:[#allocation2 + $0xb0] sm:$0x2] %vm203_vm5, %v7063_v0  ;;  %217 = vst.msk [vmem:[#allocation2 + $0xbc] sm:$0x2] %vm203_vm5, %v7063_v0  ;;  %v221_v30 = vld [vmem:[%s7193_s28 + $0x8] sm:$0xff]  ;;  %v717_v32 = vrot.slane %v715_v23, 5  ;;  %v712_v36 = vor.u32 %v711_v26, %v707_v25  ;;  %v6487_v44 = vpack.c.bf16 %v220_v29, %v220_v29 }
  0x29   : > { %218 = vst.msk [vmem:[#allocation2 + $0xc8] sm:$0x2] %vm203_vm5, %v7063_v0  ;;  %219 = vst.msk [vmem:[#allocation2 + $0xd4] sm:$0x2] %vm203_vm5, %v7063_v0  ;;  %v698_v33 = vrot.slane %v696_v24, 4  ;;  %v388_v35 = vrot.slane %v6502_v13, 7  ;;  %v6488_v45 = vpack.c.bf16 %v221_v30, %v221_v30 }
  0x2a   : > { %vm7186_vm7 = vmor %vm1432_vm3, %vm1433_vm4  ;;  %v701_v37 = vrot.slane %v699_v27, 5  ;;  %v387_v38 = vrot.slane %v386_v28, 4  ;;  %501 = vst.msk [vmem:[#allocation2 + $0x6c] sm:$0xe] %vm479_vm11, %v386_v28  ;;  %v391_v39 = vrot.slane %v6503_v19, 7  ;;  %v393_v43 = vrot.slane %v6504_v20, 7 }
  0x2b   : > { %v1445_v22 = vsel %vm7186_vm7, %v6207_v11, %v1444_v9  ;;  %v1448_v31 = vsel %vm7186_vm7, %v1446_v21, %v1447_v10  ;;  %vm7208_vm12 = vmor %vm348_vm9, %vm349_vm10  ;;  %v1740_v40 = vld [vmem:[#allocation2 + $0x10] sm:$0xf]  ;;  %v390_v42 = vrot.slane %v388_v35, 4  ;;  %v713_v46 = vrot.slane %v712_v36, 4  ;;  %v7225_v53 = vld [vmem:[#allocation2 + $0x14] sm:$0x3] }
  0x2c   : > { %1579 = vrot.lane.b32.xlu0 %v1445_v22, %s7064_s29  ;;  %1581 = vrot.lane.b32.xlu1 %v1448_v31, %s7064_s29  ;;  %vm7216_vm13 = vmor %vm668_vm6, %vm669_vm8  ;;  %v702_v47 = vor.u32 %v701_v37, %v698_v33  ;;  %v389_v48 = vsel %vm7208_vm12, %v387_v38, %v388_v35  ;;  %v392_v49 = vrot.slane %v391_v39, 4  ;;  %504 = vst.msk [vmem:[#allocation2 + $0x78] sm:$0xe] %vm479_vm11, %v391_v39  ;;  %v395_v50 = vrot.slane %v393_v43, 4  ;;  %v531_v59 = vld [vmem:[#allocation2 + $0x10] sm:$0xf] }
  0x2d   : > { %502 = vst.msk [vmem:[#allocation2 + $0x70] sm:$0xf] %vm170_vm0, %v389_v48  ;;  %v351_v51 = vrot.slane %v6487_v44, 7  ;;  %v353_v52 = vrot.slane %v6488_v45, 7  ;;  %v1837_v54 = vshrl.u32 %v1740_v40, 16  ;;  %v718_v55 = vsel %vm7216_vm13, %v713_v46, %v717_v32  ;;  %s6583_s25 = sshll.u32 %s7112_s16, 9 }
  0x2e   : > { %503 = vst.msk [vmem:[#allocation2 + $0x74] sm:$0x1] %vm186_vm2, %v390_v42  ;;  %v703_v56 = vrot.slane %v702_v47, 4  ;;  %v394_v57 = vsel %vm7208_vm12, %v392_v49, %v393_v43  ;;  %v1840_v58 = vshll.u32 %v1740_v40, 16  ;;  %506 = vst.msk [vmem:[#allocation2 + $0x80] sm:$0x1] %vm186_vm2, %v395_v50  ;;  %s9093_s6 = scalar_lea.hbm %s9144_s3, %s6583_s25 }
  0x2f   : > { %505 = vst.msk [vmem:[#allocation2 + $0x7c] sm:$0xf] %vm170_vm0, %v394_v57  ;;  %v352_v60 = vrot.slane %v351_v51, 4  ;;  %v355_v61 = vrot.slane %v353_v52, 4  ;;  %571 = vst.msk [vmem:[#allocation3 + $0xc] sm:$0xf] %vm170_vm0, %v531_v59 }
  0x30   : > { %1157 = vrot.lane.b32.xlu1 %v718_v55, %s7065_s30  ;;  %480 = vst.msk [vmem:[#allocation2 + $0x18] sm:$0xe] %vm479_vm11, %v351_v51  ;;  %v530_v62 = vld [vmem:[#allocation2 + $0xc] sm:$0xf]  ;;  %v708_v63 = vsel %vm7216_vm13, %v703_v56, %v707_v25  ;;  %v7238_v0 = vrot.slane %v1837_v54, 5  ;;  %v7240_v2 = vrot.slane %v1840_v58, 6 }
  0x31   : > { %v1847_v3 = vshrl.u32 %v7225_v53, 16  ;;  %570 = vst.msk [vmem:[#allocation3 + $0x8] sm:$0xf] %vm170_vm0, %v530_v62  ;;  %1155 = vrot.lane.b32.xlu0 %v708_v63, %s7065_s30  ;;  %v1339_v4 = vld [vmem:[#allocation2 + $0x6c] sm:$0xe]  ;;  %v354_v6 = vsel %vm7208_vm12, %v352_v60, %v353_v52  ;;  %v1850_v11 = vshll.u32 %v7225_v53, 16 }
  0x32   : > { %v635_v5 = vld [vmem:[#allocation2 + $0x6c] sm:$0xf]  ;;  %482 = vst.msk [vmem:[#allocation2 + $0x20] sm:$0x1] %vm186_vm2, %v355_v61  ;;  %v6215_v8 = vrot.slane %v1339_v4, 9  ;;  %vm2640_vm3 = vcmask 1041408  }
  0x33   : > { %v7247_v7 = vld [vmem:[#allocation2 + $0x6c] sm:$0xe]  ;;  %v888_v9 = vshrl.u32 %v635_v5, 16  ;;  %v891_v10 = vshll.u32 %v635_v5, 16  ;;  %481 = vst.msk [vmem:[#allocation2 + $0x1c] sm:$0xf] %vm170_vm0, %v354_v6 }
  0x34   : > { %v1342_v12 = vld [vmem:[#allocation2 + $0x78] sm:$0xe]  ;;  %v2052_v14 = vshrl.u32 %v7247_v7, 16  ;;  %v2055_v15 = vshll.u32 %v7247_v7, 16  ;;  %v1340_v16 = vld [vmem:[#allocation2 + $0x70] sm:$0xf] }
  0x35   : > { %v638_v13 = vld [vmem:[#allocation2 + $0x78] sm:$0xf]  ;;  %v1341_v17 = vld [vmem:[#allocation2 + $0x74] sm:$0x1]  ;;  %v6216_v18 = vrot.slane %v1342_v12, 9  ;;  %v890_v19 = vrot.slane %v888_v9, 4 }
  0x36   : > { %v1500_v20 = vrot.slane %v1340_v16, 5  ;;  %v1503_v21 = vrot.slane %v1341_v17, 5  ;;  %v7254_v22 = vld [vmem:[#allocation2 + $0x70] sm:$0xf]  ;;  %v893_v23 = vrot.slane %v891_v10, 5  ;;  %v912_v24 = vshrl.u32 %v638_v13, 16 }
  0x37   : > { %v1343_v25 = vld [vmem:[#allocation2 + $0x7c] sm:$0xf]  ;;  %v1344_v26 = vld [vmem:[#allocation2 + $0x80] sm:$0x1]  ;;  %v897_v27 = vshll.u32 %v7254_v22, 16  ;;  %v901_v28 = vshrl.u32 %v7254_v22, 16 }
  0x38   : > { %v1501_v29 = vsel %vm7186_vm7, %v6215_v8, %v1500_v20  ;;  %v1502_v30 = vrot.slane %v1500_v20, 4  ;;  %v1507_v31 = vrot.slane %v1343_v25, 5  ;;  %v1510_v32 = vrot.slane %v1344_v26, 5  ;;  %v639_v33 = vld [vmem:[#allocation2 + $0x7c] sm:$0xf]  ;;  %s6105_s26 = sshll.u32 %s8858_s19, 4  ;;  %s9095_s26 = int_to_ptr.vmem [resolvable:$true] %s6105_s26 }
  0x39   : > { %vm1796_vm14 = vsmask.f32 2304  ;;  %vm1797_vm15 = vsmask.f32 6416  ;;  %1611 = vrot.lane.b32.xlu0 %v1501_v29, %s7064_s29  ;;  %v894_v35 = vor.u32 %v893_v23, %v890_v19  ;;  %v7261_v36 = vrot.slane %v897_v27, 5  ;;  %s9100_s16 = scalar_lea.sflag [#allocation5], %s161_s11 }
  0x3a   : > { %v914_v37 = vrot.slane %v912_v24, 4  ;;  %v915_v38 = vshll.u32 %v638_v13, 16  ;;  %v614_v39 = vld [vmem:[#allocation2 + $0x18] sm:$0xf]  ;;  %v1504_v40 = vsel %vm7186_vm7, %v1502_v30, %v1503_v21  ;;  %v1508_v42 = vsel %vm7186_vm7, %v6216_v18, %v1507_v31  ;;  %v615_v45 = vld [vmem:[#allocation2 + $0x1c] sm:$0xf]  ;;  %vm7283_vm1 = vmor %vm1796_vm14, %vm1797_vm15 }
  0x3b   : > { %v1509_v43 = vrot.slane %v1507_v31, 4  ;;  %v921_v44 = vshll.u32 %v639_v33, 16  ;;  %1613 = vrot.lane.b32.xlu1 %v1504_v40, %s7064_s29  ;;  %v895_v46 = vrot.slane %v894_v35, 4  ;;  %v925_v48 = vshrl.u32 %v639_v33, 16  ;;  %v640_v50 = vld [vmem:[#allocation2 + $0x80] sm:$0x1] }
  0x3c   : > { %v917_v47 = vrot.slane %v915_v38, 5  ;;  %v720_v49 = vshrl.u32 %v614_v39, 16  ;;  %v723_v54 = vshll.u32 %v614_v39, 16  ;;  %v729_v55 = vshll.u32 %v615_v45, 16  ;;  %v1764_v56 = vld [vmem:[#allocation2 + $0x70] sm:$0xf] }
  0x3d   : > { %v1511_v51 = vsel %vm7186_vm7, %v1509_v43, %v1510_v32  ;;  %v923_v52 = vrot.slane %v921_v44, 5  ;;  %1615 = vrot.lane.b32.xlu0 %v1508_v42, %s7064_s29  ;;  %v900_v57 = vsel %vm7216_vm13, %v895_v46, %v7261_v36  ;;  %v733_v60 = vshrl.u32 %v615_v45, 16  ;;  %v1765_v5 = vld [vmem:[#allocation2 + $0x74] sm:$0x3]  ;;  %v1767_v32 = vld [vmem:[#allocation2 + $0x7c] sm:$0xf] }
  0x3e   : > { %v918_v58 = vor.u32 %v917_v47, %v914_v37  ;;  %v722_v59 = vrot.slane %v720_v49, 4  ;;  %v725_v61 = vrot.slane %v723_v54, 5  ;;  %v7274_v62 = vrot.slane %v729_v55, 5  ;;  %v637_v17 = vld [vmem:[#allocation2 + $0x74] sm:$0x1]  ;;  %s7001_s7 = scalar_lea.vmem %s9095_s26, 512 }
  0x3f   : > { %v927_v63 = vrot.slane %v925_v48, 4  ;;  %v931_v4 = vshll.u32 %v640_v50, 16  ;;  %1617 = vrot.lane.b32.xlu1 %v1511_v51, %s7064_s29  ;;  %v2054_v7 = vrot.slane %v2052_v14, 5  ;;  %v2057_v8 = vrot.slane %v2055_v15, 6  ;;  %v616_v14 = vld [vmem:[#allocation2 + $0x20] sm:$0x1]  ;;  %p7002_p11 = scmp.ne.s32.totalorder %s9095_s26, %s7001_s7 }
  0x40   : > { %v919_v6 = vrot.slane %v918_v58, 4  ;;  %v2061_v9 = vshrl.u32 %v1764_v56, 16  ;;  %v726_v10 = vor.u32 %v725_v61, %v722_v59  ;;  %v2064_v16 = vshll.u32 %v1764_v56, 16  ;;  %v1768_v22 = vld [vmem:[#allocation2 + $0x80] sm:$0x3] }
  0x41   : > { %v928_v12 = vor.u32 %v927_v63, %v923_v52  ;;  %v933_v13 = vrot.slane %v931_v4, 5  ;;  %1187 = vrot.lane.b32.xlu0 %v900_v57, %s7065_s30  ;;  %v2058_v19 = vor.u32 %v2057_v8, %v2054_v7  ;;  %v2071_v21 = vshrl.u32 %v1765_v5, 16  ;;  %v1766_v47 = vld [vmem:[#allocation2 + $0x78] sm:$0xe]  ;;  %v7298_v48 = vld [vmem:[#allocation2 + $0xc] sm:$0xe]  ;;  %p7003_p12 = pnand %p7002_p11, %p7129_p5 }
  0x42   : > { %v924_v18 = vsel %vm7216_vm13, %v919_v6, %v923_v52  ;;  %v2063_v20 = vrot.slane %v2061_v9, 5  ;;  %v727_v23 = vrot.slane %v726_v10, 4  ;;  %v2066_v25 = vrot.slane %v2064_v16, 6  ;;  %v7302_v52 = vld [vmem:[#allocation2 + $0x70] sm:$0xf] }
  0x43   : > { %v929_v24 = vrot.slane %v928_v12, 4  ;;  %v2074_v26 = vshll.u32 %v1765_v5, 16  ;;  %1191 = vrot.lane.b32.xlu1 %v924_v18, %s7065_s30  ;;  %v2059_v27 = vrot.slane %v2058_v19, 4  ;;  %v2073_v29 = vrot.slane %v2071_v21, 5  ;;  %v7304_v54 = vld [vmem:[#allocation2 + $0x6c] sm:$0xc]  ;;  %p7004_p13 = pneg %p7003_p12 }
  0x44   : > { %v903_v30 = vrot.slane %v901_v28, 4  ;;  %v907_v31 = vshll.u32 %v637_v17, 16  ;;  %v732_v33 = vsel %vm7216_vm13, %v727_v23, %v7274_v62  ;;  %v2067_v37 = vor.u32 %v2066_v25, %v2063_v20  ;;  %v7308_v59 = vld [vmem:[#allocation2 + $0x74] sm:$0x3]  ;;  %v7313_v4 = vld [vmem:[#allocation2 + $0x1c] sm:$0xf] }
  0x45   : > { %v934_v35 = vsel %vm7216_vm13, %v929_v24, %v933_v13  ;;  %v2076_v38 = vrot.slane %v2074_v26, 6  ;;  %1159 = vrot.lane.b32.xlu0 %v732_v33, %s7065_s30  ;;  %v735_v42 = vrot.slane %v733_v60, 4  ;;  %v739_v43 = vshll.u32 %v616_v14, 16  ;;  %v7316_v5 = vld [vmem:[%s7193_s28 + $0x90] sm:$0xff]  ;;  %v7319_v10 = vld [vmem:[#allocation2 + $0x20] sm:$0x1] }
  0x46   : > { %v904_v39 = vor.u32 %v903_v30, %v7261_v36  ;;  %v909_v40 = vrot.slane %v907_v31, 5  ;;  %vm2641_vm4 = vcmask 1045508   ;;  %v2068_v28 = vsel %vm7283_vm1, %v2059_v27, %v2067_v37  ;;  %v7322_v12 = vld [vmem:[%s7193_s28 + $0x98] sm:$0xff]  ;;  %v546_v18 = vld [vmem:[#allocation2 + $0x6c] sm:$0xf]  ;;  %v7332_v26 = vld [vmem:[%s7193_s28 + $0xa0] sm:$0xff] }
  0x47   : > { %v2069_v44 = vrot.slane %v2067_v37, 4  ;;  %v2077_v45 = vor.u32 %v2076_v38, %v2073_v29  ;;  %v2089_v46 = vshrl.u32 %v1767_v32, 16  ;;  %1193 = vrot.lane.b32.xlu1 %v934_v35, %s7065_s30  ;;  %v736_v36 = vor.u32 %v735_v42, %v7274_v62  ;;  %v548_v19 = vld [vmem:[#allocation2 + $0x78] sm:$0xf]  ;;  %v7335_v14 = vld [vmem:[%s7193_s28 + $0xa8] sm:$0xff]  ;;  %vm7366_vm5 = vmor %vm2640_vm3, %vm2641_vm4 }
  0x48   : > { %v905_v49 = vrot.slane %v904_v39, 4  ;;  %v741_v50 = vrot.slane %v739_v43, 5  ;;  %v2092_v51 = vshll.u32 %v1767_v32, 16  ;;  %v2099_v57 = vshrl.u32 %v1768_v22, 16  ;;  %v7329_v25 = vld [vmem:[#allocation2 + $0x18] sm:$0xe] }
  0x49   : > { %v2078_v55 = vsel %vm7283_vm1, %v2069_v44, %v2077_v45  ;;  %v2091_v56 = vrot.slane %v2089_v46, 5  ;;  %v2102_v58 = vshll.u32 %v1768_v22, 16  ;;  %2395 = vrot.lane.b32.xlu0 %v2068_v28, %s7066_s4  ;;  %v737_v61 = vrot.slane %v736_v36, 4  ;;  %586 = vst.msk [vmem:[#allocation3 + $0x48] sm:$0xf] %vm170_vm0, %v546_v18 }
  0x4a   : > { %v910_v60 = vsel %vm7216_vm13, %v905_v49, %v909_v40  ;;  %v2094_v62 = vrot.slane %v2092_v51, 6  ;;  %v2080_v63 = vshrl.u32 %v1766_v47, 16  ;;  %v2101_v6 = vrot.slane %v2099_v57, 5  ;;  %588 = vst.msk [vmem:[#allocation3 + $0x50] sm:$0xf] %vm170_vm0, %v548_v19 }
  0x4b   : > { %v2104_v7 = vrot.slane %v2102_v58, 6  ;;  %v2083_v8 = vshll.u32 %v1766_v47, 16  ;;  %v2708_v9 = vrot.slane %v7302_v52, 6  ;;  %2397 = vrot.lane.b32.xlu1 %v2078_v55, %s7066_s4  ;;  %v1828_v17 = vshrl.u32 %v7298_v48, 16  ;;  %v532_v27 = vld [vmem:[#allocation2 + $0x18] sm:$0xf] }
  0x4c   : > { %v2095_v13 = vor.u32 %v2094_v62, %v2091_v56  ;;  %v2082_v16 = vrot.slane %v2080_v63, 5  ;;  %v742_v20 = vsel %vm7216_vm13, %v737_v61, %v741_v50  ;;  %v6235_v24 = vrot.slane %v7304_v54, 10  ;;  %v549_v29 = vld [vmem:[#allocation2 + $0x7c] sm:$0xf]  ;;  %572 = vst.msk [vmem:[#allocation3 + $0x10] sm:$0xf] %vm170_vm0, %v532_v27 }
  0x4d   : > { %v2105_v21 = vor.u32 %v2104_v7, %v2101_v6  ;;  %v2085_v23 = vrot.slane %v2083_v8, 6  ;;  %1189 = vrot.lane.b32.xlu0 %v910_v60, %s7065_s30  ;;  %v2711_v31 = vrot.slane %v7308_v59, 6  ;;  %v7343_v32 = vor.u32 %v7240_v2, %v7238_v0  ;;  %v7345_v33 = vld [vmem:[#allocation2 + $0x7c] sm:$0xf]  ;;  %589 = vst.msk [vmem:[#allocation3 + $0x54] sm:$0xf] %vm170_vm0, %v549_v29 }
  0x4e   : > { %v2097_v30 = vrot.slane %v2095_v13, 4  ;;  %v1743_v35 = vld [vmem:[#allocation2 + $0x1c] sm:$0xf]  ;;  %v547_v37 = vld [vmem:[#allocation2 + $0x70] sm:$0xf]  ;;  %v2710_v39 = vrot.slane %v2708_v9, 4  ;;  %v6505_v42 = vpack.c.bf16 %v7316_v5, %v7316_v5  ;;  %v6506_v44 = vpack.c.bf16 %v7322_v12, %v7322_v12 }
  0x4f   : > { %v2086_v38 = vor.u32 %v2085_v23, %v2082_v16  ;;  %v1451_v40 = vrot.slane %v7313_v4, 5  ;;  %587 = vst.msk [vmem:[#allocation3 + $0x4c] sm:$0xf] %vm170_vm0, %v547_v37  ;;  %v533_v0 = vld [vmem:[#allocation2 + $0x1c] sm:$0xf]  ;;  %1161 = vrot.lane.b32.xlu1 %v742_v20, %s7065_s30  ;;  %v1454_v43 = vrot.slane %v7319_v10, 5  ;;  %v6507_v56 = vpack.c.bf16 %v7332_v26, %v7332_v26 }
  0x50   : > { %v2106_v2 = vsel %vm7283_vm1, %v2097_v30, %v2105_v21  ;;  %v1849_v22 = vrot.slane %v1847_v3, 5  ;;  %v1744_v28 = vld [vmem:[#allocation2 + $0x20] sm:$0x3]  ;;  %573 = vst.msk [vmem:[#allocation3 + $0x14] sm:$0xf] %vm170_vm0, %v533_v0  ;;  %v1852_v47 = vrot.slane %v1850_v11, 6  ;;  %v6508_v57 = vpack.c.bf16 %v7335_v14, %v7335_v14 }
  0x51   : > { %v2087_v45 = vrot.slane %v2086_v38, 4  ;;  %v1830_v49 = vrot.slane %v1828_v17, 5  ;;  %v1831_v3 = vshll.u32 %v7298_v48, 16  ;;  %v1742_v36 = vld [vmem:[#allocation2 + $0x18] sm:$0xe]  ;;  %v6208_v50 = vrot.slane %v7329_v25, 9 }
  0x52   : > { %v1845_v51 = vrot.slane %v7343_v32, 4  ;;  %v2552_v54 = vld [vmem:[#allocation2 + $0x80] sm:$0x3]  ;;  %v2550_v55 = vld [vmem:[#allocation2 + $0x78] sm:$0xc]  ;;  %v2715_v48 = vrot.slane %v7345_v33, 6  ;;  %v2712_v60 = vsel %vm7366_vm5, %v2710_v39, %v2711_v31  ;;  %v2709_v61 = vsel %vm7366_vm5, %v6235_v24, %v2708_v9 }
  0x53   : > { %v2096_v53 = vsel %vm7283_vm1, %v2087_v45, %v2095_v13  ;;  %v1833_v11 = vrot.slane %v1831_v3, 6  ;;  %v1865_v58 = vshrl.u32 %v1743_v35, 16  ;;  %v222_v59 = vld [vmem:[%s7193_s28 + $0x10] sm:$0xff]  ;;  %2401 = vrot.lane.b32.xlu1 %v2106_v2, %s7066_s4  ;;  %v1453_v62 = vrot.slane %v1451_v40, 4  ;;  %v223_v10 = vld [vmem:[%s7193_s28 + $0x18] sm:$0xff]  ;;  %v224_v23 = vld [vmem:[%s7193_s28 + $0x20] sm:$0xff] }
  0x54   : > { %2399 = vrot.lane.b32.xlu0 %v2096_v53, %s7066_s4  ;;  %v1868_v63 = vshll.u32 %v1743_v35, 16  ;;  %v1853_v4 = vor.u32 %v1852_v47, %v1849_v22  ;;  %v1875_v7 = vshrl.u32 %v1744_v28, 16  ;;  %v1878_v8 = vshll.u32 %v1744_v28, 16  ;;  %v225_v25 = vld [vmem:[%s7193_s28 + $0x28] sm:$0xff]  ;;  %v7400_v14 = vld [vmem:[#allocation2 + $0x10] sm:$0xf] }
  0x55   : > { %v1834_v6 = vor.u32 %v1833_v11, %v1830_v49  ;;  %v1867_v13 = vrot.slane %v1865_v58, 5  ;;  %v1856_v17 = vshrl.u32 %v1742_v36, 16  ;;  %v1859_v18 = vshll.u32 %v1742_v36, 16  ;;  %v7406_v35 = vld [vmem:[#allocation2 + $0x14] sm:$0x3]  ;;  %v244_v53 = vld [vmem:[%s7193_s28 + $0xc0] sm:$0xff] }
  0x56   : > { %v1870_v16 = vrot.slane %v1868_v63, 6  ;;  %v2717_v19 = vrot.slane %v2715_v48, 4  ;;  %v2718_v20 = vrot.slane %v2552_v54, 6  ;;  %v6236_v21 = vrot.slane %v2550_v55, 10  ;;  %v7436_v12 = vld [vmem:[#allocation2 + $0x1c] sm:$0xf] }
  0x57   : > { %v6489_v52 = vpack.c.bf16 %v222_v59, %v222_v59  ;;  %2821 = vrot.lane.b32.xlu1 %v2712_v60, %s7067_s5  ;;  %v1455_v9 = vsel %vm7186_vm7, %v1453_v62, %v1454_v43  ;;  %v1452_v24 = vsel %vm7186_vm7, %v6208_v50, %v1451_v40  ;;  %v1835_v26 = vrot.slane %v1834_v6, 4  ;;  %v242_v50 = vld [vmem:[%s7193_s28 + $0xb0] sm:$0xff]  ;;  %v2528_v63 = vld [vmem:[#allocation2 + $0x20] sm:$0x3]  ;;  %v2574_v41 = vld [vmem:[#allocation2 + $0xd8] sm:$0xc] }
  0x58   : > { %2819 = vrot.lane.b32.xlu0 %v2709_v61, %s7067_s5  ;;  %v6490_v27 = vpack.c.bf16 %v223_v10, %v223_v10  ;;  %v7402_v29 = vrot.slane %v1875_v7, 5  ;;  %v7404_v30 = vrot.slane %v1878_v8, 6  ;;  %v1858_v31 = vrot.slane %v1856_v17, 5 }
  0x59   : > { %v1861_v33 = vrot.slane %v1859_v18, 6  ;;  %v1854_v37 = vsel %vm7283_vm1, %v1845_v51, %v1853_v4  ;;  %v7410_v38 = vor.u32 %v1870_v16, %v1867_v13  ;;  %v6491_v39 = vpack.c.bf16 %v224_v23, %v224_v23 }
  0x5a   : > { %v6492_v0 = vpack.c.bf16 %v225_v25, %v225_v25  ;;  %v2719_v40 = vsel %vm7366_vm5, %v2717_v19, %v2718_v20  ;;  %v2716_v2 = vsel %vm7366_vm5, %v6236_v21, %v2715_v48  ;;  %v2652_v43 = vrot.slane %v7400_v14, 6  ;;  %v2526_v19 = vld [vmem:[#allocation2 + $0x18] sm:$0xc] }
  0x5b   : > { %v396_v22 = vrot.slane %v6505_v42, 7  ;;  %1585 = vrot.lane.b32.xlu1 %v1455_v9, %s7064_s29  ;;  %v1844_v28 = vsel %vm7283_vm1, %v1835_v26, %v7343_v32  ;;  %v2655_v45 = vrot.slane %v7406_v35, 6  ;;  %v398_v47 = vrot.slane %v6506_v44, 7 }
  0x5c   : > { %1583 = vrot.lane.b32.xlu0 %v1452_v24, %s7064_s29  ;;  %v401_v49 = vrot.slane %v6507_v56, 7  ;;  %v1881_v5 = vor.u32 %v7404_v30, %v7402_v29  ;;  %v1862_v42 = vor.u32 %v1861_v33, %v1858_v31  ;;  %v403_v36 = vrot.slane %v6508_v57, 7  ;;  %v2523_v57 = vld [vmem:[#allocation2 + $0xc] sm:$0xc] }
  0x5d   : > { %v397_v3 = vrot.slane %v396_v22, 4  ;;  %507 = vst.msk [vmem:[#allocation2 + $0x84] sm:$0xe] %vm479_vm11, %v396_v22  ;;  %v1873_v51 = vrot.slane %v7410_v38, 4  ;;  %v400_v54 = vrot.slane %v398_v47, 4  ;;  %v356_v55 = vrot.slane %v6489_v52, 7 }
  0x5e   : > { %v402_v32 = vrot.slane %v401_v49, 4  ;;  %510 = vst.msk [vmem:[#allocation2 + $0x90] sm:$0xe] %vm479_vm11, %v401_v49  ;;  %v405_v56 = vrot.slane %v403_v36, 4  ;;  %v358_v11 = vrot.slane %v6490_v27, 7  ;;  %v361_v48 = vrot.slane %v6491_v39, 7 }
  0x5f   : > { %v399_v44 = vsel %vm7208_vm12, %v397_v3, %v398_v47  ;;  %2365 = vrot.lane.b32.xlu1 %v1854_v37, %s7066_s4  ;;  %509 = vst.msk [vmem:[#allocation2 + $0x8c] sm:$0x1] %vm186_vm2, %v400_v54  ;;  %v357_v59 = vrot.slane %v356_v55, 4  ;;  %v363_v60 = vrot.slane %v6492_v0, 7  ;;  %v6509_v61 = vpack.c.bf16 %v242_v50, %v242_v50 }
  0x60   : > { %2363 = vrot.lane.b32.xlu0 %v1844_v28, %s7066_s4  ;;  %508 = vst.msk [vmem:[#allocation2 + $0x88] sm:$0xf] %vm170_vm0, %v399_v44  ;;  %v404_v58 = vsel %vm7208_vm12, %v402_v32, %v403_v36  ;;  %v1863_v62 = vrot.slane %v1862_v42, 4  ;;  %v360_v4 = vrot.slane %v358_v11, 4  ;;  %v362_v6 = vrot.slane %v361_v48, 4 }
  0x61   : > { %483 = vst.msk [vmem:[#allocation2 + $0x24] sm:$0xe] %vm479_vm11, %v356_v55  ;;  %486 = vst.msk [vmem:[#allocation2 + $0x30] sm:$0xe] %vm479_vm11, %v361_v48  ;;  %v6511_v7 = vpack.c.bf16 %v244_v53, %v244_v53  ;;  %v2659_v8 = vrot.slane %v7436_v12, 6  ;;  %v359_v10 = vsel %vm7208_vm12, %v357_v59, %v358_v11  ;;  %v365_v13 = vrot.slane %v363_v60, 4 }
  0x62   : > { %511 = vst.msk [vmem:[#allocation2 + $0x94] sm:$0xf] %vm170_vm0, %v404_v58  ;;  %v7453_v16 = vrot.slane %v6509_v61, 7  ;;  %v2654_v17 = vrot.slane %v2652_v43, 4  ;;  %v6227_v18 = vrot.slane %v2523_v57, 10  ;;  %v364_v20 = vsel %vm7208_vm12, %v362_v6, %v363_v60 }
  0x63   : > { %512 = vst.msk [vmem:[#allocation2 + $0x98] sm:$0x1] %vm186_vm2, %v405_v56  ;;  %485 = vst.msk [vmem:[#allocation2 + $0x2c] sm:$0x1] %vm186_vm2, %v360_v4  ;;  %v7461_v21 = vrot.slane %v6511_v7, 7  ;;  %2825 = vrot.lane.b32.xlu1 %v2719_v40, %s7067_s5  ;;  %v2662_v52 = vrot.slane %v2528_v63, 6  ;;  %v1882_v25 = vsel %vm7283_vm1, %v1873_v51, %v1881_v5  ;;  %v1872_v9 = vsel %vm7283_vm1, %v1863_v62, %v7410_v38 }
  0x64   : > { %484 = vst.msk [vmem:[#allocation2 + $0x28] sm:$0xf] %vm170_vm0, %v359_v10  ;;  %2823 = vrot.lane.b32.xlu0 %v2716_v2, %s7067_s5  ;;  %v641_v23 = vld [vmem:[#allocation2 + $0x84] sm:$0xf]  ;;  %487 = vst.msk [vmem:[#allocation2 + $0x34] sm:$0xf] %vm170_vm0, %v364_v20  ;;  %v2656_v37 = vsel %vm7366_vm5, %v2654_v17, %v2655_v45  ;;  %v2653_v38 = vsel %vm7366_vm5, %v6227_v18, %v2652_v43 }
  0x65   : > { %488 = vst.msk [vmem:[#allocation2 + $0x38] sm:$0x1] %vm186_vm2, %v365_v13  ;;  %v936_v24 = vshrl.u32 %v641_v23, 16  ;;  %v939_v26 = vshll.u32 %v641_v23, 16  ;;  %v644_v27 = vld [vmem:[#allocation2 + $0x90] sm:$0xf] }
  0x66   : > { %513 = vst.msk [vmem:[#allocation2 + $0x9c] sm:$0xe] %vm479_vm11, %v7453_v16  ;;  %516 = vst.msk [vmem:[#allocation2 + $0xa8] sm:$0xe] %vm479_vm11, %v7461_v21  ;;  %v2661_v29 = vrot.slane %v2659_v8, 4  ;;  %v6228_v30 = vrot.slane %v2526_v19, 10 }
  0x67   : > { %v960_v31 = vshrl.u32 %v644_v27, 16  ;;  %v963_v33 = vshll.u32 %v644_v27, 16  ;;  %v642_v39 = vld [vmem:[#allocation2 + $0x88] sm:$0xf]  ;;  %v643_v0 = vld [vmem:[#allocation2 + $0x8c] sm:$0x1]  ;;  %2369 = vrot.lane.b32.xlu1 %v1882_v25, %s7066_s4 }
  0x68   : > { %v938_v40 = vrot.slane %v936_v24, 4  ;;  %v941_v2 = vrot.slane %v939_v26, 5  ;;  %2367 = vrot.lane.b32.xlu0 %v1872_v9, %s7066_s4  ;;  %v945_v22 = vshll.u32 %v642_v39, 16  ;;  %v949_v28 = vshrl.u32 %v642_v39, 16  ;;  %v1346_v44 = vld [vmem:[#allocation2 + $0x88] sm:$0xf] }
  0x69   : > { %v955_v47 = vshll.u32 %v643_v0, 16  ;;  %v645_v35 = vld [vmem:[#allocation2 + $0x94] sm:$0xf]  ;;  %v962_v49 = vrot.slane %v960_v31, 4  ;;  %v965_v3 = vrot.slane %v963_v33, 5  ;;  %v2663_v32 = vsel %vm7366_vm5, %v2661_v29, %v2662_v52 }
  0x6a   : > { %v942_v5 = vor.u32 %v941_v2, %v938_v40  ;;  %v646_v45 = vld [vmem:[#allocation2 + $0x98] sm:$0x1]  ;;  %v969_v42 = vshll.u32 %v645_v35, 16  ;;  %v973_v14 = vshrl.u32 %v645_v35, 16  ;;  %v947_v36 = vrot.slane %v945_v22, 5 }
  0x6b   : > { %v951_v43 = vrot.slane %v949_v28, 4  ;;  %v979_v54 = vshll.u32 %v646_v45, 16  ;;  %2789 = vrot.lane.b32.xlu1 %v2656_v37, %s7067_s5  ;;  %v2660_v55 = vsel %vm7366_vm5, %v6228_v30, %v2659_v8  ;;  %v618_v56 = vld [vmem:[#allocation2 + $0x28] sm:$0xf]  ;;  %v957_v11 = vrot.slane %v955_v47, 5 }
  0x6c   : > { %v7486_v50 = vrot.slane %v969_v42, 5  ;;  %v975_v51 = vrot.slane %v973_v14, 4  ;;  %2787 = vrot.lane.b32.xlu0 %v2653_v38, %s7067_s5  ;;  %v943_v12 = vrot.slane %v942_v5, 4  ;;  %v966_v57 = vor.u32 %v965_v3, %v962_v49  ;;  %v617_v59 = vld [vmem:[#allocation2 + $0x24] sm:$0xf] }
  0x6d   : > { %v952_v53 = vor.u32 %v951_v43, %v947_v36  ;;  %v753_v58 = vshll.u32 %v618_v56, 16  ;;  %v1345_v61 = vld [vmem:[#allocation2 + $0x84] sm:$0xe]  ;;  %v757_v62 = vshrl.u32 %v618_v56, 16  ;;  %v981_v63 = vrot.slane %v979_v54, 5 }
  0x6e   : > { %v976_v48 = vor.u32 %v975_v51, %v7486_v50  ;;  %v1347_v4 = vld [vmem:[#allocation2 + $0x8c] sm:$0x1]  ;;  %v1514_v6 = vrot.slane %v1346_v44, 5  ;;  %v1769_v7 = vld [vmem:[#allocation2 + $0x84] sm:$0xe]  ;;  %v948_v8 = vsel %vm7216_vm13, %v943_v12, %v947_v36  ;;  %v744_v17 = vshrl.u32 %v617_v59, 16 }
  0x6f   : > { %v953_v60 = vrot.slane %v952_v53, 4  ;;  %2793 = vrot.lane.b32.xlu1 %v2663_v32, %s7067_s5  ;;  %v7499_v10 = vrot.slane %v753_v58, 5  ;;  %v759_v13 = vrot.slane %v757_v62, 4  ;;  %v1770_v18 = vld [vmem:[#allocation2 + $0x88] sm:$0xf]  ;;  %v967_v52 = vrot.slane %v966_v57, 4 }
  0x70   : > { %2791 = vrot.lane.b32.xlu0 %v2660_v55, %s7067_s5  ;;  %v977_v20 = vrot.slane %v976_v48, 4  ;;  %v619_v23 = vld [vmem:[#allocation2 + $0x2c] sm:$0x1]  ;;  %v747_v25 = vshll.u32 %v617_v59, 16  ;;  %v6217_v9 = vrot.slane %v1345_v61, 9  ;;  %v746_v24 = vrot.slane %v744_v17, 4 }
  0x71   : > { %v958_v19 = vsel %vm7216_vm13, %v953_v60, %v957_v11  ;;  %v2108_v26 = vshrl.u32 %v1769_v7, 16  ;;  %v1771_v29 = vld [vmem:[#allocation2 + $0x8c] sm:$0x3]  ;;  %v2117_v30 = vshrl.u32 %v1770_v18, 16  ;;  %v2120_v31 = vshll.u32 %v1770_v18, 16 }
  0x72   : > { %v749_v27 = vrot.slane %v747_v25, 5  ;;  %v2111_v33 = vshll.u32 %v1769_v7, 16  ;;  %v1517_v37 = vrot.slane %v1347_v4, 5  ;;  %v760_v38 = vor.u32 %v759_v13, %v7499_v10  ;;  %v1349_v28 = vld [vmem:[#allocation2 + $0x94] sm:$0xf] }
  0x73   : > { %1197 = vrot.lane.b32.xlu1 %v958_v19, %s7065_s30  ;;  %v763_v39 = vshll.u32 %v619_v23, 16  ;;  %v982_v0 = vsel %vm7216_vm13, %v977_v20, %v981_v63  ;;  %v972_v40 = vsel %vm7216_vm13, %v967_v52, %v7486_v50  ;;  %v1516_v2 = vrot.slane %v1514_v6, 4  ;;  %v621_v5 = vld [vmem:[#allocation2 + $0x34] sm:$0xf]  ;;  %v620_v45 = vld [vmem:[#allocation2 + $0x30] sm:$0xf] }
  0x74   : > { %1195 = vrot.lane.b32.xlu0 %v948_v8, %s7065_s30  ;;  %v750_v22 = vor.u32 %v749_v27, %v746_v24  ;;  %v1515_v47 = vsel %vm7186_vm7, %v6217_v9, %v1514_v6  ;;  %v2127_v35 = vshrl.u32 %v1771_v29, 16  ;;  %v2130_v49 = vshll.u32 %v1771_v29, 16  ;;  %v1350_v42 = vld [vmem:[#allocation2 + $0x98] sm:$0x1]  ;;  %v1348_v53 = vld [vmem:[#allocation2 + $0x90] sm:$0xe] }
  0x75   : > { %v2119_v14 = vrot.slane %v2117_v30, 5  ;;  %v2122_v3 = vrot.slane %v2120_v31, 6  ;;  %v2110_v36 = vrot.slane %v2108_v26, 5  ;;  %v2113_v43 = vrot.slane %v2111_v33, 6  ;;  %v622_v6 = vld [vmem:[#allocation2 + $0x38] sm:$0x1] }
  0x76   : > { %v761_v50 = vrot.slane %v760_v38, 4  ;;  %v765_v51 = vrot.slane %v763_v39, 5  ;;  %v751_v54 = vrot.slane %v750_v22, 4  ;;  %v1521_v32 = vrot.slane %v1349_v28, 5  ;;  %v1773_v18 = vld [vmem:[#allocation2 + $0x94] sm:$0xf] }
  0x77   : > { %1201 = vrot.lane.b32.xlu1 %v982_v0, %s7065_s30  ;;  %v1518_v55 = vsel %vm7186_vm7, %v1516_v2, %v1517_v37  ;;  %v777_v12 = vshll.u32 %v621_v5, 16  ;;  %v781_v44 = vshrl.u32 %v621_v5, 16  ;;  %v768_v56 = vshrl.u32 %v620_v45, 16  ;;  %v1772_v19 = vld [vmem:[#allocation2 + $0x90] sm:$0xe]  ;;  %v243_v22 = vld [vmem:[%s7193_s28 + $0xb8] sm:$0xff] }
  0x78   : > { %1199 = vrot.lane.b32.xlu0 %v972_v40, %s7065_s30  ;;  %v1524_v11 = vrot.slane %v1350_v42, 5  ;;  %v771_v48 = vshll.u32 %v620_v45, 16  ;;  %v2123_v57 = vor.u32 %v2122_v3, %v2119_v14  ;;  %v2129_v58 = vrot.slane %v2127_v35, 5  ;;  %v1322_v24 = vld [vmem:[#allocation2 + $0x28] sm:$0xf] }
  0x79   : > { %v2132_v59 = vrot.slane %v2130_v49, 6  ;;  %v2114_v60 = vor.u32 %v2113_v43, %v2110_v36  ;;  %v766_v61 = vsel %vm7216_vm13, %v761_v50, %v765_v51  ;;  %v756_v62 = vsel %vm7216_vm13, %v751_v54, %v7499_v10  ;;  %v1774_v31 = vld [vmem:[#allocation2 + $0x98] sm:$0x3]  ;;  %v1323_v40 = vld [vmem:[#allocation2 + $0x2c] sm:$0x1] }
  0x7a   : > { %v1523_v63 = vrot.slane %v1521_v32, 4  ;;  %v6218_v4 = vrot.slane %v1348_v53, 9  ;;  %v7524_v7 = vrot.slane %v777_v12, 5  ;;  %v783_v8 = vrot.slane %v781_v44, 4  ;;  %v1321_v28 = vld [vmem:[#allocation2 + $0x24] sm:$0xe] }
  0x7b   : > { %1621 = vrot.lane.b32.xlu1 %v1518_v55, %s7064_s29  ;;  %v770_v13 = vrot.slane %v768_v56, 4  ;;  %v773_v17 = vrot.slane %v771_v48, 5  ;;  %v2125_v20 = vrot.slane %v2123_v57, 4  ;;  %v2133_v52 = vor.u32 %v2132_v59, %v2129_v58  ;;  %v2554_v53 = vld [vmem:[#allocation2 + $0x88] sm:$0xf]  ;;  %v7553_v59 = vld [vmem:[%s7193_s28 + $0x30] sm:$0xff] }
  0x7c   : > { %1619 = vrot.lane.b32.xlu0 %v1515_v47, %s7064_s29  ;;  %v2115_v23 = vrot.slane %v2114_v60, 4  ;;  %v787_v25 = vshll.u32 %v622_v6, 16  ;;  %v1525_v10 = vsel %vm7186_vm7, %v1523_v63, %v1524_v11  ;;  %v1522_v9 = vsel %vm7186_vm7, %v6218_v4, %v1521_v32  ;;  %v7545_v12 = vld [vmem:[%s7193_s28 + $0xc8] sm:$0xff]  ;;  %v1745_v58 = vld [vmem:[#allocation2 + $0x24] sm:$0xe] }
  0x7d   : > { %v2145_v26 = vshrl.u32 %v1773_v18, 16  ;;  %v2148_v27 = vshll.u32 %v1773_v18, 16  ;;  %v784_v29 = vor.u32 %v783_v8, %v7524_v7  ;;  %v774_v30 = vor.u32 %v773_v17, %v770_v13  ;;  %v1746_v48 = vld [vmem:[#allocation2 + $0x28] sm:$0xf]  ;;  %v7557_v63 = vld [vmem:[#allocation2 + $0x34] sm:$0xf] }
  0x7e   : > { %v2136_v33 = vshrl.u32 %v1772_v19, 16  ;;  %v2139_v37 = vshll.u32 %v1772_v19, 16  ;;  %v2134_v38 = vsel %vm7283_vm1, %v2125_v20, %v2133_v52  ;;  %v2124_v39 = vsel %vm7283_vm1, %v2115_v23, %v2123_v57  ;;  %v2555_v57 = vld [vmem:[#allocation2 + $0x8c] sm:$0x3]  ;;  %v7568_v17 = vld [vmem:[#allocation2 + $0x38] sm:$0x1] }
  0x7f   : > { %1165 = vrot.lane.b32.xlu1 %v766_v61, %s7065_s30  ;;  %v789_v0 = vrot.slane %v787_v25, 5  ;;  %v1458_v2 = vrot.slane %v1322_v24, 5  ;;  %v2147_v47 = vrot.slane %v2145_v26, 5  ;;  %v2150_v35 = vrot.slane %v2148_v27, 6  ;;  %v1747_v18 = vld [vmem:[#allocation2 + $0x2c] sm:$0x3] }
  0x80   : > { %1163 = vrot.lane.b32.xlu0 %v756_v62, %s7065_s30  ;;  %v2155_v49 = vshrl.u32 %v1774_v31, 16  ;;  %v2158_v5 = vshll.u32 %v1774_v31, 16  ;;  %v785_v45 = vrot.slane %v784_v29, 4  ;;  %v775_v42 = vrot.slane %v774_v30, 4  ;;  %v2553_v62 = vld [vmem:[#allocation2 + $0x84] sm:$0xc] }
  0x81   : > { %v2138_v14 = vrot.slane %v2136_v33, 5  ;;  %v2141_v3 = vrot.slane %v2139_v37, 6  ;;  %v1461_v36 = vrot.slane %v1323_v40, 5  ;;  %v6209_v43 = vrot.slane %v1321_v28, 9  ;;  %v1324_v52 = vld [vmem:[#allocation2 + $0x30] sm:$0xe] }
  0x82   : > { %v6510_v50 = vpack.c.bf16 %v243_v22, %v243_v22  ;;  %v1460_v51 = vrot.slane %v1458_v2, 4  ;;  %v7542_v54 = vor.u32 %v2150_v35, %v2147_v47  ;;  %v2157_v32 = vrot.slane %v2155_v49, 5  ;;  %v7573_v27 = vld [vmem:[%s7193_s28 + $0x38] sm:$0xff] }
  0x83   : > { %1625 = vrot.lane.b32.xlu1 %v1525_v10, %s7064_s29  ;;  %v2160_v55 = vrot.slane %v2158_v5, 6  ;;  %v790_v44 = vsel %vm7216_vm13, %v785_v45, %v789_v0  ;;  %v780_v56 = vsel %vm7216_vm13, %v775_v42, %v7524_v7  ;;  %v2142_v11 = vor.u32 %v2141_v3, %v2138_v14  ;;  %v7585_v49 = vld [vmem:[#allocation2 + $0x38] sm:$0x3]  ;;  %v551_v5 = vld [vmem:[#allocation2 + $0x88] sm:$0xf] }
  0x84   : > { %1623 = vrot.lane.b32.xlu0 %v1522_v9, %s7064_s29  ;;  %v1459_v60 = vsel %vm7186_vm7, %v6209_v43, %v1458_v2  ;;  %v2722_v61 = vrot.slane %v2554_v53, 6  ;;  %v7559_v4 = vrot.slane %v6510_v50, 7  ;;  %v6512_v6 = vpack.c.bf16 %v7545_v12, %v7545_v12  ;;  %v1748_v2 = vld [vmem:[#allocation2 + $0x30] sm:$0xe]  ;;  %591 = vst.msk [vmem:[#allocation3 + $0x5c] sm:$0xf] %vm170_vm0, %v551_v5 }
  0x85   : > { %v1462_v7 = vsel %vm7186_vm7, %v1460_v51, %v1461_v36  ;;  %v2153_v8 = vrot.slane %v7542_v54, 4  ;;  %v2161_v13 = vor.u32 %v2160_v55, %v2157_v32  ;;  %v1893_v19 = vshrl.u32 %v1746_v48, 16  ;;  %v550_v36 = vld [vmem:[#allocation2 + $0x84] sm:$0xf]  ;;  %v553_v43 = vld [vmem:[#allocation2 + $0x94] sm:$0xf] }
  0x86   : > { %v2143_v20 = vrot.slane %v2142_v11, 4  ;;  %v1896_v23 = vshll.u32 %v1746_v48, 16  ;;  %v1884_v25 = vshrl.u32 %v1745_v58, 16  ;;  %v1887_v10 = vshll.u32 %v1745_v58, 16  ;;  %590 = vst.msk [vmem:[#allocation3 + $0x58] sm:$0xf] %vm170_vm0, %v550_v36 }
  0x87   : > { %2405 = vrot.lane.b32.xlu1 %v2134_v38, %s7066_s4  ;;  %v6237_v9 = vrot.slane %v2553_v62, 10  ;;  %v1465_v24 = vrot.slane %v7557_v63, 5  ;;  %v407_v26 = vrot.slane %v7453_v16, 4  ;;  %v6493_v29 = vpack.c.bf16 %v7553_v59, %v7553_v59  ;;  %v1749_v38 = vld [vmem:[#allocation2 + $0x34] sm:$0xf] }
  0x88   : > { %2403 = vrot.lane.b32.xlu0 %v2124_v39, %s7066_s4  ;;  %v2724_v30 = vrot.slane %v2722_v61, 4  ;;  %v2725_v31 = vrot.slane %v2555_v57, 6  ;;  %v1468_v33 = vrot.slane %v7568_v17, 5  ;;  %v1903_v37 = vshrl.u32 %v1747_v18, 16  ;;  %593 = vst.msk [vmem:[#allocation3 + $0x64] sm:$0xf] %vm170_vm0, %v553_v43 }
  0x89   : > { %v2162_v39 = vsel %vm7283_vm1, %v2153_v8, %v2161_v13  ;;  %v6210_v0 = vrot.slane %v1324_v52, 9  ;;  %v1895_v16 = vrot.slane %v1893_v19, 5  ;;  %v1906_v40 = vshll.u32 %v1747_v18, 16  ;;  %v552_v55 = vld [vmem:[#allocation2 + $0x90] sm:$0xf] }
  0x8a   : > { %v2152_v22 = vsel %vm7283_vm1, %v2143_v20, %v7542_v54  ;;  %v1898_v28 = vrot.slane %v1896_v23, 6  ;;  %v1886_v47 = vrot.slane %v1884_v25, 5  ;;  %v1889_v35 = vrot.slane %v1887_v10, 6  ;;  %v535_v53 = vld [vmem:[#allocation2 + $0x28] sm:$0xf] }
  0x8b   : > { %1169 = vrot.lane.b32.xlu1 %v790_v44, %s7065_s30  ;;  %v2723_v45 = vsel %vm7366_vm5, %v6237_v9, %v2722_v61  ;;  %v1467_v42 = vrot.slane %v1465_v24, 4  ;;  %v1921_v14 = vshrl.u32 %v1749_v38, 16  ;;  %v6494_v3 = vpack.c.bf16 %v7573_v27, %v7573_v27  ;;  %592 = vst.msk [vmem:[#allocation3 + $0x60] sm:$0xf] %vm170_vm0, %v552_v55  ;;  %575 = vst.msk [vmem:[#allocation3 + $0x1c] sm:$0xf] %vm170_vm0, %v535_v53 }
  0x8c   : > { %1167 = vrot.lane.b32.xlu0 %v780_v56, %s7065_s30  ;;  %v2726_v50 = vsel %vm7366_vm5, %v2724_v30, %v2725_v31  ;;  %v7594_v51 = vrot.slane %v1903_v37, 5  ;;  %v1924_v54 = vshll.u32 %v1749_v38, 16  ;;  %v409_v32 = vsel %vm7208_vm12, %v407_v26, %v7559_v4  ;;  %v534_v57 = vld [vmem:[#allocation2 + $0x24] sm:$0xf]  ;;  %v7609_v61 = vld [vmem:[#allocation2 + $0x94] sm:$0xf] }
  0x8d   : > { %v1908_v44 = vrot.slane %v1906_v40, 6  ;;  %v1912_v56 = vshrl.u32 %v1748_v2, 16  ;;  %v1915_v11 = vshll.u32 %v1748_v2, 16  ;;  %v410_v48 = vrot.slane %v7559_v4, 4  ;;  %514 = vst.msk [vmem:[#allocation2 + $0xa0] sm:$0xf] %vm170_vm0, %v409_v32 }
  0x8e   : > { %v7607_v58 = vor.u32 %v1898_v28, %v1895_v16  ;;  %v412_v62 = vrot.slane %v7461_v21, 4  ;;  %v413_v63 = vrot.slane %v6512_v6, 7  ;;  %574 = vst.msk [vmem:[#allocation3 + $0x18] sm:$0xf] %vm170_vm0, %v534_v57  ;;  %v537_v4 = vld [vmem:[#allocation2 + $0x34] sm:$0xf]  ;;  %v1466_v8 = vsel %vm7186_vm7, %v6210_v0, %v1465_v24 }
  0x8f   : > { %1589 = vrot.lane.b32.xlu1 %v1462_v7, %s7064_s29  ;;  %v1469_v7 = vsel %vm7186_vm7, %v1467_v42, %v1468_v33  ;;  %v1923_v13 = vrot.slane %v1921_v14, 5  ;;  %v1931_v17 = vshrl.u32 %v7585_v49, 16  ;;  %515 = vst.msk [vmem:[#allocation2 + $0xa4] sm:$0x1] %vm186_vm2, %v410_v48  ;;  %v536_v21 = vld [vmem:[#allocation2 + $0x30] sm:$0xf]  ;;  %v1909_v24 = vor.u32 %v1908_v44, %v7594_v51 }
  0x90   : > { %1587 = vrot.lane.b32.xlu0 %v1459_v60, %s7064_s29  ;;  %v1890_v60 = vor.u32 %v1889_v35, %v1886_v47  ;;  %577 = vst.msk [vmem:[#allocation3 + $0x24] sm:$0xf] %vm170_vm0, %v537_v4  ;;  %v1926_v18 = vrot.slane %v1924_v54, 6  ;;  %v1934_v12 = vshll.u32 %v7585_v49, 16  ;;  %v414_v6 = vsel %vm7208_vm12, %v412_v62, %v413_v63  ;;  %576 = vst.msk [vmem:[#allocation3 + $0x20] sm:$0xf] %vm170_vm0, %v536_v21 }
  0x91   : > { %v415_v19 = vrot.slane %v413_v63, 4  ;;  %v2558_v20 = vld [vmem:[#allocation2 + $0x98] sm:$0x3]  ;;  %v2729_v52 = vrot.slane %v7609_v61, 6  ;;  %v1914_v23 = vrot.slane %v1912_v56, 5  ;;  %v1917_v25 = vrot.slane %v1915_v11, 6 }
  0x92   : > { %517 = vst.msk [vmem:[#allocation2 + $0xac] sm:$0xf] %vm170_vm0, %v414_v6  ;;  %v366_v10 = vrot.slane %v6493_v29, 7  ;;  %v1901_v9 = vrot.slane %v7607_v58, 4  ;;  %v1891_v26 = vrot.slane %v1890_v60, 4  ;;  %v368_v30 = vrot.slane %v6494_v3, 7 }
  0x93   : > { %2409 = vrot.lane.b32.xlu1 %v2162_v39, %s7066_s4  ;;  %v2556_v27 = vld [vmem:[#allocation2 + $0x90] sm:$0xc]  ;;  %518 = vst.msk [vmem:[#allocation2 + $0xb0] sm:$0x1] %vm186_vm2, %v415_v19  ;;  %vm1271_vm6 = vcmask 60448   ;;  %v7638_v33 = vor.u32 %v1926_v18, %v1923_v13  ;;  %v1933_v37 = vrot.slane %v1931_v17, 5  ;;  %v1918_v16 = vor.u32 %v1917_v25, %v1914_v23 }
  0x94   : > { %2407 = vrot.lane.b32.xlu0 %v2152_v22, %s7066_s4  ;;  %v367_v31 = vrot.slane %v366_v10, 4  ;;  %489 = vst.msk [vmem:[#allocation2 + $0x3c] sm:$0xe] %vm479_vm11, %v366_v10  ;;  %v1936_v38 = vrot.slane %v1934_v12, 6  ;;  %v647_v39 = vld [vmem:[#allocation2 + $0x9c] sm:$0xf]  ;;  %v1910_v2 = vsel %vm7283_vm1, %v1901_v9, %v1909_v24  ;;  %v1900_v22 = vsel %vm7283_vm1, %v1891_v26, %v7607_v58 }
  0x95   : > { %v370_v59 = vrot.slane %v368_v30, 4  ;;  %v2732_v29 = vrot.slane %v2558_v20, 6  ;;  %v6238_v0 = vrot.slane %v2556_v27, 10  ;;  %v7642_v40 = vld [vmem:[#allocation2 + $0x28] sm:$0xf]  ;;  %vm1695_vm8 = vcmask 93248  }
  0x96   : > { %v2731_v28 = vrot.slane %v2729_v52, 4  ;;  %v7649_v47 = vld [vmem:[#allocation2 + $0x34] sm:$0xf]  ;;  %v650_v35 = vld [vmem:[#allocation2 + $0xa8] sm:$0xf]  ;;  %v369_v49 = vsel %vm7208_vm12, %v367_v31, %v368_v30  ;;  %v984_v14 = vshrl.u32 %v647_v39, 16 }
  0x97   : > { %2829 = vrot.lane.b32.xlu1 %v2726_v50, %s7067_s5  ;;  %491 = vst.msk [vmem:[#allocation2 + $0x44] sm:$0x1] %vm186_vm2, %v370_v59  ;;  %v648_v42 = vld [vmem:[#allocation2 + $0xa0] sm:$0xf]  ;;  %v987_v3 = vshll.u32 %v647_v39, 16  ;;  %v1929_v43 = vrot.slane %v7638_v33, 4  ;;  %v1937_v50 = vor.u32 %v1936_v38, %v1933_v37  ;;  %v2730_v57 = vsel %vm7366_vm5, %v6238_v0, %v2729_v52 }
  0x98   : > { %2827 = vrot.lane.b32.xlu0 %v2723_v45, %s7067_s5  ;;  %v2531_v45 = vld [vmem:[#allocation2 + $0x2c] sm:$0x3]  ;;  %490 = vst.msk [vmem:[#allocation2 + $0x40] sm:$0xf] %vm170_vm0, %v369_v49  ;;  %v2666_v51 = vrot.slane %v7642_v40, 6  ;;  %v1919_v55 = vrot.slane %v1918_v16, 4  ;;  %v2733_v48 = vsel %vm7366_vm5, %v2731_v28, %v2732_v29 }
  0x99   : > { %v2529_v54 = vld [vmem:[#allocation2 + $0x24] sm:$0xc]  ;;  %v2534_v32 = vld [vmem:[#allocation2 + $0x38] sm:$0x3]  ;;  %v2673_v53 = vrot.slane %v7649_v47, 6  ;;  %v1008_v56 = vshrl.u32 %v650_v35, 16  ;;  %v1938_v13 = vsel %vm7283_vm1, %v1929_v43, %v1937_v50 }
  0x9a   : > { %v2532_v44 = vld [vmem:[#allocation2 + $0x30] sm:$0xc]  ;;  %v1011_v11 = vshll.u32 %v650_v35, 16  ;;  %v993_v58 = vshll.u32 %v648_v42, 16  ;;  %v997_v60 = vshrl.u32 %v648_v42, 16  ;;  %v2669_v61 = vrot.slane %v2531_v45, 6 }
  0x9b   : > { %1593 = vrot.lane.b32.xlu1 %v1469_v7, %s7064_s29  ;;  %v6229_v62 = vrot.slane %v2529_v54, 10  ;;  %v986_v63 = vrot.slane %v984_v14, 4  ;;  %v989_v4 = vrot.slane %v987_v3, 5  ;;  %v651_v7 = vld [vmem:[#allocation2 + $0xac] sm:$0xf]  ;;  %v2668_v17 = vrot.slane %v2666_v51, 4 }
  0x9c   : > { %1591 = vrot.lane.b32.xlu0 %v1466_v8, %s7064_s29  ;;  %v2676_v21 = vrot.slane %v2534_v32, 6  ;;  %v6230_v18 = vrot.slane %v2532_v44, 10  ;;  %v228_v12 = vld [vmem:[%s7193_s28 + $0x40] sm:$0xff]  ;;  %v1928_v6 = vsel %vm7283_vm1, %v1919_v55, %v7638_v33  ;;  %v2675_v19 = vrot.slane %v2673_v53, 4  ;;  %v229_v25 = vld [vmem:[%s7193_s28 + $0x48] sm:$0xff] }
  0x9d   : > { %v1010_v20 = vrot.slane %v1008_v56, 4  ;;  %v1013_v52 = vrot.slane %v1011_v11, 5  ;;  %v7673_v23 = vld [vmem:[#allocation2 + $0xa0] sm:$0xf]  ;;  %v649_v9 = vld [vmem:[#allocation2 + $0xa4] sm:$0x1]  ;;  %v990_v31 = vor.u32 %v989_v4, %v986_v63  ;;  %v2670_v33 = vsel %vm7366_vm5, %v2668_v17, %v2669_v61 }
  0x9e   : > { %v1582_v5 = vpop.permute.xlu1 %1581  ;;  %v1580_v36 = vpop.permute.xlu0 %1579  ;;  %v7676_v24 = vrot.slane %v993_v58, 5  ;;  %v999_v26 = vrot.slane %v997_v60, 4  ;;  %v1017_v27 = vshll.u32 %v651_v7, 16  ;;  %v1021_v30 = vshrl.u32 %v651_v7, 16  ;;  %v7684_v38 = vld [vmem:[#allocation2 + $0x9c] sm:$0xe] }
  0x9f   : > { %2373 = vrot.lane.b32.xlu1 %v1910_v2, %s7066_s4  ;;  %v2667_v37 = vsel %vm7366_vm5, %v6229_v62, %v2666_v51  ;;  %v623_v39 = vld [vmem:[#allocation2 + $0x3c] sm:$0xf]  ;;  %v6495_v59 = vpack.c.bf16 %v228_v12, %v228_v12  ;;  %v6496_v29 = vpack.c.bf16 %v229_v25, %v229_v25  ;;  %v2674_v0 = vsel %vm7366_vm5, %v6230_v18, %v2673_v53  ;;  %v652_v35 = vld [vmem:[#allocation2 + $0xb0] sm:$0x1]  ;;  %v7708_v56 = vld [vmem:[#allocation2 + $0xa0] sm:$0xf] }
  0xa0   : > { %2371 = vrot.lane.b32.xlu0 %v1900_v22, %s7066_s4  ;;  %v1003_v16 = vshll.u32 %v649_v9, 16  ;;  %v1014_v40 = vor.u32 %v1013_v52, %v1010_v20  ;;  %v1528_v2 = vrot.slane %v7673_v23, 5  ;;  %v624_v22 = vld [vmem:[#allocation2 + $0x40] sm:$0xf]  ;;  %v2677_v28 = vsel %vm7366_vm5, %v2675_v19, %v2676_v21  ;;  %v7711_v58 = vld [vmem:[#allocation2 + $0xa8] sm:$0xe] }
  0xa1   : > { %v1000_v47 = vor.u32 %v999_v26, %v7676_v24  ;;  %v7695_v49 = vrot.slane %v1017_v27, 5  ;;  %v7697_v45 = vrot.slane %v990_v31, 4  ;;  %v6219_v42 = vrot.slane %v7684_v38, 9  ;;  %v625_v63 = vld [vmem:[#allocation2 + $0x44] sm:$0x1] }
  0xa2   : > { %v1158_v8 = vpop.permute.xlu1 %1157  ;;  %v792_v14 = vshrl.u32 %v623_v39, 16  ;;  %v795_v3 = vshll.u32 %v623_v39, 16  ;;  %v805_v43 = vshrl.u32 %v624_v22, 16  ;;  %v371_v50 = vrot.slane %v6495_v59, 7  ;;  %v555_v17 = vld [vmem:[#allocation2 + $0xa0] sm:$0xf] }
  0xa3   : > { %2833 = vrot.lane.b32.xlu1 %v2733_v48, %s7067_s5  ;;  %1275 = vst.msk [vmem:[#allocation3 + $0xc] sm:$0xf] %vm1271_vm6, %v1158_v8  ;;  %v1156_v10 = vpop.permute.xlu0 %1155  ;;  %v373_v51 = vrot.slane %v6496_v29, 7  ;;  %v1005_v32 = vrot.slane %v1003_v16, 5  ;;  %v1027_v55 = vshll.u32 %v652_v35, 16  ;;  %v7704_v53 = vrot.slane %v1014_v40, 4 }
  0xa4   : > { %2831 = vrot.lane.b32.xlu0 %v2730_v57, %s7067_s5  ;;  %1699 = vst.msk [vmem:[#allocation3 + $0xc] sm:$0xf] %vm1695_vm8, %v1582_v5  ;;  %v1023_v5 = vrot.slane %v1021_v30, 4  ;;  %v1530_v44 = vrot.slane %v1528_v2, 4  ;;  %v1001_v11 = vrot.slane %v1000_v47, 4  ;;  %v372_v60 = vrot.slane %v371_v50, 4 }
  0xa5   : > { %1274 = vst.msk [vmem:[#allocation3 + $0x8] sm:$0xf] %vm1271_vm6, %v1156_v10  ;;  %v1353_v57 = vld [vmem:[#allocation2 + $0xa4] sm:$0x1]  ;;  %v375_v61 = vrot.slane %v373_v51, 4  ;;  %v794_v4 = vrot.slane %v792_v14, 4  ;;  %v996_v52 = vsel %vm7216_vm13, %v7697_v45, %v7676_v24  ;;  %v1529_v16 = vsel %vm7186_vm7, %v6219_v42, %v1528_v2 }
  0xa6   : > { %1698 = vst.msk [vmem:[#allocation3 + $0x8] sm:$0xf] %vm1695_vm8, %v1580_v36  ;;  %v801_v36 = vshll.u32 %v624_v22, 16  ;;  %v1024_v48 = vor.u32 %v1023_v5, %v7695_v49  ;;  %v797_v7 = vrot.slane %v795_v3, 5  ;;  %v7716_v8 = vld [vmem:[#allocation2 + $0x9c] sm:$0xe]  ;;  %v374_v12 = vsel %vm7208_vm12, %v372_v60, %v373_v51 }
  0xa7   : > { %2377 = vrot.lane.b32.xlu1 %v1938_v13, %s7066_s4  ;;  %492 = vst.msk [vmem:[#allocation2 + $0x48] sm:$0xe] %vm479_vm11, %v371_v50  ;;  %v6911_v13 = vld [vmem:[%s9142_s1 + $0x10] ss:$0 sps:$4 sm:$0xff]   ;;  %v807_v18 = vrot.slane %v805_v43, 4  ;;  %v1531_v25 = vrot.slane %v1353_v57, 5  ;;  %v1006_v27 = vsel %vm7216_vm13, %v1001_v11, %v1005_v32  ;;  %v1020_v23 = vsel %vm7216_vm13, %v7704_v53, %v7695_v49 }
  0xa8   : > { %2375 = vrot.lane.b32.xlu0 %v1928_v6, %s7066_s4  ;;  %v7721_v21 = vrot.slane %v801_v36, 5  ;;  %494 = vst.msk [vmem:[#allocation2 + $0x50] sm:$0x1] %vm186_vm2, %v375_v61  ;;  %v554_v6 = vld [vmem:[#allocation2 + $0x9c] sm:$0xf]  ;;  %v2173_v10 = vshrl.u32 %v7708_v56, 16  ;;  %v798_v38 = vor.u32 %v797_v7, %v794_v4 }
  0xa9   : > { %595 = vst.msk [vmem:[#allocation3 + $0x6c] sm:$0xf] %vm170_vm0, %v555_v17  ;;  %v557_v19 = vld [vmem:[#allocation2 + $0xac] sm:$0xf]  ;;  %493 = vst.msk [vmem:[#allocation2 + $0x4c] sm:$0xf] %vm170_vm0, %v374_v12  ;;  %v1532_v2 = vsel %vm7186_vm7, %v1530_v44, %v1531_v25 }
  0xaa   : > { %594 = vst.msk [vmem:[#allocation3 + $0x68] sm:$0xf] %vm170_vm0, %v554_v6  ;;  %597 = vst.msk [vmem:[#allocation3 + $0x74] sm:$0xf] %vm170_vm0, %v557_v19  ;;  %v556_v9 = vld [vmem:[#allocation2 + $0xa8] sm:$0xf]  ;;  %v808_v40 = vor.u32 %v807_v18, %v7721_v21 }
  0xab   : > { %v7700_v54 = vpop.permute.xlu0 %1611  ;;  %2797 = vrot.lane.b32.xlu1 %v2670_v33, %s7067_s5  ;;  %v539_v26 = vld [vmem:[#allocation2 + $0x40] sm:$0xf]  ;;  %v1025_v30 = vrot.slane %v1024_v48, 4  ;;  %v1029_v31 = vrot.slane %v1027_v55, 5  ;;  %v811_v33 = vshll.u32 %v625_v63, 16  ;;  %vm2479_vm9 = vcmask 126048  }
  0xac   : > { %2795 = vrot.lane.b32.xlu0 %v2667_v37, %s7067_s5  ;;  %v7741_v37 = vld [vmem:[#allocation2 + $0xac] sm:$0xf]  ;;  %596 = vst.msk [vmem:[#allocation3 + $0x70] sm:$0xf] %vm170_vm0, %v556_v9  ;;  %579 = vst.msk [vmem:[#allocation3 + $0x2c] sm:$0xf] %vm170_vm0, %v539_v26 }
  0xad   : > { %v7714_v62 = vpop.permute.xlu1 %1613  ;;  %v6220_v39 = vrot.slane %v7711_v58, 9  ;;  %v1777_v59 = vld [vmem:[#allocation2 + $0xa4] sm:$0x3]  ;;  %v2176_v29 = vshll.u32 %v7708_v56, 16  ;;  %v2164_v22 = vshrl.u32 %v7716_v8, 16  ;;  %v1535_v35 = vrot.slane %v7741_v37, 5 }
  0xae   : > { %v1779_v5 = vld [vmem:[#allocation2 + $0xac] sm:$0xf]  ;;  %v3105_v45 = vrot.slane %v6911_v13, 2  ;;  %v1030_v14 = vsel %vm7216_vm13, %v1025_v30, %v1029_v31  ;;  %v7772_v3 = vrot.slane %v811_v33, 5  ;;  %v7774_v36 = vld [vmem:[#allocation2 + $0xb0] sm:$0x1] }
  0xaf   : > { %v7727_v20 = vpop.permute.xlu0 %1615  ;;  %2801 = vrot.lane.b32.xlu1 %v2677_v28, %s7067_s5  ;;  %v2167_v28 = vshll.u32 %v7716_v8, 16  ;;  %v6912_v42 = vld [vmem:[%s9142_s1 + $0x8] sm:$0xfc]   ;;  %v2175_v49 = vrot.slane %v2173_v10, 5  ;;  %v2183_v43 = vshrl.u32 %v1777_v59, 16  ;;  %v7778_v51 = vrot.slane %v798_v38, 4 }
  0xb0   : > { %2799 = vrot.lane.b32.xlu0 %v2674_v0, %s7067_s5  ;;  %v538_v0 = vld [vmem:[#allocation2 + $0x3c] sm:$0xf]  ;;  %v2178_v32 = vrot.slane %v2176_v29, 6  ;;  %v2186_v55 = vshll.u32 %v1777_v59, 16  ;;  %v626_v53 = vld [vmem:[#allocation2 + $0x48] sm:$0xf]  ;;  %6859 = vmatprep.subr.msk.bf16.mxu1 %vm2640_vm3, %v3105_v45 }
  0xb1   : > { %v7745_v24 = vpop.permute.xlu1 %1617  ;;  %578 = vst.msk [vmem:[#allocation3 + $0x28] sm:$0xf] %vm170_vm0, %v538_v0  ;;  %v3159_v44 = vsel %vm2640_vm3, %v3105_v45, 0  ;;  %6858 = vmatprep.subr.msk.bf16.mxu0 %vm2640_vm3, %v3105_v45  ;;  %v809_v56 = vrot.slane %v808_v40, 4  ;;  %v2166_v11 = vrot.slane %v2164_v22, 5  ;;  %v2169_v48 = vrot.slane %v2167_v28, 6 }
  0xb2   : > { %v627_v57 = vld [vmem:[#allocation2 + $0x4c] sm:$0xf]  ;;  %v2201_v60 = vshrl.u32 %v1779_v5, 16  ;;  %6856 = vmatpush3.bf16.msra.mxu1 %v3159_v44  ;;  %6675 = vmatpush3.bf16.msra.mxu0 %v3159_v44  ;;  %v1537_v61 = vrot.slane %v1535_v35, 4  ;;  %v1538_v63 = vrot.slane %v7774_v36, 5  ;;  %v2204_v4 = vshll.u32 %v1779_v5, 16 }
  0xb3   : > { %v1188_v47 = vpop.permute.xlu0 %1187  ;;  %1205 = vrot.lane.b32.xlu1 %v1006_v27, %s7065_s30  ;;  %vm3103_vm14 = vcmask 1045504   ;;  %v825_v7 = vshll.u32 %v627_v57, 16  ;;  %v829_v8 = vshrl.u32 %v627_v57, 16  ;;  %v816_v13 = vshrl.u32 %v626_v53, 16  ;;  %v1780_v18 = vld [vmem:[#allocation2 + $0xb0] sm:$0x3] }
  0xb4   : > { %1203 = vrot.lane.b32.xlu0 %v996_v52, %s7065_s30  ;;  %1290 = vst.msk [vmem:[#allocation3 + $0x48] sm:$0xf] %vm1271_vm6, %v1188_v47  ;;  %v819_v17 = vshll.u32 %v626_v53, 16  ;;  %v804_v6 = vsel %vm7216_vm13, %v7778_v51, %v7721_v21  ;;  %v7796_v19 = vrot.slane %v2183_v43, 5  ;;  %v3104_v52 = vrot.slane %v6912_v42, 2  ;;  %v7845_v53 = vld [vmem:[%s7193_s28 + $0xe0] sm:$0xff] }
  0xb5   : > { %v1192_v50 = vpop.permute.xlu1 %1191  ;;  %1714 = vst.msk [vmem:[#allocation3 + $0x48] sm:$0xf] %vm1695_vm8, %v7700_v54  ;;  %v814_v25 = vsel %vm7216_vm13, %v809_v56, %v7772_v3  ;;  %v7804_v10 = vor.u32 %v2178_v32, %v2175_v49  ;;  %v2170_v9 = vor.u32 %v2169_v48, %v2166_v11  ;;  %v2203_v26 = vrot.slane %v2201_v60, 5  ;;  %v1778_v27 = vld [vmem:[#allocation2 + $0xa8] sm:$0xe]  ;;  %v7853_v60 = vld [vmem:[%s7193_s28 + $0x50] sm:$0xff] }
  0xb6   : > { %1292 = vst.msk [vmem:[#allocation3 + $0x50] sm:$0xf] %vm1271_vm6, %v1192_v50  ;;  %v7810_v30 = vld [vmem:[#allocation2 + $0x40] sm:$0xf]  ;;  %v2206_v31 = vrot.slane %v2204_v4, 6  ;;  %v2211_v33 = vshrl.u32 %v1780_v18, 16  ;;  %v3106_v59 = vsel %vm3103_vm14, %v3104_v52, %v3105_v45 }
  0xb7   : > { %1209 = vrot.lane.b32.xlu1 %v1030_v14, %s7065_s30  ;;  %v1160_v54 = vpop.permute.xlu0 %1159  ;;  %1716 = vst.msk [vmem:[#allocation3 + $0x50] sm:$0xf] %vm1695_vm8, %v7727_v20  ;;  %v7798_v20 = vrot.slane %v2186_v55, 6  ;;  %v2214_v38 = vshll.u32 %v1780_v18, 16  ;;  %v7814_v29 = vrot.slane %v825_v7, 5  ;;  %v831_v0 = vrot.slane %v829_v8, 4  ;;  %6855 = vmatprep.subr.bf16.mxu1 %v3106_v59 }
  0xb8   : > { %1207 = vrot.lane.b32.xlu0 %v1020_v23, %s7065_s30  ;;  %1276 = vst.msk [vmem:[#allocation3 + $0x10] sm:$0xf] %vm1271_vm6, %v1160_v54  ;;  %v818_v40 = vrot.slane %v816_v13, 4  ;;  %v821_v22 = vrot.slane %v819_v17, 5  ;;  %6676 = vmatprep.subr.bf16.mxu0 %v3106_v59  ;;  %v628_v28 = vld [vmem:[#allocation2 + $0x50] sm:$0x1]  ;;  %v1539_v23 = vsel %vm7186_vm7, %v1537_v61, %v1538_v63  ;;  %v7830_v36 = vor.u32 %v2206_v31, %v2203_v26 }
  0xb9   : > { %v1194_v12 = vpop.permute.xlu1 %1193  ;;  %v2192_v47 = vshrl.u32 %v1778_v27, 16  ;;  %6857 = vmatpush3.bf16.msra.mxu1 %v3106_v59  ;;  %6677 = vmatpush3.bf16.msra.mxu0 %v3106_v59  ;;  %v2189_v5 = vor.u32 %v7798_v20, %v7796_v19  ;;  %v1329_v45 = vld [vmem:[#allocation2 + $0x44] sm:$0x1]  ;;  %v1472_v42 = vrot.slane %v7810_v30, 5  ;;  %v2181_v37 = vrot.slane %v7804_v10, 4  ;;  %v7842_v55 = vld [vmem:[%s7193_s28 + $0xd8] sm:$0xff] }
  0xba   : > { %1293 = vst.msk [vmem:[#allocation3 + $0x54] sm:$0xf] %vm1271_vm6, %v1194_v12  ;;  %v2171_v3 = vrot.slane %v2170_v9, 4  ;;  %v1327_v58 = vld [vmem:[#allocation2 + $0x3c] sm:$0xe]  ;;  %v832_v49 = vor.u32 %v831_v0, %v7814_v29  ;;  %v835_v43 = vshll.u32 %v628_v28, 16  ;;  %v822_v50 = vor.u32 %v821_v22, %v818_v40 }
  0xbb   : > { %1629 = vrot.lane.b32.xlu1 %v1532_v2, %s7064_s29  ;;  %v2396_v21 = vpop.permute.xlu0 %2395  ;;  %1717 = vst.msk [vmem:[#allocation3 + $0x54] sm:$0xf] %vm1695_vm8, %v7745_v24  ;;  %v2195_v24 = vshll.u32 %v1778_v27, 16  ;;  %v1536_v2 = vsel %vm7186_vm7, %v6220_v39, %v1535_v35  ;;  %v7832_v39 = vrot.slane %v2211_v33, 5  ;;  %v7835_v35 = vld [vmem:[%s7193_s28 + $0xd0] sm:$0xff]  ;;  %v2216_v51 = vrot.slane %v2214_v38, 6 }
  0xbc   : > { %1627 = vrot.lane.b32.xlu0 %v1529_v16, %s7064_s29  ;;  %2498 = vst.msk [vmem:[#allocation3 + $0x48] sm:$0xf] %vm2479_vm9, %v2396_v21  ;;  %v7839_v32 = vld [vmem:[#allocation2 + $0xa0] sm:$0xf]  ;;  %vm2903_vm15 = vcmask 158848   ;;  %v1475_v56 = vrot.slane %v1329_v45, 5  ;;  %v2190_v7 = vsel %vm7283_vm1, %v2181_v37, %v2189_v5  ;;  %v2180_v8 = vsel %vm7283_vm1, %v2171_v3, %v7804_v10 }
  0xbd   : > { %v2398_v16 = vpop.permute.xlu1 %2397  ;;  %v2194_v11 = vrot.slane %v2192_v47, 5  ;;  %v2197_v48 = vrot.slane %v2195_v24, 6  ;;  %v7850_v57 = vld [vmem:[%s7193_s28 + $0xe8] sm:$0xff]  ;;  %v1474_v54 = vrot.slane %v1472_v42, 4  ;;  %v6211_v61 = vrot.slane %v1327_v58, 9  ;;  %v231_v12 = vld [vmem:[%s7193_s28 + $0x58] sm:$0xff] }
  0xbe   : > { %v541_v63 = vld [vmem:[#allocation2 + $0x4c] sm:$0xf]  ;;  %v540_v4 = vld [vmem:[#allocation2 + $0x48] sm:$0xf]  ;;  %v2209_v13 = vrot.slane %v7830_v36, 4  ;;  %v2736_v17 = vrot.slane %v7839_v32, 6  ;;  %v6514_v21 = vpack.c.bf16 %v7842_v55, %v7842_v55  ;;  %v6515_v31 = vpack.c.bf16 %v7845_v53, %v7845_v53 }
  0xbf   : > { %1173 = vrot.lane.b32.xlu1 %v814_v25, %s7065_s30  ;;  %v1190_v14 = vpop.permute.xlu0 %1189  ;;  %v7870_v18 = vld [vmem:[#allocation2 + $0x9c] sm:$0xc]  ;;  %581 = vst.msk [vmem:[#allocation3 + $0x34] sm:$0xf] %vm170_vm0, %v541_v63  ;;  %580 = vst.msk [vmem:[#allocation3 + $0x30] sm:$0xf] %vm170_vm0, %v540_v4  ;;  %v2217_v25 = vor.u32 %v2216_v51, %v7832_v39  ;;  %v2198_v27 = vor.u32 %v2197_v48, %v2194_v11  ;;  %v6516_v33 = vpack.c.bf16 %v7850_v57, %v7850_v57 }
  0xc0   : > { %1171 = vrot.lane.b32.xlu0 %v804_v6, %s7065_s30  ;;  %1291 = vst.msk [vmem:[#allocation3 + $0x4c] sm:$0xf] %vm1271_vm6, %v1190_v14  ;;  %v7874_v6 = vld [vmem:[%s7193_s28 + $0x60] sm:$0xff]  ;;  %v833_v19 = vrot.slane %v832_v49, 4  ;;  %v837_v20 = vrot.slane %v835_v43, 5  ;;  %v823_v52 = vrot.slane %v822_v50, 4  ;;  %v1476_v38 = vsel %vm7186_vm7, %v1474_v54, %v1475_v56 }
  0xc1   : > { %1715 = vst.msk [vmem:[#allocation3 + $0x4c] sm:$0xf] %vm1695_vm8, %v7714_v62  ;;  %v1162_v44 = vpop.permute.xlu1 %1161  ;;  %v6513_v62 = vpack.c.bf16 %v7835_v35, %v7835_v35  ;;  %v7879_v9 = vld [vmem:[#allocation2 + $0xa4] sm:$0x3]  ;;  %v7891_v59 = vld [vmem:[#allocation2 + $0x4c] sm:$0xf]  ;;  %v6497_v0 = vpack.c.bf16 %v7853_v60, %v7853_v60  ;;  %v6498_v40 = vpack.c.bf16 %v231_v12, %v231_v12  ;;  %v6499_v22 = vpack.c.bf16 %v7874_v6, %v7874_v6 }
  0xc2   : > { %2499 = vst.msk [vmem:[#allocation3 + $0x4c] sm:$0xf] %vm2479_vm9, %v2398_v16  ;;  %v1473_v16 = vsel %vm7186_vm7, %v6211_v61, %v1472_v42  ;;  %v7905_v28 = vrot.slane %v2736_v17, 4  ;;  %v2739_v47 = vrot.slane %v7879_v9, 6  ;;  %v6239_v24 = vrot.slane %v7870_v18, 10  ;;  %v233_v51 = vld [vmem:[%s7193_s28 + $0x68] sm:$0xff] }
  0xc3   : > { %1277 = vst.msk [vmem:[#allocation3 + $0x14] sm:$0xf] %vm1271_vm6, %v1162_v44  ;;  %1633 = vrot.lane.b32.xlu1 %v1539_v23, %s7064_s29  ;;  %v1752_v23 = vld [vmem:[#allocation2 + $0x40] sm:$0xf]  ;;  %v828_v5 = vsel %vm7216_vm13, %v823_v52, %v7814_v29  ;;  %v7916_v30 = vsel %vm7283_vm1, %v2209_v13, %v2217_v25  ;;  %v1751_v45 = vld [vmem:[#allocation2 + $0x3c] sm:$0xe] }
  0xc4   : > { %1631 = vrot.lane.b32.xlu0 %v1536_v2, %s7064_s29  ;;  %v838_v2 = vsel %vm7216_vm13, %v833_v19, %v837_v20  ;;  %v416_v42 = vrot.slane %v6513_v62, 7  ;;  %v7918_v3 = vrot.slane %v2198_v27, 4  ;;  %vm3108_vm4 = vcmask 162816   ;;  %v7927_v55 = vld [vmem:[#allocation2 + $0x44] sm:$0x3] }
  0xc5   : > { %v2402_v10 = vpop.permute.xlu1 %2401  ;;  %v1479_v58 = vrot.slane %v7891_v59, 5  ;;  %v418_v39 = vrot.slane %v6514_v21, 7  ;;  %v421_v35 = vrot.slane %v6515_v31, 7  ;;  %v1949_v29 = vshrl.u32 %v1752_v23, 16  ;;  %v7932_v63 = vld [vmem:[#allocation2 + $0x4c] sm:$0xf] }
  0xc6   : > { %v2400_v26 = vpop.permute.xlu0 %2399  ;;  %2501 = vst.msk [vmem:[#allocation3 + $0x54] sm:$0xf] %vm2479_vm9, %v2402_v10  ;;  %v1952_v49 = vshll.u32 %v1752_v23, 16  ;;  %v417_v43 = vrot.slane %v416_v42, 4  ;;  %v423_v50 = vrot.slane %v6516_v33, 7  ;;  %v1940_v53 = vshrl.u32 %v1751_v45, 16 }
  0xc7   : > { %2500 = vst.msk [vmem:[#allocation3 + $0x50] sm:$0xf] %vm2479_vm9, %v2400_v26  ;;  %2413 = vrot.lane.b32.xlu1 %v2190_v7, %s7066_s4  ;;  %v420_v44 = vrot.slane %v418_v39, 4  ;;  %v422_v56 = vrot.slane %v421_v35, 4  ;;  %v376_v11 = vrot.slane %v6497_v0, 7  ;;  %v1943_v48 = vshll.u32 %v1751_v45, 16 }
  0xc8   : > { %2411 = vrot.lane.b32.xlu0 %v2180_v8, %s7066_s4  ;;  %519 = vst.msk [vmem:[#allocation2 + $0xb4] sm:$0xe] %vm479_vm11, %v416_v42  ;;  %522 = vst.msk [vmem:[#allocation2 + $0xc0] sm:$0xe] %vm479_vm11, %v421_v35  ;;  %v419_v57 = vsel %vm7208_vm12, %v417_v43, %v418_v39  ;;  %v425_v60 = vrot.slane %v423_v50, 4  ;;  %v378_v54 = vrot.slane %v6498_v40, 7  ;;  %v6500_v8 = vpack.c.bf16 %v233_v51, %v233_v51 }
  0xc9   : > { %v2822_v14 = vpop.permute.xlu1 %2821  ;;  %520 = vst.msk [vmem:[#allocation2 + $0xb8] sm:$0xf] %vm170_vm0, %v419_v57  ;;  %v424_v4 = vsel %vm7208_vm12, %v422_v56, %v423_v50  ;;  %v377_v7 = vrot.slane %v376_v11, 4  ;;  %v381_v13 = vrot.slane %v6499_v22, 7  ;;  %v2208_v12 = vsel %vm7283_vm1, %v7918_v3, %v7830_v36  ;;  %v1330_v6 = vld [vmem:[#allocation2 + $0x48] sm:$0xe] }
  0xca   : > { %v2820_v37 = vpop.permute.xlu0 %2819  ;;  %2923 = vst.msk [vmem:[#allocation3 + $0x4c] sm:$0xf] %vm2903_vm15, %v2822_v14  ;;  %v1951_v19 = vrot.slane %v1949_v29, 5  ;;  %v1959_v20 = vshrl.u32 %v7927_v55, 16  ;;  %v380_v52 = vrot.slane %v378_v54, 4  ;;  %v1962_v25 = vshll.u32 %v7927_v55, 16 }
  0xcb   : > { %2922 = vst.msk [vmem:[#allocation3 + $0x48] sm:$0xf] %vm2903_vm15, %v2820_v37  ;;  %1177 = vrot.lane.b32.xlu1 %v838_v2, %s7065_s30  ;;  %v1754_v10 = vld [vmem:[#allocation2 + $0x48] sm:$0xe]  ;;  %v379_v26 = vsel %vm7208_vm12, %v377_v7, %v378_v54  ;;  %v382_v36 = vrot.slane %v381_v13, 4  ;;  %v383_v27 = vrot.slane %v6500_v8, 7  ;;  %v2737_v9 = vsel %vm7366_vm5, %v6239_v24, %v2736_v17 }
  0xcc   : > { %1175 = vrot.lane.b32.xlu0 %v828_v5, %s7065_s30  ;;  %521 = vst.msk [vmem:[#allocation2 + $0xbc] sm:$0x1] %vm186_vm2, %v420_v44  ;;  %524 = vst.msk [vmem:[#allocation2 + $0xc8] sm:$0x1] %vm186_vm2, %v425_v60  ;;  %v1332_v21 = vld [vmem:[#allocation2 + $0x50] sm:$0x1]  ;;  %v2740_v5 = vsel %vm7366_vm5, %v7905_v28, %v2739_v47 }
  0xcd   : > { %v1586_v61 = vpop.permute.xlu1 %1585  ;;  %495 = vst.msk [vmem:[#allocation2 + $0x54] sm:$0xe] %vm479_vm11, %v376_v11  ;;  %498 = vst.msk [vmem:[#allocation2 + $0x60] sm:$0xe] %vm479_vm11, %v381_v13  ;;  %v1954_v31 = vrot.slane %v1952_v49, 6  ;;  %v1942_v33 = vrot.slane %v1940_v53, 5  ;;  %v384_v23 = vsel %vm7208_vm12, %v382_v36, %v383_v27 }
  0xce   : > { %v1584_v62 = vpop.permute.xlu0 %1583  ;;  %1701 = vst.msk [vmem:[#allocation3 + $0x14] sm:$0xf] %vm1695_vm8, %v1586_v61  ;;  %v1945_v0 = vrot.slane %v1943_v48, 6  ;;  %v1977_v40 = vshrl.u32 %v7932_v63, 16  ;;  %v385_v2 = vrot.slane %v383_v27, 4  ;;  %v1980_v42 = vshll.u32 %v7932_v63, 16 }
  0xcf   : > { %1700 = vst.msk [vmem:[#allocation3 + $0x10] sm:$0xf] %vm1695_vm8, %v1584_v62  ;;  %1597 = vrot.lane.b32.xlu1 %v1476_v38, %s7064_s29  ;;  %v1756_v45 = vld [vmem:[#allocation2 + $0x50] sm:$0x3]  ;;  %v1968_v14 = vshrl.u32 %v1754_v10, 16  ;;  %v1971_v37 = vshll.u32 %v1754_v10, 16  ;;  %v1955_v39 = vor.u32 %v1954_v31, %v1951_v19 }
  0xd0   : > { %523 = vst.msk [vmem:[#allocation2 + $0xc4] sm:$0xf] %vm170_vm0, %v424_v4  ;;  %1595 = vrot.lane.b32.xlu0 %v1473_v16, %s7064_s29  ;;  %496 = vst.msk [vmem:[#allocation2 + $0x58] sm:$0xf] %vm170_vm0, %v379_v26  ;;  %v1481_v28 = vrot.slane %v1479_v58, 4  ;;  %v1482_v47 = vrot.slane %v1332_v21, 5  ;;  %v1946_v29 = vor.u32 %v1945_v0, %v1942_v33 }
  0xd1   : > { %497 = vst.msk [vmem:[#allocation2 + $0x5c] sm:$0x1] %vm186_vm2, %v380_v52  ;;  %v2366_v38 = vpop.permute.xlu1 %2365  ;;  %v6212_v3 = vrot.slane %v1330_v6, 9  ;;  %500 = vst.msk [vmem:[#allocation2 + $0x68] sm:$0x1] %vm186_vm2, %v385_v2  ;;  %v1964_v35 = vrot.slane %v1962_v25, 6 }
  0xd2   : > { %v2364_v22 = vpop.permute.xlu0 %2363  ;;  %v6910_v16 = vld [vmem:[#allocation3 + $0x48] sm:$0xff]   ;;  %2483 = vst.msk [vmem:[#allocation3 + $0xc] sm:$0xf] %vm2479_vm9, %v2366_v38  ;;  %v2563_v43 = vld [vmem:[#allocation2 + $0xac] sm:$0xf]  ;;  %v1979_v18 = vrot.slane %v1977_v40, 5  ;;  %v1483_v53 = vsel %vm7186_vm7, %v1481_v28, %v1482_v47 }
  0xd3   : > { %2482 = vst.msk [vmem:[#allocation3 + $0x8] sm:$0xf] %vm2479_vm9, %v2364_v22  ;;  %2417 = vrot.lane.b32.xlu1 %v7916_v30, %s7066_s4  ;;  %6694 = vmatprep.mubr.msk.bf16.mxu1 %vm3108_vm4, %v6910_v16  ;;  %v1961_v30 = vrot.slane %v1959_v20, 5  ;;  %v1987_v50 = vshrl.u32 %v1756_v45, 16  ;;  %v1982_v17 = vrot.slane %v1980_v42, 6  ;;  %v1990_v24 = vshll.u32 %v1756_v45, 16 }
  0xd4   : > { %499 = vst.msk [vmem:[#allocation2 + $0x64] sm:$0xf] %vm170_vm0, %v384_v23  ;;  %2415 = vrot.lane.b32.xlu0 %v2208_v12, %s7066_s4  ;;  %v1970_v51 = vrot.slane %v1968_v14, 5  ;;  %v1973_v55 = vrot.slane %v1971_v37, 6  ;;  %v1480_v44 = vsel %vm7186_vm7, %v6212_v3, %v1479_v58  ;;  %v1957_v56 = vrot.slane %v1955_v39, 4 }
  0xd5   : > { %v2826_v49 = vpop.permute.xlu1 %2825  ;;  %v1965_v11 = vor.u32 %v1964_v35, %v1961_v30  ;;  %v1947_v48 = vrot.slane %v1946_v29, 4  ;;  %v2564_v57 = vld [vmem:[#allocation2 + $0xb0] sm:$0x3]  ;;  %v2743_v60 = vrot.slane %v2563_v43, 6  ;;  %v2562_v62 = vld [vmem:[#allocation2 + $0xa8] sm:$0xc]  ;;  %v7993_v63 = vor.u32 %v1982_v17, %v1979_v18 }
  0xd6   : > { %v2824_v32 = vpop.permute.xlu0 %2823  ;;  %2925 = vst.msk [vmem:[#allocation3 + $0x54] sm:$0xf] %vm2903_vm15, %v2826_v49  ;;  %v1989_v4 = vrot.slane %v1987_v50, 5  ;;  %v1992_v7 = vrot.slane %v1990_v24, 6  ;;  %v1974_v59 = vor.u32 %v1973_v55, %v1970_v51  ;;  %v2746_v58 = vrot.slane %v2564_v57, 6 }
  0xd7   : > { %2924 = vst.msk [vmem:[#allocation3 + $0x50] sm:$0xf] %vm2903_vm15, %v2824_v32  ;;  %2837 = vrot.lane.b32.xlu1 %v2740_v5, %s7067_s5  ;;  %v2536_v8 = vld [vmem:[#allocation2 + $0x40] sm:$0xf]  ;;  %v1966_v13 = vsel %vm7283_vm1, %v1957_v56, %v1965_v11  ;;  %v1956_v12 = vsel %vm7283_vm1, %v1947_v48, %v1955_v39  ;;  %v2745_v6 = vrot.slane %v2743_v60, 4  ;;  %v6240_v19 = vrot.slane %v2562_v62, 10 }
  0xd8   : > { %2835 = vrot.lane.b32.xlu0 %v2737_v9, %s7067_s5  ;;  %v2537_v20 = vld [vmem:[#allocation2 + $0x44] sm:$0x3]  ;;  %v654_v52 = vld [vmem:[#allocation2 + $0xb8] sm:$0xf]  ;;  %v653_v25 = vld [vmem:[#allocation2 + $0xb4] sm:$0xf]  ;;  %v1993_v21 = vor.u32 %v1992_v7, %v1989_v4 }
  0xd9   : > { %v2370_v54 = vpop.permute.xlu1 %2369  ;;  %v1985_v27 = vrot.slane %v7993_v63, 4  ;;  %v1975_v31 = vrot.slane %v1974_v59, 4  ;;  %v2680_v33 = vrot.slane %v2536_v8, 6  ;;  %v2535_v0 = vld [vmem:[#allocation2 + $0x3c] sm:$0xc]  ;;  %v1032_v38 = vshrl.u32 %v653_v25, 16 }
  0xda   : > { %v2368_v61 = vpop.permute.xlu0 %2367  ;;  %2485 = vst.msk [vmem:[#allocation3 + $0x14] sm:$0xf] %vm2479_vm9, %v2370_v54  ;;  %v8006_v40 = vld [vmem:[#allocation2 + $0x4c] sm:$0xf]  ;;  %v1035_v22 = vshll.u32 %v653_v25, 16  ;;  %v2747_v16 = vsel %vm7366_vm5, %v2745_v6, %v2746_v58  ;;  %v2744_v23 = vsel %vm7366_vm5, %v6240_v19, %v2743_v60  ;;  %v1041_v2 = vshll.u32 %v654_v52, 16 }
  0xdb   : > { %2484 = vst.msk [vmem:[#allocation3 + $0x10] sm:$0xf] %vm2479_vm9, %v2368_v61  ;;  %1601 = vrot.lane.b32.xlu1 %v1483_v53, %s7064_s29  ;;  %v1045_v5 = vshrl.u32 %v654_v52, 16  ;;  %v656_v45 = vld [vmem:[#allocation2 + $0xc0] sm:$0xf]  ;;  %v2683_v37 = vrot.slane %v2537_v20, 6  ;;  %v1994_v47 = vsel %vm7283_vm1, %v1985_v27, %v1993_v21  ;;  %v1984_v3 = vsel %vm7283_vm1, %v1975_v31, %v7993_v63 }
  0xdc   : > { %1599 = vrot.lane.b32.xlu0 %v1480_v44, %s7064_s29  ;;  %v6231_v9 = vrot.slane %v2535_v0, 10  ;;  %v657_v28 = vld [vmem:[#allocation2 + $0xc4] sm:$0xf]  ;;  %v2682_v39 = vrot.slane %v2680_v33, 4  ;;  %v2540_v30 = vld [vmem:[#allocation2 + $0x50] sm:$0x3] }
  0xdd   : > { %v2790_v10 = vpop.permute.xlu1 %2789  ;;  %v2687_v35 = vrot.slane %v8006_v40, 6  ;;  %v2538_v29 = vld [vmem:[#allocation2 + $0x48] sm:$0xc]  ;;  %v1034_v49 = vrot.slane %v1032_v38, 4  ;;  %v1037_v32 = vrot.slane %v1035_v22, 5  ;;  %v1056_v43 = vshrl.u32 %v656_v45, 16 }
  0xde   : > { %v2788_v26 = vpop.permute.xlu0 %2787  ;;  %v6913_v36 = vld [vmem:[#allocation3 + $0x50] sm:$0xff]   ;;  %2907 = vst.msk [vmem:[#allocation3 + $0xc] sm:$0xf] %vm2903_vm15, %v2790_v10  ;;  %v1059_v18 = vshll.u32 %v656_v45, 16  ;;  %v655_v50 = vld [vmem:[#allocation2 + $0xbc] sm:$0x1]  ;;  %v2681_v11 = vsel %vm7366_vm5, %v6231_v9, %v2680_v33  ;;  %v2684_v54 = vsel %vm7366_vm5, %v2682_v39, %v2683_v37 }
  0xdf   : > { %2906 = vst.msk [vmem:[#allocation3 + $0x8] sm:$0xf] %vm2903_vm15, %v2788_v26  ;;  %2381 = vrot.lane.b32.xlu1 %v1966_v13, %s7066_s4  ;;  %6695 = vmatmul.mubr.msk.bf16.vlgmr.msra.gmra.mxu1 %vm3108_vm4, %v6913_v36  ;;  %v8023_v17 = vrot.slane %v1041_v2, 5  ;;  %v1047_v24 = vrot.slane %v1045_v5, 4  ;;  %v1065_v51 = vshll.u32 %v657_v28, 16  ;;  %v1069_v55 = vshrl.u32 %v657_v28, 16 }
  0xe0   : > { %2379 = vrot.lane.b32.xlu0 %v1956_v12, %s7066_s4  ;;  %v2689_v48 = vrot.slane %v2687_v35, 4  ;;  %v2690_v57 = vrot.slane %v2540_v30, 6  ;;  %v6232_v60 = vrot.slane %v2538_v29, 10  ;;  %v1051_v61 = vshll.u32 %v655_v50, 16  ;;  %v658_v63 = vld [vmem:[#allocation2 + $0xc8] sm:$0x1] }
  0xe1   : > { %v2794_v42 = vpop.permute.xlu1 %2793  ;;  %v1038_v62 = vor.u32 %v1037_v32, %v1034_v49  ;;  %v1058_v4 = vrot.slane %v1056_v43, 4  ;;  %v630_v7 = vld [vmem:[#allocation2 + $0x58] sm:$0xf]  ;;  %v1048_v59 = vor.u32 %v1047_v24, %v8023_v17  ;;  %v8035_v58 = vrot.slane %v1065_v51, 5  ;;  %v629_v12 = vld [vmem:[#allocation2 + $0x54] sm:$0xf] }
  0xe2   : > { %v2792_v14 = vpop.permute.xlu0 %2791  ;;  %2909 = vst.msk [vmem:[#allocation3 + $0x14] sm:$0xf] %vm2903_vm15, %v2794_v42  ;;  %v1071_v8 = vrot.slane %v1069_v55, 4  ;;  %v1061_v13 = vrot.slane %v1059_v18, 5  ;;  %v2691_v52 = vsel %vm7366_vm5, %v2689_v48, %v2690_v57  ;;  %v2688_v25 = vsel %vm7366_vm5, %v6232_v60, %v2687_v35  ;;  %v1358_v10 = vld [vmem:[#allocation2 + $0xb8] sm:$0xf] }
  0xe3   : > { %2908 = vst.msk [vmem:[#allocation3 + $0x10] sm:$0xf] %vm2903_vm15, %v2792_v14  ;;  %2841 = vrot.lane.b32.xlu1 %v2747_v16, %s7067_s5  ;;  %v849_v26 = vshll.u32 %v630_v7, 16  ;;  %v853_v36 = vshrl.u32 %v630_v7, 16  ;;  %v1053_v27 = vrot.slane %v1051_v61, 5  ;;  %v1075_v21 = vshll.u32 %v658_v63, 16 }
  0xe4   : > { %2839 = vrot.lane.b32.xlu0 %v2744_v23, %s7067_s5  ;;  %v840_v31 = vshrl.u32 %v629_v12, 16  ;;  %v843_v33 = vshll.u32 %v629_v12, 16  ;;  %v1049_v0 = vrot.slane %v1048_v59, 4  ;;  %v1039_v40 = vrot.slane %v1038_v62, 4  ;;  %v1357_v16 = vld [vmem:[#allocation2 + $0xb4] sm:$0xe] }
  0xe5   : > { %v1198_v53 = vpop.permute.xlu1 %1197  ;;  %v1072_v38 = vor.u32 %v1071_v8, %v8035_v58  ;;  %v1062_v22 = vor.u32 %v1061_v13, %v1058_v4  ;;  %v1542_v5 = vrot.slane %v1358_v10, 5  ;;  %v1359_v45 = vld [vmem:[#allocation2 + $0xbc] sm:$0x1]  ;;  %v8049_v14 = vrot.slane %v849_v26, 5  ;;  %v1782_v39 = vld [vmem:[#allocation2 + $0xb8] sm:$0xf] }
  0xe6   : > { %v1196_v44 = vpop.permute.xlu0 %1195  ;;  %v6914_v56 = vld [vmem:[#allocation3 + $0x8] sm:$0xff]   ;;  %1295 = vst.msk [vmem:[#allocation3 + $0x5c] sm:$0xf] %vm1271_vm6, %v1198_v53  ;;  %v855_v37 = vrot.slane %v853_v36, 4  ;;  %v1077_v9 = vrot.slane %v1075_v21, 5  ;;  %v6221_v28 = vrot.slane %v1357_v16, 9  ;;  %v1054_v30 = vsel %vm7216_vm13, %v1049_v0, %v1053_v27 }
  0xe7   : > { %1294 = vst.msk [vmem:[#allocation3 + $0x58] sm:$0xf] %vm1271_vm6, %v1196_v44  ;;  %2385 = vrot.lane.b32.xlu1 %v1994_v47, %s7066_s4  ;;  %6678 = vmatprep.mubr.msk.bf16.mxu0 %vm3108_vm4, %v6914_v56  ;;  %v631_v42 = vld [vmem:[#allocation2 + $0x5c] sm:$0x1]  ;;  %v842_v47 = vrot.slane %v840_v31, 4  ;;  %v1044_v35 = vsel %vm7216_vm13, %v1039_v40, %v8023_v17  ;;  %v1073_v29 = vrot.slane %v1072_v38, 4 }
  0xe8   : > { %2383 = vrot.lane.b32.xlu0 %v1984_v3, %s7066_s4  ;;  %v845_v3 = vrot.slane %v843_v33, 5  ;;  %v1063_v49 = vrot.slane %v1062_v22, 4  ;;  %v1544_v18 = vrot.slane %v1542_v5, 4  ;;  %v1545_v50 = vrot.slane %v1359_v45, 5  ;;  %v1781_v51 = vld [vmem:[#allocation2 + $0xb4] sm:$0xe] }
  0xe9   : > { %v1202_v6 = vpop.permute.xlu1 %1201  ;;  %v859_v24 = vshll.u32 %v631_v42, 16  ;;  %v856_v55 = vor.u32 %v855_v37, %v8049_v14  ;;  %v8061_v53 = vld [vmem:[#allocation2 + $0xc4] sm:$0xf]  ;;  %v8063_v44 = vld [vmem:[#allocation2 + $0xc8] sm:$0x1]  ;;  %v2229_v56 = vshrl.u32 %v1782_v39, 16  ;;  %v1543_v17 = vsel %vm7186_vm7, %v6221_v28, %v1542_v5 }
  0xea   : > { %v1200_v19 = vpop.permute.xlu0 %1199  ;;  %v6915_v20 = vld [vmem:[#allocation3 + $0x10] sm:$0xff]   ;;  %1297 = vst.msk [vmem:[#allocation3 + $0x64] sm:$0xf] %vm1271_vm6, %v1202_v6  ;;  %v1783_v48 = vld [vmem:[#allocation2 + $0xbc] sm:$0x3]  ;;  %v2232_v57 = vshll.u32 %v1782_v39, 16  ;;  %v1078_v60 = vsel %vm7216_vm13, %v1073_v29, %v1077_v9  ;;  %v1546_v59 = vsel %vm7186_vm7, %v1544_v18, %v1545_v50 }
  0xeb   : > { %1296 = vst.msk [vmem:[#allocation3 + $0x60] sm:$0xf] %vm1271_vm6, %v1200_v19  ;;  %2805 = vrot.lane.b32.xlu1 %v2684_v54, %s7067_s5  ;;  %6679 = vmatmul.mubr.msk.bf16.vlgmr.msra.gmra.mxu0 %vm3108_vm4, %v6915_v20  ;;  %v1068_v54 = vsel %vm7216_vm13, %v1063_v49, %v8035_v58  ;;  %v2220_v61 = vshrl.u32 %v1781_v51, 16  ;;  %v2223_v62 = vshll.u32 %v1781_v51, 16  ;;  %v633_v63 = vld [vmem:[#allocation2 + $0x64] sm:$0xf] }
  0xec   : > { %2803 = vrot.lane.b32.xlu0 %v2681_v11, %s7067_s5  ;;  %v846_v11 = vor.u32 %v845_v3, %v842_v47  ;;  %v8076_v8 = vrot.slane %v859_v24, 5  ;;  %v1549_v13 = vrot.slane %v8061_v53, 5  ;;  %v1552_v12 = vrot.slane %v8063_v44, 5  ;;  %v632_v6 = vld [vmem:[#allocation2 + $0x60] sm:$0xf] }
  0xed   : > { %v1622_v23 = vpop.permute.xlu1 %1621  ;;  %v857_v58 = vrot.slane %v856_v55, 4  ;;  %v1360_v19 = vld [vmem:[#allocation2 + $0xc0] sm:$0xe]  ;;  %v2231_v20 = vrot.slane %v2229_v56, 5  ;;  %v2234_v26 = vrot.slane %v2232_v57, 6  ;;  %v873_v36 = vshll.u32 %v633_v63, 16 }
  0xee   : > { %v1620_v2 = vpop.permute.xlu0 %1619  ;;  %1719 = vst.msk [vmem:[#allocation3 + $0x5c] sm:$0xf] %vm1695_vm8, %v1622_v23  ;;  %v847_v10 = vrot.slane %v846_v11, 4  ;;  %v877_v27 = vshrl.u32 %v633_v63, 16  ;;  %v2222_v21 = vrot.slane %v2220_v61, 5  ;;  %v2225_v31 = vrot.slane %v2223_v62, 6 }
  0xef   : > { %1718 = vst.msk [vmem:[#allocation3 + $0x58] sm:$0xf] %vm1695_vm8, %v1620_v2  ;;  %2809 = vrot.lane.b32.xlu1 %v2691_v52, %s7067_s5  ;;  %v2239_v52 = vshrl.u32 %v1783_v48, 16  ;;  %v864_v33 = vshrl.u32 %v632_v6, 16  ;;  %v867_v0 = vshll.u32 %v632_v6, 16  ;;  %v1551_v22 = vrot.slane %v1549_v13, 4 }
  0xf0   : > { %2807 = vrot.lane.b32.xlu0 %v2688_v25, %s7067_s5  ;;  %v2242_v25 = vshll.u32 %v1783_v48, 16  ;;  %v6222_v16 = vrot.slane %v1360_v19, 9  ;;  %v634_v23 = vld [vmem:[#allocation2 + $0x68] sm:$0x1]  ;;  %v559_v2 = vld [vmem:[#allocation2 + $0xb8] sm:$0xf]  ;;  %v862_v9 = vsel %vm7216_vm13, %v857_v58, %v8076_v8  ;;  %v8096_v28 = vor.u32 %v2234_v26, %v2231_v20 }
  0xf1   : > { %v1166_v32 = vpop.permute.xlu1 %1165  ;;  %v8086_v5 = vrot.slane %v2239_v52, 5  ;;  %v1785_v42 = vld [vmem:[#allocation2 + $0xc4] sm:$0xf]  ;;  %599 = vst.msk [vmem:[#allocation3 + $0x7c] sm:$0xf] %vm170_vm0, %v559_v2  ;;  %v8098_v47 = vrot.slane %v873_v36, 5  ;;  %v2226_v29 = vor.u32 %v2225_v31, %v2222_v21 }
  0xf2   : > { %v1164_v43 = vpop.permute.xlu0 %1163  ;;  %1279 = vst.msk [vmem:[#allocation3 + $0x1c] sm:$0xf] %vm1271_vm6, %v1166_v32  ;;  %v8088_v45 = vrot.slane %v2242_v25, 6  ;;  %v558_v37 = vld [vmem:[#allocation2 + $0xb4] sm:$0xf]  ;;  %v879_v3 = vrot.slane %v877_v27, 4 }
  0xf3   : > { %1278 = vst.msk [vmem:[#allocation3 + $0x18] sm:$0xf] %vm1271_vm6, %v1164_v43  ;;  %1213 = vrot.lane.b32.xlu1 %v1054_v30, %s7065_s30  ;;  %v1784_v39 = vld [vmem:[#allocation2 + $0xc0] sm:$0xe]  ;;  %v561_v30 = vld [vmem:[#allocation2 + $0xc4] sm:$0xf] }
  0xf4   : > { %1211 = vrot.lane.b32.xlu0 %v1044_v35, %s7065_s30  ;;  %598 = vst.msk [vmem:[#allocation3 + $0x78] sm:$0xf] %vm170_vm0, %v558_v37  ;;  %v852_v35 = vsel %vm7216_vm13, %v847_v10, %v8049_v14  ;;  %v866_v49 = vrot.slane %v864_v33, 4  ;;  %v869_v32 = vrot.slane %v867_v0, 5  ;;  %v8104_v43 = vld [vmem:[#allocation2 + $0x58] sm:$0xf]  ;;  %v1550_v14 = vsel %vm7186_vm7, %v6222_v16, %v1549_v13 }
  0xf5   : > { %v1626_v4 = vpop.permute.xlu1 %1625  ;;  %601 = vst.msk [vmem:[#allocation3 + $0x84] sm:$0xf] %vm170_vm0, %v561_v30  ;;  %v560_v18 = vld [vmem:[#allocation2 + $0xc0] sm:$0xf]  ;;  %v543_v50 = vld [vmem:[#allocation2 + $0x58] sm:$0xf]  ;;  %v2245_v63 = vor.u32 %v8088_v45, %v8086_v5 }
  0xf6   : > { %v1624_v7 = vpop.permute.xlu0 %1623  ;;  %1721 = vst.msk [vmem:[#allocation3 + $0x64] sm:$0xf] %vm1695_vm8, %v1626_v4  ;;  %v883_v55 = vshll.u32 %v634_v23, 16  ;;  %v542_v53 = vld [vmem:[#allocation2 + $0x54] sm:$0xf]  ;;  %v2257_v11 = vshrl.u32 %v1785_v42, 16 }
  0xf7   : > { %1720 = vst.msk [vmem:[#allocation3 + $0x60] sm:$0xf] %vm1695_vm8, %v1624_v7  ;;  %1217 = vrot.lane.b32.xlu1 %v1078_v60, %s7065_s30  ;;  %v545_v56 = vld [vmem:[#allocation2 + $0x64] sm:$0xf]  ;;  %v2260_v48 = vshll.u32 %v1785_v42, 16  ;;  %v1553_v60 = vsel %vm7186_vm7, %v1551_v22, %v1552_v12  ;;  %v2248_v61 = vshrl.u32 %v1784_v39, 16  ;;  %v880_v7 = vor.u32 %v879_v3, %v8098_v47 }
  0xf8   : > { %1215 = vrot.lane.b32.xlu0 %v1068_v54, %s7065_s30  ;;  %600 = vst.msk [vmem:[#allocation3 + $0x80] sm:$0xf] %vm170_vm0, %v560_v18  ;;  %583 = vst.msk [vmem:[#allocation3 + $0x3c] sm:$0xf] %vm170_vm0, %v543_v50  ;;  %v544_v57 = vld [vmem:[#allocation2 + $0x60] sm:$0xf] }
  0xf9   : > { %v2406_v40 = vpop.permute.xlu1 %2405  ;;  %582 = vst.msk [vmem:[#allocation3 + $0x38] sm:$0xf] %vm170_vm0, %v542_v53  ;;  %585 = vst.msk [vmem:[#allocation3 + $0x44] sm:$0xf] %vm170_vm0, %v545_v56  ;;  %v2237_v54 = vrot.slane %v8096_v28, 4  ;;  %v2251_v62 = vshll.u32 %v1784_v39, 16 }
  0xfa   : > { %v2404_v38 = vpop.permute.xlu0 %2403  ;;  %2503 = vst.msk [vmem:[#allocation3 + $0x5c] sm:$0xf] %vm2479_vm9, %v2406_v40  ;;  %v2227_v4 = vrot.slane %v2226_v29, 4  ;;  %v1335_v8 = vld [vmem:[#allocation2 + $0x5c] sm:$0x1]  ;;  %v885_v6 = vrot.slane %v883_v55, 5 }
  0xfb   : > { %2502 = vst.msk [vmem:[#allocation3 + $0x58] sm:$0xf] %vm2479_vm9, %v2404_v38  ;;  %1637 = vrot.lane.b32.xlu1 %v1546_v59, %s7064_s29  ;;  %v870_v59 = vor.u32 %v869_v32, %v866_v49  ;;  %v1486_v12 = vrot.slane %v8104_v43, 5  ;;  %v1333_v58 = vld [vmem:[#allocation2 + $0x54] sm:$0xe]  ;;  %v2259_v19 = vrot.slane %v2257_v11, 5  ;;  %v2246_v27 = vsel %vm7283_vm1, %v2237_v54, %v2245_v63 }
  0xfc   : > { %1635 = vrot.lane.b32.xlu0 %v1543_v17, %s7064_s29  ;;  %v1786_v17 = vld [vmem:[#allocation2 + $0xc8] sm:$0x3]  ;;  %584 = vst.msk [vmem:[#allocation3 + $0x40] sm:$0xf] %vm170_vm0, %v544_v57  ;;  %v2262_v20 = vrot.slane %v2260_v48, 6  ;;  %v2250_v10 = vrot.slane %v2248_v61, 5  ;;  %v2236_v21 = vsel %vm7283_vm1, %v2227_v4, %v8096_v28 }
  0xfd   : > { %v1170_v24 = vpop.permute.xlu1 %1169  ;;  %v2267_v52 = vshrl.u32 %v1786_v17, 16  ;;  %v2270_v25 = vshll.u32 %v1786_v17, 16  ;;  %v2253_v26 = vrot.slane %v2251_v62, 6  ;;  %v250_v36 = vld [vmem:[%s7193_s28 + $0xf0] sm:$0xff]  ;;  %v881_v31 = vrot.slane %v880_v7, 4  ;;  %v251_v5 = vld [vmem:[%s7193_s28 + $0xf8] sm:$0xff] }
  0xfe   : > { %v1168_v51 = vpop.permute.xlu0 %1167  ;;  %1281 = vst.msk [vmem:[#allocation3 + $0x24] sm:$0xf] %vm1271_vm6, %v1170_v24  ;;  %v871_v33 = vrot.slane %v870_v59, 4  ;;  %v8137_v0 = vld [vmem:[#allocation2 + $0xb8] sm:$0xf]  ;;  %v1488_v16 = vrot.slane %v1486_v12, 4  ;;  %v8144_v45 = vor.u32 %v2262_v20, %v2259_v19  ;;  %v6517_v29 = vpack.c.bf16 %v250_v36, %v250_v36 }
  0xff   : > { %1280 = vst.msk [vmem:[#allocation3 + $0x20] sm:$0xf] %vm1271_vm6, %v1168_v51  ;;  %1181 = vrot.lane.b32.xlu1 %v862_v9, %s7065_s30  ;;  %v8139_v40 = vld [vmem:[#allocation2 + $0xbc] sm:$0x3]  ;;  %v1489_v23 = vrot.slane %v1335_v8, 5  ;;  %v6213_v2 = vrot.slane %v1333_v58, 9  ;;  %v2254_v9 = vor.u32 %v2253_v26, %v2250_v10  ;;  %v886_v3 = vsel %vm7216_vm13, %v881_v31, %v885_v6 }
 0x100   : > { %1179 = vrot.lane.b32.xlu0 %v852_v35, %s7065_s30  ;;  %v2269_v42 = vrot.slane %v2267_v52, 5  ;;  %v2272_v37 = vrot.slane %v2270_v25, 6  ;;  %v8148_v28 = vld [vmem:[#allocation2 + $0xb4] sm:$0xc]  ;;  %v876_v39 = vsel %vm7216_vm13, %v871_v33, %v8098_v47  ;;  %v8155_v30 = vld [vmem:[#allocation2 + $0x64] sm:$0xf]  ;;  %v6518_v49 = vpack.c.bf16 %v251_v5, %v251_v5 }
 0x101   : > { %v1590_v13 = vpop.permute.xlu1 %1589  ;;  %v1758_v35 = vld [vmem:[#allocation2 + $0x58] sm:$0xf]  ;;  %v1487_v18 = vsel %vm7186_vm7, %v6213_v2, %v1486_v12  ;;  %v2750_v50 = vrot.slane %v8137_v0, 6  ;;  %v2753_v24 = vrot.slane %v8139_v40, 6  ;;  %v1759_v51 = vld [vmem:[#allocation2 + $0x5c] sm:$0x3]  ;;  %v1490_v47 = vsel %vm7186_vm7, %v1488_v16, %v1489_v23 }
 0x102   : > { %v1588_v44 = vpop.permute.xlu0 %1587  ;;  %1703 = vst.msk [vmem:[#allocation3 + $0x1c] sm:$0xf] %vm1695_vm8, %v1590_v13  ;;  %v1757_v55 = vld [vmem:[#allocation2 + $0x54] sm:$0xe]  ;;  %v2265_v53 = vrot.slane %v8144_v45, 4  ;;  %v2273_v56 = vor.u32 %v2272_v37, %v2269_v42  ;;  %v2255_v17 = vrot.slane %v2254_v9, 4 }
 0x103   : > { %1702 = vst.msk [vmem:[#allocation3 + $0x18] sm:$0xf] %vm1695_vm8, %v1588_v44  ;;  %1641 = vrot.lane.b32.xlu1 %v1553_v60, %s7064_s29  ;;  %v1493_v11 = vrot.slane %v8155_v30, 5  ;;  %v2005_v48 = vshrl.u32 %v1758_v35, 16  ;;  %v2008_v57 = vshll.u32 %v1758_v35, 16  ;;  %v1996_v60 = vshrl.u32 %v1757_v55, 16 }
 0x104   : > { %1639 = vrot.lane.b32.xlu0 %v1550_v14, %s7064_s29  ;;  %v6241_v14 = vrot.slane %v8148_v28, 10  ;;  %v1999_v54 = vshll.u32 %v1757_v55, 16  ;;  %v426_v61 = vrot.slane %v6517_v29, 7  ;;  %v428_v62 = vrot.slane %v6518_v49, 7  ;;  %v1338_v7 = vld [vmem:[#allocation2 + $0x68] sm:$0x1] }
 0x105   : > { %v2410_v38 = vpop.permute.xlu1 %2409  ;;  %v2015_v59 = vshrl.u32 %v1759_v51, 16  ;;  %v2018_v8 = vshll.u32 %v1759_v51, 16  ;;  %v2274_v6 = vsel %vm7283_vm1, %v2265_v53, %v2273_v56  ;;  %v2752_v12 = vrot.slane %v2750_v50, 4  ;;  %v1336_v58 = vld [vmem:[#allocation2 + $0x60] sm:$0xe] }
 0x106   : > { %v2408_v22 = vpop.permute.xlu0 %2407  ;;  %2505 = vst.msk [vmem:[#allocation3 + $0x64] sm:$0xf] %vm2479_vm9, %v2410_v38  ;;  %v427_v13 = vrot.slane %v426_v61, 4  ;;  %v430_v44 = vrot.slane %v428_v62, 4  ;;  %v2007_v19 = vrot.slane %v2005_v48, 5  ;;  %v2010_v20 = vrot.slane %v2008_v57, 6 }
 0x107   : > { %2504 = vst.msk [vmem:[#allocation3 + $0x60] sm:$0xf] %vm2479_vm9, %v2408_v22  ;;  %2421 = vrot.lane.b32.xlu1 %v2246_v27, %s7066_s4  ;;  %v2264_v52 = vsel %vm7283_vm1, %v2255_v17, %v8144_v45  ;;  %v1998_v25 = vrot.slane %v1996_v60, 5  ;;  %v2001_v10 = vrot.slane %v1999_v54, 6  ;;  %v1761_v26 = vld [vmem:[#allocation2 + $0x64] sm:$0xf]  ;;  %v2751_v34 = vsel %vm7366_vm5, %v6241_v14, %v2750_v50 }
 0x108   : > { %2419 = vrot.lane.b32.xlu0 %v2236_v21, %s7066_s4  ;;  %525 = vst.msk [vmem:[#allocation2 + $0xcc] sm:$0xe] %vm479_vm11, %v426_v61  ;;  %v1760_v36 = vld [vmem:[#allocation2 + $0x60] sm:$0xe]  ;;  %v429_v27 = vsel %vm7208_vm12, %v427_v13, %v428_v62  ;;  %v1496_v0 = vrot.slane %v1338_v7, 5  ;;  %v1495_v22 = vrot.slane %v1493_v11, 4  ;;  %v2011_v5 = vor.u32 %v2010_v20, %v2007_v19 }
 0x109   : > { %v2830_v32 = vpop.permute.xlu1 %2829  ;;  %527 = vst.msk [vmem:[#allocation2 + $0xd4] sm:$0x1] %vm186_vm2, %v430_v44  ;;  %v8183_v38 = vld [vmem:[#allocation2 + $0xc4] sm:$0xf]  ;;  %v6214_v16 = vrot.slane %v1336_v58, 9  ;;  %v2017_v23 = vrot.slane %v2015_v59, 5  ;;  %v2754_v9 = vsel %vm7366_vm5, %v2752_v12, %v2753_v24  ;;  %v2002_v28 = vor.u32 %v2001_v10, %v1998_v25 }
 0x10a   : > { %v2828_v43 = vpop.permute.xlu0 %2827  ;;  %2927 = vst.msk [vmem:[#allocation3 + $0x5c] sm:$0xf] %vm2903_vm15, %v2830_v32  ;;  %v2020_v2 = vrot.slane %v2018_v8, 6  ;;  %v1762_v45 = vld [vmem:[#allocation2 + $0x68] sm:$0x3]  ;;  %v2033_v42 = vshrl.u32 %v1761_v26, 16  ;;  %v1497_v29 = vsel %vm7186_vm7, %v1495_v22, %v1496_v0 }
 0x10b   : > { %2926 = vst.msk [vmem:[#allocation3 + $0x58] sm:$0xf] %vm2903_vm15, %v2828_v43  ;;  %1185 = vrot.lane.b32.xlu1 %v886_v3, %s7065_s30  ;;  %v2036_v37 = vshll.u32 %v1761_v26, 16  ;;  %v2024_v3 = vshrl.u32 %v1760_v36, 16  ;;  %v1494_v49 = vsel %vm7186_vm7, %v6214_v16, %v1493_v11  ;;  %v2757_v40 = vrot.slane %v8183_v38, 6 }
 0x10c   : > { %1183 = vrot.lane.b32.xlu0 %v876_v39, %s7065_s30  ;;  %526 = vst.msk [vmem:[#allocation2 + $0xd0] sm:$0xf] %vm170_vm0, %v429_v27  ;;  %v2027_v39 = vshll.u32 %v1760_v36, 16  ;;  %v2021_v32 = vor.u32 %v2020_v2, %v2017_v23  ;;  %v609_v43 = vld [vmem:[#allocation2 + $0x4] sm:$0xf]  ;;  %v2035_v24 = vrot.slane %v2033_v42, 5 }
 0x10d   : > { %v1594_v63 = vpop.permute.xlu1 %1593  ;;  %v2570_v50 = vld [vmem:[#allocation2 + $0xc8] sm:$0x3]  ;;  %v2043_v51 = vshrl.u32 %v1762_v45, 16  ;;  %v2046_v55 = vshll.u32 %v1762_v45, 16  ;;  %v2568_v53 = vld [vmem:[#allocation2 + $0xc0] sm:$0xc] }
 0x10e   : > { %v1592_v4 = vpop.permute.xlu0 %1591  ;;  %1705 = vst.msk [vmem:[#allocation3 + $0x24] sm:$0xf] %vm1695_vm8, %v1594_v63  ;;  %v2038_v56 = vrot.slane %v2036_v37, 6  ;;  %v2026_v14 = vrot.slane %v2024_v3, 5  ;;  %v2029_v17 = vrot.slane %v2027_v39, 6  ;;  %v2760_v57 = vrot.slane %v2570_v50, 6 }
 0x10f   : > { %1704 = vst.msk [vmem:[#allocation3 + $0x20] sm:$0xf] %vm1695_vm8, %v1592_v4  ;;  %1605 = vrot.lane.b32.xlu1 %v1490_v47, %s7064_s29  ;;  %v2003_v47 = vrot.slane %v2002_v28, 4  ;;  %v610_v60 = vld [vmem:[#allocation2 + $0x8] sm:$0x1]  ;;  %v681_v54 = vshll.u32 %v609_v43, 16 }
 0x110   : > { %1603 = vrot.lane.b32.xlu0 %v1487_v18, %s7064_s29  ;;  %v2013_v18 = vrot.slane %v2011_v5, 4  ;;  %v685_v61 = vshrl.u32 %v609_v43, 16  ;;  %v2759_v63 = vrot.slane %v2757_v40, 4  ;;  %v6242_v4 = vrot.slane %v2568_v53, 10  ;;  %v608_v59 = vld [vmem:[#allocation2] sm:$0xf] }
 0x111   : > { %v2374_v21 = vpop.permute.xlu1 %2373  ;;  %v2045_v7 = vrot.slane %v2043_v51, 5  ;;  %v2012_v8 = vsel %vm7283_vm1, %v2003_v47, %v2011_v5  ;;  %v8214_v13 = vor.u32 %v2038_v56, %v2035_v24  ;;  %v2048_v44 = vrot.slane %v2046_v55, 6  ;;  %v8216_v12 = vld [vmem:[#allocation2 + $0x58] sm:$0xf]  ;;  %v8235_v2 = vld [vmem:[#allocation2 + $0x64] sm:$0xf] }
 0x112   : > { %v2372_v31 = vpop.permute.xlu0 %2371  ;;  %v6916_v33 = vld [vmem:[#allocation3 + $0x58] sm:$0xff]   ;;  %2487 = vst.msk [vmem:[#allocation3 + $0x1c] sm:$0xf] %vm2479_vm9, %v2374_v21  ;;  %v2022_v62 = vsel %vm7283_vm1, %v2013_v18, %v2021_v32  ;;  %v8223_v25 = vrot.slane %v681_v54, 5  ;;  %v687_v10 = vrot.slane %v685_v61, 4  ;;  %v691_v26 = vshll.u32 %v610_v60, 16 }
 0x113   : > { %2486 = vst.msk [vmem:[#allocation3 + $0x18] sm:$0xf] %vm2479_vm9, %v2372_v31  ;;  %2425 = vrot.lane.b32.xlu1 %v2274_v6, %s7066_s4  ;;  %6698 = vmatprep.mubr.msk.bf16.mxu1 %vm3108_vm4, %v6916_v33  ;;  %v2030_v6 = vor.u32 %v2029_v17, %v2026_v14  ;;  %v6925_v58 = vld [vmem:[%s9142_s1 + $0x8] ss:$0 sps:$4 sm:$0x33]   ;;  %v672_v36 = vshrl.u32 %v608_v59, 16  ;;  %v2758_v27 = vsel %vm7366_vm5, %v6242_v4, %v2757_v40 }
 0x114   : > { %2423 = vrot.lane.b32.xlu0 %v2264_v52, %s7066_s4  ;;  %6860 = vmatprep.subr.msk.bf16.mxu1 %vm2640_vm3, %v6925_v58  ;;  %v2543_v21 = vld [vmem:[#allocation2 + $0x5c] sm:$0x3]  ;;  %v2694_v31 = vrot.slane %v8216_v12, 6  ;;  %v2541_v33 = vld [vmem:[#allocation2 + $0x54] sm:$0xc]  ;;  %v675_v0 = vshll.u32 %v608_v59, 16  ;;  %v2761_v38 = vsel %vm7366_vm5, %v2759_v63, %v2760_v57  ;;  %v2049_v16 = vor.u32 %v2048_v44, %v2045_v7 }
 0x115   : > { %v2834_v30 = vpop.permute.xlu1 %2833  ;;  %v2041_v22 = vrot.slane %v8214_v13, 4  ;;  %v2031_v23 = vrot.slane %v2030_v6, 4  ;;  %v6926_v42 = vld [vmem:[%s9142_s1 + $0x1c] ss:$0 sps:$4 sm:$0x33]   ;;  %v2697_v37 = vrot.slane %v2543_v21, 6  ;;  %v688_v28 = vor.u32 %v687_v10, %v8223_v25 }
 0x116   : > { %v2832_v35 = vpop.permute.xlu0 %2831  ;;  %2929 = vst.msk [vmem:[#allocation3 + $0x64] sm:$0xf] %vm2903_vm15, %v2834_v30  ;;  %v8247_v3 = vrot.slane %v691_v26, 5  ;;  %v2696_v39 = vrot.slane %v2694_v31, 4  ;;  %v6233_v30 = vrot.slane %v2541_v33, 10  ;;  %v674_v43 = vrot.slane %v672_v36, 4  ;;  %6861 = vmatprep.subr.msk.bf16.mxu0 %vm2640_vm3, %v6926_v42 }
 0x117   : > { %2928 = vst.msk [vmem:[#allocation3 + $0x60] sm:$0xf] %vm2903_vm15, %v2832_v35  ;;  %2845 = vrot.lane.b32.xlu1 %v2754_v9, %s7067_s5  ;;  %v8244_v9 = vld [vmem:[#allocation2 + $0x60] sm:$0xc]  ;;  %v2701_v35 = vrot.slane %v8235_v2, 6  ;;  %v2050_v32 = vsel %vm7283_vm1, %v2041_v22, %v2049_v16  ;;  %v2040_v40 = vsel %vm7283_vm1, %v2031_v23, %v8214_v13  ;;  %v677_v18 = vrot.slane %v675_v0, 5 }
 0x118   : > { %2843 = vrot.lane.b32.xlu0 %v2751_v34, %s7067_s5  ;;  %v8237_v34 = vld [vmem:[#allocation2 + $0x68] sm:$0x3]  ;;  %v8258_v50 = vld [vmem:[#allocation2 + $0x4] sm:$0xf]  ;;  %v1736_v24 = vld [vmem:[#allocation2] sm:$0xe]  ;;  %v2695_v57 = vsel %vm7366_vm5, %v6233_v30, %v2694_v31  ;;  %v2698_v4 = vsel %vm7366_vm5, %v2696_v39, %v2697_v37 }
 0x119   : > { %v2378_v48 = vpop.permute.xlu1 %2377  ;;  %v6234_v53 = vrot.slane %v8244_v9, 10  ;;  %v3460_v17 = vsel %vm2640_vm3, %v6925_v58, 0  ;;  %v2703_v60 = vrot.slane %v2701_v35, 4  ;;  %v8270_v54 = vrot.slane %v688_v28, 4  ;;  %v8272_v61 = vld [vmem:[#allocation2 + $0x8] sm:$0x1] }
 0x11a   : > { %v2376_v11 = vpop.permute.xlu0 %2375  ;;  %2489 = vst.msk [vmem:[#allocation3 + $0x24] sm:$0xf] %vm2479_vm9, %v2378_v48  ;;  %v3797_v48 = vsel %vm2640_vm3, %v6926_v42, 0  ;;  %v528_v63 = vld [vmem:[#allocation2] sm:$0xf]  ;;  %v678_v7 = vor.u32 %v677_v18, %v674_v43  ;;  %v1800_v13 = vshrl.u32 %v1736_v24, 16  ;;  %6711 = vmatpush3.bf16.msra.mxu1 %v3460_v17 }
 0x11b   : > { %2488 = vst.msk [vmem:[#allocation3 + $0x20] sm:$0xf] %vm2479_vm9, %v2376_v11  ;;  %1609 = vrot.lane.b32.xlu1 %v1497_v29, %s7064_s29  ;;  %v2704_v29 = vrot.slane %v8237_v34, 6  ;;  %v529_v11 = vld [vmem:[#allocation2 + $0x4] sm:$0xf]  ;;  %v1803_v44 = vshll.u32 %v1736_v24, 16  ;;  %6747 = vmatpush3.bf16.msra.mxu0 %v3797_v48  ;;  %v2702_v21 = vsel %vm7366_vm5, %v6234_v53, %v2701_v35 }
 0x11c   : > { %1607 = vrot.lane.b32.xlu0 %v1494_v49, %s7064_s29  ;;  %v1737_v49 = vld [vmem:[#allocation2 + $0x4] sm:$0xf]  ;;  %569 = vst.msk [vmem:[#allocation3 + $0x4] sm:$0xf] %vm170_vm0, %v529_v11  ;;  %v8278_v59 = vld [vmem:[#allocation2] sm:$0xe] }
 0x11d   : > { %v2798_v19 = vpop.permute.xlu1 %2797  ;;  %v1809_v56 = vshrl.u32 %v1737_v49, 16  ;;  %v1812_v14 = vshll.u32 %v1737_v49, 16  ;;  %568 = vst.msk [vmem:[#allocation3] sm:$0xf] %vm170_vm0, %v528_v63  ;;  %v660_v10 = vld [vmem:[#allocation2 + $0xd0] sm:$0xf] }
 0x11e   : > { %v2796_v20 = vpop.permute.xlu0 %2795  ;;  %v6917_v52 = vld [vmem:[#allocation3 + $0x60] sm:$0xff]   ;;  %2911 = vst.msk [vmem:[#allocation3 + $0x1c] sm:$0xf] %vm2903_vm15, %v2798_v19  ;;  %v1437_v19 = vrot.slane %v8258_v50, 5  ;;  %v8290_v0 = vld [vmem:[#allocation2 + $0x4] sm:$0xf] }
 0x11f   : > { %2910 = vst.msk [vmem:[#allocation3 + $0x18] sm:$0xf] %vm2903_vm15, %v2796_v20  ;;  %2389 = vrot.lane.b32.xlu1 %v2022_v62, %s7066_s4  ;;  %6699 = vmatmul.mubr.msk.bf16.gmra.mxu1 %vm3108_vm4, %v6917_v52  ;;  %v659_v62 = vld [vmem:[#allocation2 + $0xcc] sm:$0xf]  ;;  %v1811_v20 = vrot.slane %v1809_v56, 5  ;;  %v1814_v52 = vrot.slane %v1812_v14, 6 }
 0x120   : > { %2387 = vrot.lane.b32.xlu0 %v2012_v8, %s7066_s4  ;;  %v1738_v8 = vld [vmem:[#allocation2 + $0x8] sm:$0x3]  ;;  %v1080_v26 = vshrl.u32 %v659_v62, 16  ;;  %v1083_v36 = vshll.u32 %v659_v62, 16  ;;  %v1440_v22 = vrot.slane %v8272_v61, 5  ;;  %v1802_v16 = vrot.slane %v1800_v13, 5 }
 0x121   : > { %v2802_v5 = vpop.permute.xlu1 %2801  ;;  %v1819_v31 = vshrl.u32 %v1738_v8, 16  ;;  %v1822_v33 = vshll.u32 %v1738_v8, 16  ;;  %v1805_v23 = vrot.slane %v1803_v44, 6  ;;  %v8294_v2 = vld [vmem:[#allocation2 + $0x8] sm:$0x3]  ;;  %v1089_v42 = vshll.u32 %v660_v10, 16 }
 0x122   : > { %v2800_v45 = vpop.permute.xlu0 %2799  ;;  %2913 = vst.msk [vmem:[#allocation3 + $0x24] sm:$0xf] %vm2903_vm15, %v2802_v5  ;;  %v1093_v37 = vshrl.u32 %v660_v10, 16  ;;  %v663_v9 = vld [vmem:[#allocation2 + $0xdc] sm:$0xf]  ;;  %v6929_v28 = vld [vmem:[%s9142_s1] sm:$0xff]   ;;  %v8302_v30 = vor.u32 %v1814_v52, %v1811_v20 }
 0x123   : > { %2912 = vst.msk [vmem:[#allocation3 + $0x20] sm:$0xf] %vm2903_vm15, %v2800_v45  ;;  %2849 = vrot.lane.b32.xlu1 %v2761_v38, %s7067_s5  ;;  %v679_v38 = vrot.slane %v678_v7, 4  ;;  %v6206_v45 = vrot.slane %v8278_v59, 9  ;;  %v1439_v39 = vrot.slane %v1437_v19, 4  ;;  %v1085_v49 = vrot.slane %v1083_v36, 5  ;;  %6712 = vmatprep.subr.bf16.mxu1 %v6929_v28 }
 0x124   : > { %2847 = vrot.lane.b32.xlu0 %v2758_v27, %s7067_s5  ;;  %v2705_v27 = vsel %vm7366_vm5, %v2703_v60, %v2704_v29  ;;  %v8304_v35 = vld [vmem:[#allocation2] sm:$0xc]  ;;  %v1082_v29 = vrot.slane %v1080_v26, 4  ;;  %v1824_v43 = vrot.slane %v1822_v33, 6  ;;  %v2645_v18 = vrot.slane %v8290_v0, 6  ;;  %v6932_v24 = vld [vmem:[%s9142_s1 + $0x14] sm:$0xff]   ;;  %6713 = vmatpush3.bf16.msra.mxu1 %v6929_v28 }
 0x125   : > { %v1206_v51 = vpop.permute.xlu1 %1205  ;;  %v661_v50 = vld [vmem:[#allocation2 + $0xd4] sm:$0x1]  ;;  %v8320_v53 = vld [vmem:[#allocation2 + $0xd0] sm:$0xf]  ;;  %v6226_v48 = vrot.slane %v8304_v35, 10  ;;  %v8323_v11 = vrot.slane %v1089_v42, 5  ;;  %6748 = vmatprep.subr.bf16.mxu0 %v6932_v24  ;;  %v1441_v7 = vsel %vm7186_vm7, %v1439_v39, %v1440_v22 }
 0x126   : > { %v1204_v55 = vpop.permute.xlu0 %1203  ;;  %v6918_v47 = vld [vmem:[#allocation3 + $0x18] sm:$0xff]   ;;  %1299 = vst.msk [vmem:[#allocation3 + $0x6c] sm:$0xf] %vm1271_vm6, %v1206_v51  ;;  %v684_v51 = vsel %vm7216_vm13, %v679_v38, %v8223_v25  ;;  %v1788_v56 = vld [vmem:[#allocation2 + $0xd0] sm:$0xf]  ;;  %v1117_v60 = vshrl.u32 %v663_v9, 16  ;;  %v1438_v25 = vsel %vm7186_vm7, %v6206_v45, %v1437_v19  ;;  %v1086_v62 = vor.u32 %v1085_v49, %v1082_v29  ;;  %6749 = vmatpush3.bf16.msra.mxu0 %v6932_v24 }
 0x127   : > { %1298 = vst.msk [vmem:[#allocation3 + $0x68] sm:$0xf] %vm1271_vm6, %v1204_v55  ;;  %2393 = vrot.lane.b32.xlu1 %v2050_v32, %s7066_s4  ;;  %6682 = vmatprep.mubr.msk.bf16.mxu0 %vm3108_vm4, %v6918_v47  ;;  %v694_v32 = vsel %vm7216_vm13, %v8270_v54, %v8247_v3  ;;  %v1806_v55 = vor.u32 %v1805_v23, %v1802_v16  ;;  %v2648_v47 = vrot.slane %v8294_v2, 6  ;;  %v1113_v3 = vshll.u32 %v663_v9, 16  ;;  %v8330_v63 = vld [vmem:[#allocation2 + $0xcc] sm:$0xe] }
 0x128   : > { %2391 = vrot.lane.b32.xlu0 %v2040_v40, %s7066_s4  ;;  %v1821_v40 = vrot.slane %v1819_v31, 5  ;;  %v1817_v54 = vrot.slane %v8302_v30, 4  ;;  %v1099_v61 = vshll.u32 %v661_v50, 16  ;;  %v8336_v8 = vld [vmem:[#allocation2 + $0xd4] sm:$0x1]  ;;  %v1556_v13 = vrot.slane %v8320_v53, 5 }
 0x129   : > { %v1210_v6 = vpop.permute.xlu1 %1209  ;;  %v1789_v44 = vld [vmem:[#allocation2 + $0xd4] sm:$0x3]  ;;  %v2288_v19 = vshll.u32 %v1788_v56, 16  ;;  %v8341_v20 = vrot.slane %v1113_v3, 5  ;;  %v6223_v36 = vrot.slane %v8330_v63, 9  ;;  %v1087_v33 = vrot.slane %v1086_v62, 4 }
 0x12a   : > { %v1208_v12 = vpop.permute.xlu0 %1207  ;;  %v6919_v58 = vld [vmem:[#allocation3 + $0x20] sm:$0xff]   ;;  %1301 = vst.msk [vmem:[#allocation3 + $0x74] sm:$0xf] %vm1271_vm6, %v1210_v6  ;;  %v1825_v59 = vor.u32 %v1824_v43, %v1821_v40  ;;  %v2285_v6 = vshrl.u32 %v1788_v56, 16  ;;  %v1101_v31 = vrot.slane %v1099_v61, 5  ;;  %v1559_v38 = vrot.slane %v8336_v8, 5 }
 0x12b   : > { %1300 = vst.msk [vmem:[#allocation3 + $0x70] sm:$0xf] %vm1271_vm6, %v1208_v12  ;;  %2813 = vrot.lane.b32.xlu1 %v2698_v4, %s7067_s5  ;;  %6683 = vmatmul.mubr.msk.bf16.gmra.mxu0 %vm3108_vm4, %v6919_v58  ;;  %v1787_v4 = vld [vmem:[#allocation2 + $0xcc] sm:$0xe]  ;;  %v1807_v12 = vrot.slane %v1806_v55, 4  ;;  %v2647_v58 = vrot.slane %v2645_v18, 4  ;;  %v2646_v29 = vsel %vm7366_vm5, %v6226_v48, %v2645_v18  ;;  %v1092_v18 = vsel %vm7216_vm13, %v1087_v33, %v8323_v11 }
 0x12c   : > { %2811 = vrot.lane.b32.xlu0 %v2695_v57, %s7067_s5  ;;  %v1095_v57 = vrot.slane %v1093_v37, 4  ;;  %v2295_v22 = vshrl.u32 %v1789_v44, 16  ;;  %v1558_v16 = vrot.slane %v1556_v13, 4  ;;  %v2287_v23 = vrot.slane %v2285_v6, 5  ;;  %v6937_v35 = vld [vmem:[%s9142_s1 + $0x24] ss:$0 sps:$4 sm:$0xff]  }
 0x12d   : > { %v1630_v34 = vpop.permute.xlu1 %1629  ;;  %v2290_v45 = vrot.slane %v2288_v19, 6  ;;  %v2279_v42 = vshll.u32 %v1787_v4, 16  ;;  %v2298_v39 = vshll.u32 %v1789_v44, 16  ;;  %v662_v40 = vld [vmem:[#allocation2 + $0xd8] sm:$0xf]  ;;  %v8374_v24 = vrot.slane %v6937_v35, 2 }
 0x12e   : > { %v1628_v5 = vpop.permute.xlu0 %1627  ;;  %1723 = vst.msk [vmem:[#allocation3 + $0x6c] sm:$0xf] %vm1695_vm8, %v1630_v34  ;;  %v1096_v26 = vor.u32 %v1095_v57, %v8323_v11  ;;  %v1826_v34 = vsel %vm7283_vm1, %v1817_v54, %v1825_v59  ;;  %v2572_v0 = vld [vmem:[#allocation2 + $0xd0] sm:$0xf]  ;;  %v664_v2 = vld [vmem:[#allocation2 + $0xe0] sm:$0x1] }
 0x12f   : > { %1722 = vst.msk [vmem:[#allocation3 + $0x68] sm:$0xf] %vm1695_vm8, %v1628_v5  ;;  %2817 = vrot.lane.b32.xlu1 %v2705_v27, %s7067_s5  ;;  %v2276_v27 = vshrl.u32 %v1787_v4, 16  ;;  %v1816_v5 = vsel %vm7283_vm1, %v1807_v12, %v8302_v30  ;;  %v2649_v30 = vsel %vm7366_vm5, %v2647_v58, %v2648_v47  ;;  %v2297_v55 = vrot.slane %v2295_v22, 5  ;;  %6862 = vmatprep.subr.msk.bf16.mxu1 %vm2640_vm3, %v8374_v24  ;;  %v2571_v11 = vld [vmem:[#allocation2 + $0xcc] sm:$0xc] }
 0x130   : > { %2815 = vrot.lane.b32.xlu0 %v2702_v21, %s7067_s5  ;;  %v8345_v21 = vrot.slane %v1117_v60, 4  ;;  %v1097_v28 = vrot.slane %v1096_v26, 4  ;;  %v2300_v47 = vrot.slane %v2298_v39, 6  ;;  %v2291_v3 = vor.u32 %v2290_v45, %v2287_v23  ;;  %v666_v63 = vld [vmem:[#allocation2 + $0xe8] sm:$0xf] }
 0x131   : > { %v1174_v14 = vpop.permute.xlu1 %1173  ;;  %v2278_v49 = vrot.slane %v2276_v27, 5  ;;  %v1104_v57 = vshrl.u32 %v662_v40, 16  ;;  %v1107_v60 = vshll.u32 %v662_v40, 16  ;;  %v2764_v54 = vrot.slane %v2572_v0, 6  ;;  %v665_v4 = vld [vmem:[#allocation2 + $0xe4] sm:$0xf] }
 0x132   : > { %v1172_v17 = vpop.permute.xlu0 %1171  ;;  %1283 = vst.msk [vmem:[#allocation3 + $0x2c] sm:$0xf] %vm1271_vm6, %v1174_v14  ;;  %v1102_v56 = vsel %vm7216_vm13, %v1097_v28, %v1101_v31  ;;  %v1120_v61 = vor.u32 %v8345_v21, %v8341_v20  ;;  %v1123_v62 = vshll.u32 %v664_v2, 16  ;;  %v2293_v59 = vrot.slane %v2291_v3, 4  ;;  %v2573_v6 = vld [vmem:[#allocation2 + $0xd4] sm:$0x3] }
 0x133   : > { %1282 = vst.msk [vmem:[#allocation3 + $0x28] sm:$0xf] %vm1271_vm6, %v1172_v17  ;;  %1153 = vrot.lane.b32.xlu1 %v694_v32, %s7065_s30  ;;  %v2281_v32 = vrot.slane %v2279_v42, 6  ;;  %v2301_v8 = vor.u32 %v2300_v47, %v2297_v55  ;;  %v6243_v53 = vrot.slane %v2571_v11, 10  ;;  %v1106_v19 = vrot.slane %v1104_v57, 4 }
 0x134   : > { %1151 = vrot.lane.b32.xlu0 %v684_v51, %s7065_s30  ;;  %v8379_v51 = vld [vmem:[%s9142_s1 + $0x30] ss:$0 sps:$4 sm:$0x33]   ;;  %v1128_v26 = vshrl.u32 %v665_v4, 16  ;;  %v2766_v27 = vrot.slane %v2764_v54, 4  ;;  %v2767_v21 = vrot.slane %v2573_v6, 6 }
 0x135   : > { %v1634_v52 = vpop.permute.xlu1 %1633  ;;  %v2282_v14 = vor.u32 %v2281_v32, %v2278_v49  ;;  %6863 = vmatprep.subr.msk.bf16.mxu0 %vm2640_vm3, %v8379_v51  ;;  %v2302_v31 = vsel %vm7283_vm1, %v2293_v59, %v2301_v8  ;;  %v1125_v22 = vrot.slane %v1123_v62, 5  ;;  %v1791_v23 = vld [vmem:[#allocation2 + $0xdc] sm:$0xf]  ;;  %v2765_v45 = vsel %vm7366_vm5, %v6243_v53, %v2764_v54  ;;  %v1790_v28 = vld [vmem:[#allocation2 + $0xd8] sm:$0xe] }
 0x136   : > { %v1632_v10 = vpop.permute.xlu0 %1631  ;;  %1725 = vst.msk [vmem:[#allocation3 + $0x74] sm:$0xf] %vm1695_vm8, %v1634_v52  ;;  %v1109_v52 = vrot.slane %v1107_v60, 5  ;;  %v2768_v49 = vsel %vm7366_vm5, %v2766_v27, %v2767_v21  ;;  %v1368_v32 = vld [vmem:[#allocation2 + $0xe0] sm:$0x1]  ;;  %v2304_v47 = vshrl.u32 %v1790_v28, 16 }
 0x137   : > { %1724 = vst.msk [vmem:[#allocation3 + $0x70] sm:$0xf] %vm1695_vm8, %v1632_v10  ;;  %1577 = vrot.lane.b32.xlu1 %v1441_v7, %s7064_s29  ;;  %v1560_v7 = vsel %vm7186_vm7, %v1558_v16, %v1559_v38  ;;  %v2283_v44 = vrot.slane %v2282_v14, 4  ;;  %v1141_v10 = vshrl.u32 %v666_v63, 16  ;;  %v1121_v38 = vrot.slane %v1120_v61, 4 }
 0x138   : > { %1575 = vrot.lane.b32.xlu0 %v1438_v25, %s7064_s29  ;;  %v1557_v25 = vsel %vm7186_vm7, %v6223_v36, %v1556_v13  ;;  %v1137_v13 = vshll.u32 %v666_v63, 16  ;;  %v1131_v36 = vshll.u32 %v665_v4, 16  ;;  %v8414_v16 = vld [vmem:[#allocation2 + $0xdc] sm:$0xf]  ;;  %v1110_v42 = vor.u32 %v1109_v52, %v1106_v19  ;;  %v1366_v0 = vld [vmem:[#allocation2 + $0xd8] sm:$0xe] }
 0x139   : > { %v2414_v37 = vpop.permute.xlu1 %2413  ;;  %v2292_v33 = vsel %vm7283_vm1, %v2283_v44, %v2291_v3  ;;  %v1143_v35 = vrot.slane %v1141_v10, 4  ;;  %v1563_v40 = vrot.slane %v8414_v16, 5  ;;  %v1566_v57 = vrot.slane %v1368_v32, 5  ;;  %v8437_v53 = vld [vmem:[#allocation2 + $0xe8] sm:$0xf] }
 0x13a   : > { %v2412_v9 = vpop.permute.xlu0 %2411  ;;  %2507 = vst.msk [vmem:[#allocation3 + $0x6c] sm:$0xf] %vm2479_vm9, %v2414_v37  ;;  %v667_v37 = vld [vmem:[#allocation2 + $0xec] sm:$0x1]  ;;  %v8420_v39 = vrot.slane %v1137_v13, 5  ;;  %v1111_v14 = vrot.slane %v1110_v42, 4 }
 0x13b   : > { %2506 = vst.msk [vmem:[#allocation3 + $0x68] sm:$0xf] %vm2479_vm9, %v2412_v9  ;;  %2361 = vrot.lane.b32.xlu1 %v1826_v34, %s7066_s4  ;;  %v1792_v9 = vld [vmem:[#allocation2 + $0xe0] sm:$0x3]  ;;  %v1147_v2 = vshll.u32 %v667_v37, 16  ;;  %v6224_v54 = vrot.slane %v1366_v0, 9 }
 0x13c   : > { %2359 = vrot.lane.b32.xlu0 %v1816_v5, %s7066_s4  ;;  %v2326_v55 = vshll.u32 %v1792_v9, 16  ;;  %v1144_v60 = vor.u32 %v1143_v35, %v8420_v39  ;;  %v2306_v59 = vrot.slane %v2304_v47, 5  ;;  %v563_v10 = vld [vmem:[#allocation2 + $0xd0] sm:$0xf]  ;;  %v1570_v16 = vrot.slane %v8437_v53, 5 }
 0x13d   : > { %v1178_v43 = vpop.permute.xlu1 %1177  ;;  %v1149_v63 = vrot.slane %v1147_v2, 5  ;;  %603 = vst.msk [vmem:[#allocation3 + $0x8c] sm:$0xf] %vm170_vm0, %v563_v10  ;;  %v1795_v37 = vld [vmem:[#allocation2 + $0xec] sm:$0x3]  ;;  %vm6006_vm2 = vcmask 1042434  }
 0x13e   : > { %v1176_v50 = vpop.permute.xlu0 %1175  ;;  %1285 = vst.msk [vmem:[#allocation3 + $0x34] sm:$0xf] %vm1271_vm6, %v1178_v43  ;;  %v2313_v43 = vshrl.u32 %v1791_v23, 16  ;;  %v1145_v19 = vrot.slane %v1144_v60, 4  ;;  %v2351_v47 = vshrl.u32 %v1795_v37, 16  ;;  %vm6012_vm11 = vcmask 1045509  }
 0x13f   : > { %1284 = vst.msk [vmem:[#allocation3 + $0x30] sm:$0xf] %vm1271_vm6, %v1176_v50  ;;  %2785 = vrot.lane.b32.xlu1 %v2649_v30, %s7067_s5  ;;  %v1130_v30 = vrot.slane %v1128_v26, 4  ;;  %v2316_v50 = vshll.u32 %v1791_v23, 16  ;;  %v562_v26 = vld [vmem:[#allocation2 + $0xcc] sm:$0xf] }
 0x140   : > { %2783 = vrot.lane.b32.xlu0 %v2646_v29, %s7067_s5  ;;  %v1133_v29 = vrot.slane %v1131_v36, 5  ;;  %v2315_v61 = vrot.slane %v2313_v43, 5  ;;  %v1794_v36 = vld [vmem:[#allocation2 + $0xe8] sm:$0xf]  ;;  %602 = vst.msk [vmem:[#allocation3 + $0x88] sm:$0xf] %vm170_vm0, %v562_v26  ;;  %v1150_v42 = vsel %vm7216_vm13, %v1145_v19, %v1149_v63 }
 0x141   : > { %v1598_v17 = vpop.permute.xlu1 %1597  ;;  %v2318_v62 = vrot.slane %v2316_v50, 6  ;;  %v1572_v43 = vrot.slane %v1570_v16, 4  ;;  %vm6014_vm12 = vcmask 1046534  }
 0x142   : > { %v1596_v48 = vpop.permute.xlu0 %1595  ;;  %1707 = vst.msk [vmem:[#allocation3 + $0x2c] sm:$0xf] %vm1695_vm8, %v1598_v17  ;;  %v2307_v17 = vshll.u32 %v1790_v28, 16  ;;  %v1134_v11 = vor.u32 %v1133_v29, %v1130_v30  ;;  %v2344_v28 = vshll.u32 %v1794_v36, 16 }
 0x143   : > { %1706 = vst.msk [vmem:[#allocation3 + $0x28] sm:$0xf] %vm1695_vm8, %v1596_v48  ;;  %1221 = vrot.lane.b32.xlu1 %v1102_v56, %s7065_s30  ;;  %v1126_v48 = vsel %vm7216_vm13, %v1121_v38, %v1125_v22  ;;  %v2319_v13 = vor.u32 %v2318_v62, %v2315_v61  ;;  %v1793_v38 = vld [vmem:[#allocation2 + $0xe4] sm:$0xe]  ;;  %v1371_v22 = vld [vmem:[#allocation2 + $0xec] sm:$0x1] }
 0x144   : > { %1219 = vrot.lane.b32.xlu0 %v1092_v18, %s7065_s30  ;;  %v2323_v18 = vshrl.u32 %v1792_v9, 16  ;;  %v1135_v52 = vrot.slane %v1134_v11, 4  ;;  %v2341_v9 = vshrl.u32 %v1794_v36, 16  ;;  %v2332_v35 = vshrl.u32 %v1793_v38, 16 }
 0x145   : > { %v2418_v12 = vpop.permute.xlu1 %2417  ;;  %v2321_v23 = vrot.slane %v2319_v13, 4  ;;  %v1573_v50 = vrot.slane %v1371_v22, 5  ;;  %v6244_v61 = vrot.slane %v2574_v41, 10 }
 0x146   : > { %v2416_v58 = vpop.permute.xlu0 %2415  ;;  %2509 = vst.msk [vmem:[#allocation3 + $0x74] sm:$0xf] %vm2479_vm9, %v2418_v12  ;;  %v2325_v4 = vrot.slane %v2323_v18, 5  ;;  %v1116_v12 = vsel %vm7216_vm13, %v1111_v14, %v8341_v20  ;;  %v2576_v18 = vld [vmem:[#allocation2 + $0xe0] sm:$0x3]  ;;  %v2334_v14 = vrot.slane %v2332_v35, 5 }
 0x147   : > { %2508 = vst.msk [vmem:[#allocation3 + $0x70] sm:$0xf] %vm2479_vm9, %v2416_v58  ;;  %1645 = vrot.lane.b32.xlu1 %v1560_v7, %s7064_s29  ;;  %v2328_v7 = vrot.slane %v2326_v55, 6  ;;  %v2309_v58 = vrot.slane %v2307_v17, 6  ;;  %v1574_v62 = vsel %vm7186_vm7, %v1572_v43, %v1573_v50 }
 0x148   : > { %1643 = vrot.lane.b32.xlu0 %v1557_v25, %s7064_s29  ;;  %v1565_v25 = vrot.slane %v1563_v40, 4 }
 0x149   : > { %v2838_v34 = vpop.permute.xlu1 %2837 }
 0x14a   : > { %v2836_v5 = vpop.permute.xlu0 %2835  ;;  %2931 = vst.msk [vmem:[#allocation3 + $0x6c] sm:$0xf] %vm2903_vm15, %v2838_v34  ;;  %v1567_v20 = vsel %vm7186_vm7, %v1565_v25, %v1566_v57  ;;  %v2329_v34 = vor.u32 %v2328_v7, %v2325_v4  ;;  %v2774_v25 = vrot.slane %v2576_v18, 6  ;;  %v2353_v4 = vrot.slane %v2351_v47, 5 }
 0x14b   : > { %2930 = vst.msk [vmem:[#allocation3 + $0x68] sm:$0xf] %vm2903_vm15, %v2836_v5  ;;  %2429 = vrot.lane.b32.xlu1 %v2302_v31, %s7066_s4  ;;  %v1564_v31 = vsel %vm7186_vm7, %v6224_v54, %v1563_v40  ;;  %v1369_v5 = vld [vmem:[#allocation2 + $0xe4] sm:$0xe]  ;;  %v2335_v40 = vshll.u32 %v1793_v38, 16 }
 0x14c   : > { %2427 = vrot.lane.b32.xlu0 %v2292_v33, %s7066_s4  ;;  %v2310_v33 = vor.u32 %v2309_v58, %v2306_v59  ;;  %v2330_v0 = vsel %vm7283_vm1, %v2321_v23, %v2329_v34  ;;  %v6225_v2 = vrot.slane %v1369_v5, 9 }
 0x14d   : > { %v1602_v56 = vpop.permute.xlu1 %1601  ;;  %v2337_v11 = vrot.slane %v2335_v40, 6 }
 0x14e   : > { %v1600_v3 = vpop.permute.xlu0 %1599  ;;  %1709 = vst.msk [vmem:[#allocation3 + $0x34] sm:$0xf] %vm1695_vm8, %v1602_v56  ;;  %v2311_v32 = vrot.slane %v2310_v33, 4  ;;  %v2346_v56 = vrot.slane %v2344_v28, 6 }
 0x14f   : > { %1708 = vst.msk [vmem:[#allocation3 + $0x30] sm:$0xf] %vm1695_vm8, %v1600_v3  ;;  %2853 = vrot.lane.b32.xlu1 %v2768_v49, %s7067_s5  ;;  %v1140_v49 = vsel %vm7216_vm13, %v1135_v52, %v8420_v39  ;;  %v2343_v39 = vrot.slane %v2341_v9, 5  ;;  %v2354_v3 = vshll.u32 %v1795_v37, 16  ;;  %v2579_v52 = vld [vmem:[#allocation2 + $0xec] sm:$0x3] }
 0x150   : > { %2851 = vrot.lane.b32.xlu0 %v2765_v45, %s7067_s5  ;;  %v8454_v45 = vld [vmem:[#allocation2 + $0xdc] sm:$0xf]  ;;  %v2320_v60 = vsel %vm7283_vm1, %v2311_v32, %v2319_v13  ;;  %v2781_v33 = vrot.slane %v2579_v52, 6  ;;  %vm6016_vm13 = vcmask 1047559  }
 0x151   : > { %v2382_v8 = vpop.permute.xlu1 %2381  ;;  %v2771_v55 = vrot.slane %v8454_v45, 6  ;;  %v2347_v63 = vor.u32 %v2346_v56, %v2343_v39  ;;  %v2356_v7 = vrot.slane %v2354_v3, 6  ;;  %v567_v39 = vld [vmem:[#allocation2 + $0xe8] sm:$0xf]  ;;  %v566_v56 = vld [vmem:[#allocation2 + $0xe4] sm:$0xf] }
 0x152   : > { %v2380_v44 = vpop.permute.xlu0 %2379  ;;  %v6920_v6 = vld [vmem:[#allocation3 + $0x68] sm:$0xff]   ;;  %2491 = vst.msk [vmem:[#allocation3 + $0x2c] sm:$0xf] %vm2479_vm9, %v2382_v8 }
 0x153   : > { %2490 = vst.msk [vmem:[#allocation3 + $0x28] sm:$0xf] %vm2479_vm9, %v2380_v44  ;;  %6702 = vmatprep.mubr.msk.bf16.mxu1 %vm3108_vm4, %v6920_v6  ;;  %1225 = vrot.lane.b32.xlu1 %v1126_v48, %s7065_s30  ;;  %v2773_v54 = vrot.slane %v2771_v55, 4  ;;  %v1571_v44 = vsel %vm7186_vm7, %v6225_v2, %v1570_v16  ;;  %v2338_v6 = vor.u32 %v2337_v11, %v2334_v14  ;;  %v2349_v53 = vrot.slane %v2347_v63, 4  ;;  %v564_v2 = vld [vmem:[#allocation2 + $0xd8] sm:$0xf] }
 0x154   : > { %1223 = vrot.lane.b32.xlu0 %v1116_v12, %s7065_s30  ;;  %v2578_v12 = vld [vmem:[#allocation2 + $0xe8] sm:$0xf]  ;;  %v2357_v19 = vor.u32 %v2356_v7, %v2353_v4  ;;  %604 = vst.msk [vmem:[#allocation3 + $0x90] sm:$0xf] %vm170_vm0, %v564_v2  ;;  %607 = vst.msk [vmem:[#allocation3 + $0x9c] sm:$0xf] %vm170_vm0, %v567_v39 }
 0x155   : > { %v2842_v27 = vpop.permute.xlu1 %2841  ;;  %v2775_v58 = vsel %vm7366_vm5, %v2773_v54, %v2774_v25  ;;  %v2778_v13 = vrot.slane %v2578_v12, 6  ;;  %v2339_v36 = vrot.slane %v2338_v6, 4  ;;  %606 = vst.msk [vmem:[#allocation3 + $0x98] sm:$0xf] %vm170_vm0, %v566_v56  ;;  %v6931_v12 = vld [vmem:[#allocation3 + $0x10] sm:$0xff]   ;;  %vm6008_vm7 = vcmask 1043459  }
 0x156   : > { %v2840_v21 = vpop.permute.xlu0 %2839  ;;  %2933 = vst.msk [vmem:[#allocation3 + $0x74] sm:$0xf] %vm2903_vm15, %v2842_v27  ;;  %v2577_v27 = vld [vmem:[#allocation2 + $0xe4] sm:$0xc] }
 0x157   : > { %2932 = vst.msk [vmem:[#allocation3 + $0x70] sm:$0xf] %vm2903_vm15, %v2840_v21  ;;  %1649 = vrot.lane.b32.xlu1 %v1567_v20, %s7064_s29  ;;  %v2772_v20 = vsel %vm7366_vm5, %v6244_v61, %v2771_v55  ;;  %v2358_v21 = vsel %vm7283_vm1, %v2349_v53, %v2357_v19  ;;  %v2348_v23 = vsel %vm7283_vm1, %v2339_v36, %v2347_v63  ;;  %v6245_v34 = vrot.slane %v2577_v27, 10 }
 0x158   : > { %1647 = vrot.lane.b32.xlu0 %v1564_v31, %s7064_s29  ;;  %v2780_v31 = vrot.slane %v2778_v13, 4 }
 0x159   : > { %v2386_v30 = vpop.permute.xlu1 %2385  ;;  %v2779_v15 = vsel %vm7366_vm5, %v6245_v34, %v2778_v13  ;;  %v6933_v13 = vld [vmem:[#allocation3 + $0x18] sm:$0xff]   ;;  %v6940_v34 = vld [vmem:[#allocation3 + $0x10] sm:$0xff]  }
 0x15a   : > { %v2384_v29 = vpop.permute.xlu0 %2383  ;;  %2493 = vst.msk [vmem:[#allocation3 + $0x34] sm:$0xf] %vm2479_vm9, %v2386_v30  ;;  %v2782_v5 = vsel %vm7366_vm5, %v2780_v31, %v2781_v33 }
 0x15b   : > { %2492 = vst.msk [vmem:[#allocation3 + $0x30] sm:$0xf] %vm2479_vm9, %v2384_v29  ;;  %1229 = vrot.lane.b32.xlu1 %v1150_v42, %s7065_s30 }
 0x15c   : > { %1227 = vrot.lane.b32.xlu0 %v1140_v49, %s7065_s30 }
 0x15d   : > { %v2806_v17 = vpop.permute.xlu1 %2805 }
 0x15e   : > { %v2804_v48 = vpop.permute.xlu0 %2803  ;;  %v6921_v57 = vld [vmem:[#allocation3 + $0x70] sm:$0xff]   ;;  %2915 = vst.msk [vmem:[#allocation3 + $0x2c] sm:$0xf] %vm2903_vm15, %v2806_v17 }
 0x15f   : > { %2914 = vst.msk [vmem:[#allocation3 + $0x28] sm:$0xf] %vm2903_vm15, %v2804_v48  ;;  %6703 = vmatmul.mubr.msk.bf16.gmra.mxu1 %vm3108_vm4, %v6921_v57  ;;  %2433 = vrot.lane.b32.xlu1 %v2330_v0, %s7066_s4  ;;  %v565_v0 = vld [vmem:[#allocation2 + $0xdc] sm:$0xf] }
 0x160   : > { %2431 = vrot.lane.b32.xlu0 %v2320_v60, %s7066_s4  ;;  %605 = vst.msk [vmem:[#allocation3 + $0x94] sm:$0xf] %vm170_vm0, %v565_v0  ;;  %vm6004_vm0 = vcmask 1041409  }
 0x161   : > { %v2810_v59 = vpop.permute.xlu1 %2809 }
 0x162   : > { %v2808_v8 = vpop.permute.xlu0 %2807  ;;  %2917 = vst.msk [vmem:[#allocation3 + $0x34] sm:$0xf] %vm2903_vm15, %v2810_v59 }
 0x163   : > { %2916 = vst.msk [vmem:[#allocation3 + $0x30] sm:$0xf] %vm2903_vm15, %v2808_v8  ;;  %1653 = vrot.lane.b32.xlu1 %v1574_v62, %s7064_s29 }
 0x164   : > { %1651 = vrot.lane.b32.xlu0 %v1571_v44, %s7064_s29  ;;  %s7069_s29 = smov [#allocation4]  }
 0x165   : > { %v1214_v10 = vpop.permute.xlu1 %1213 }
 0x166   : > { %v1212_v1 = vpop.permute.xlu0 %1211  ;;  %v6922_v26 = vld [vmem:[#allocation3 + $0x28] sm:$0xff]   ;;  %1303 = vst.msk [vmem:[#allocation3 + $0x7c] sm:$0xf] %vm1271_vm6, %v1214_v10  ;;  %v4538_v10 = vsel %vm2640_vm3, %v8379_v51, 0 }
 0x167   : > { %1302 = vst.msk [vmem:[#allocation3 + $0x78] sm:$0xf] %vm1271_vm6, %v1212_v1  ;;  %6686 = vmatprep.mubr.msk.bf16.mxu0 %vm3108_vm4, %v6922_v26  ;;  %2857 = vrot.lane.b32.xlu1 %v2775_v58, %s7067_s5  ;;  %v6959_v1 = vld [vmem:[%s9142_s1 + $0x28] sm:$0xff]   ;;  %v6934_v26 = vld [vmem:[#allocation3 + $0x20] sm:$0xff]  }
 0x168   : > { %2855 = vrot.lane.b32.xlu0 %v2772_v20, %s7067_s5  ;;  %v6955_v20 = vld [vmem:[%s9142_s1 + $0x1c] sm:$0xfc]  }
 0x169   : > { %v1218_v38 = vpop.permute.xlu1 %1217  ;;  %v4116_v27 = vrot.slane %v6955_v20, 2  ;;  %v6975_v20 = vld [vmem:[#allocation3 + $0x28] sm:$0xff]  }
 0x16a   : > { %v1216_v22 = vpop.permute.xlu0 %1215  ;;  %v6923_v16 = vld [vmem:[#allocation3 + $0x30] sm:$0xff]   ;;  %1305 = vst.msk [vmem:[#allocation3 + $0x84] sm:$0xf] %vm1271_vm6, %v1218_v38 }
 0x16b   : > { %1304 = vst.msk [vmem:[#allocation3 + $0x80] sm:$0xf] %vm1271_vm6, %v1216_v22  ;;  %6687 = vmatmul.mubr.msk.bf16.gmra.mxu0 %vm3108_vm4, %v6923_v16  ;;  %2437 = vrot.lane.b32.xlu1 %v2358_v21, %s7066_s4  ;;  %v6936_v21 = vld [vmem:[#allocation3 + $0x28] sm:$0xff]   ;;  %v6939_v16 = vld [vmem:[#allocation3 + $0x30] sm:$0xff]  }
 0x16c   : > { %2435 = vrot.lane.b32.xlu0 %v2348_v23, %s7066_s4  ;;  %v6938_v22 = vld [vmem:[#allocation3 + $0x8] sm:$0xff]   ;;  %v4169_v23 = vsel %vm2640_vm3, %v8374_v24, 0  ;;  %s7005_s4 = sshll.u32 %s7069_s29, 4  ;;  %s7006_s4 = int_to_ptr.vmem [resolvable:$false] %s7005_s4 }
 0x16d   : > { %v1638_v45 = vpop.permute.xlu1 %1637  ;;  %p7008_p0 = scmp.lt.s32.totalorder %s9095_s26, %s7006_s4 }
 0x16e   : > { %v1636_v42 = vpop.permute.xlu0 %1635  ;;  %1727 = vst.msk [vmem:[#allocation3 + $0x7c] sm:$0xf] %vm1695_vm8, %v1638_v45 }
 0x16f   : > { %1726 = vst.msk [vmem:[#allocation3 + $0x78] sm:$0xf] %vm1695_vm8, %v1636_v42  ;;  %2861 = vrot.lane.b32.xlu1 %v2782_v5, %s7067_s5  ;;  %v4118_v5 = vsel %vm3103_vm14, %v4116_v27, %v8374_v24  ;;  %v6978_v27 = vld [vmem:[#allocation3 + $0x50] sm:$0xff]  }
 0x170   : > { %2859 = vrot.lane.b32.xlu0 %v2779_v15, %s7067_s5  ;;  %s7007_s5 = scalar_lea.vmem %s7006_s4, 1024 }
 0x171   : > { %v1182_v37 = vpop.permute.xlu1 %1181  ;;  %p7009_p1 = scmp.lt.s32.totalorder %s7007_s5, %s7001_s7 }
 0x172   : > { %v1180_v9 = vpop.permute.xlu0 %1179  ;;  %1287 = vst.msk [vmem:[#allocation3 + $0x3c] sm:$0xf] %vm1271_vm6, %v1182_v37 }
 0x173   : > { %1286 = vst.msk [vmem:[#allocation3 + $0x38] sm:$0xf] %vm1271_vm6, %v1180_v9  ;;  %p7010_p2 = por %p7009_p1, %p7008_p0 }
 0x175   : > { %v1642_v28 = vpop.permute.xlu1 %1641  ;;  %p7011_p3 = pnand %p7010_p2, %p7004_p13 }
 0x176   : > { %v1640_v35 = vpop.permute.xlu0 %1639  ;;  %1729 = vst.msk [vmem:[#allocation3 + $0x84] sm:$0xf] %vm1695_vm8, %v1642_v28  ;;  %v6943_v28 = vld [vmem:[#allocation3 + $0x18] sm:$0xff]  }
 0x177   : > { %1728 = vst.msk [vmem:[#allocation3 + $0x80] sm:$0xf] %vm1695_vm8, %v1640_v35  ;;  %v6945_v35 = vld [vmem:[#allocation3 + $0x20] sm:$0xff]  }
 0x179   : > { %v2422_v46 = vpop.permute.xlu1 %2421 }
 0x17a   : > { %v2420_v30 = vpop.permute.xlu0 %2419  ;;  %2511 = vst.msk [vmem:[#allocation3 + $0x7c] sm:$0xf] %vm2479_vm9, %v2422_v46 }
 0x17b   : > { %2510 = vst.msk [vmem:[#allocation3 + $0x78] sm:$0xf] %vm2479_vm9, %v2420_v30 }
 0x17d   : > { %v1186_v29 = vpop.permute.xlu1 %1185 }
 0x17e   : > { %v1184_v49 = vpop.permute.xlu0 %1183  ;;  %1289 = vst.msk [vmem:[#allocation3 + $0x44] sm:$0xf] %vm1271_vm6, %v1186_v29  ;;  %v6946_v29 = vld [vmem:[#allocation3 + $0x48] sm:$0xff]  }
 0x17f   : > { %1288 = vst.msk [vmem:[#allocation3 + $0x40] sm:$0xf] %vm1271_vm6, %v1184_v49  ;;  %v6948_v49 = vld [vmem:[#allocation3 + $0x50] sm:$0xff]  }
 0x181   : > { %v1606_v32 = vpop.permute.xlu1 %1605 }
 0x182   : > { %v1604_v40 = vpop.permute.xlu0 %1603  ;;  %1711 = vst.msk [vmem:[#allocation3 + $0x3c] sm:$0xf] %vm1695_vm8, %v1606_v32 }
 0x183   : > { %1710 = vst.msk [vmem:[#allocation3 + $0x38] sm:$0xf] %vm1695_vm8, %v1604_v40  ;;  %v6947_v40 = vld [vmem:[#allocation3 + $0x28] sm:$0xff]  }
 0x185   : > { %v2426_v43 = vpop.permute.xlu1 %2425 }
 0x186   : > { %v2424_v50 = vpop.permute.xlu0 %2423  ;;  %2513 = vst.msk [vmem:[#allocation3 + $0x84] sm:$0xf] %vm2479_vm9, %v2426_v43 }
 0x187   : > { %2512 = vst.msk [vmem:[#allocation3 + $0x80] sm:$0xf] %vm2479_vm9, %v2424_v50  ;;  %v6949_v50 = vld [vmem:[#allocation3 + $0x30] sm:$0xff]  }
 0x189   : > { %v2846_v18 = vpop.permute.xlu1 %2845 }
 0x18a   : > { %v2844_v55 = vpop.permute.xlu0 %2843  ;;  %2935 = vst.msk [vmem:[#allocation3 + $0x7c] sm:$0xf] %vm2903_vm15, %v2846_v18  ;;  %v6950_v18 = vld [vmem:[#allocation3 + $0x58] sm:$0xff]  }
 0x18b   : > { %2934 = vst.msk [vmem:[#allocation3 + $0x78] sm:$0xf] %vm2903_vm15, %v2844_v55 }
 0x18d   : > { %v1610_v47 = vpop.permute.xlu1 %1609 }
 0x18e   : > { %v1608_v41 = vpop.permute.xlu0 %1607  ;;  %1713 = vst.msk [vmem:[#allocation3 + $0x44] sm:$0xf] %vm1695_vm8, %v1610_v47 }
 0x18f   : > { %1712 = vst.msk [vmem:[#allocation3 + $0x40] sm:$0xf] %vm1695_vm8, %v1608_v41  ;;  %v6952_v41 = vld [vmem:[#allocation3 + $0x60] sm:$0xff]  }
 0x191   : > { %v2390_v3 = vpop.permute.xlu1 %2389 }
 0x192   : > { %v2388_v14 = vpop.permute.xlu0 %2387  ;;  %v6924_v17 = vld [vmem:[#allocation3 + $0x78] sm:$0xff]   ;;  %2495 = vst.msk [vmem:[#allocation3 + $0x3c] sm:$0xf] %vm2479_vm9, %v2390_v3 }
 0x193   : > { %2494 = vst.msk [vmem:[#allocation3 + $0x38] sm:$0xf] %vm2479_vm9, %v2388_v14  ;;  %6706 = vmatprep.mubr.msk.bf16.mxu1 %vm3108_vm4, %v6924_v17  ;;  %v6954_v17 = vld [vmem:[#allocation3 + $0x68] sm:$0xff]  }
 0x195   : > { %v2850_v48 = vpop.permute.xlu1 %2849 }
 0x196   : > { %v2848_v57 = vpop.permute.xlu0 %2847  ;;  %2937 = vst.msk [vmem:[#allocation3 + $0x84] sm:$0xf] %vm2903_vm15, %v2850_v48 }
 0x197   : > { %2936 = vst.msk [vmem:[#allocation3 + $0x80] sm:$0xf] %vm2903_vm15, %v2848_v57  ;;  %v6956_v57 = vld [vmem:[#allocation3 + $0x48] sm:$0xff]  }
 0x199   : > { %v2394_v60 = vpop.permute.xlu1 %2393 }
 0x19a   : > { %v2392_v11 = vpop.permute.xlu0 %2391  ;;  %2497 = vst.msk [vmem:[#allocation3 + $0x44] sm:$0xf] %vm2479_vm9, %v2394_v60  ;;  %v6957_v60 = vld [vmem:[#allocation3 + $0x70] sm:$0xff]  }
 0x19b   : > { %2496 = vst.msk [vmem:[#allocation3 + $0x40] sm:$0xf] %vm2479_vm9, %v2392_v11 }
 0x19d   : > { %v2814_v25 = vpop.permute.xlu1 %2813 }
 0x19e   : > { %v2812_v54 = vpop.permute.xlu0 %2811  ;;  %v6927_v61 = vld [vmem:[#allocation3 + $0x80] sm:$0xff]   ;;  %2919 = vst.msk [vmem:[#allocation3 + $0x3c] sm:$0xf] %vm2903_vm15, %v2814_v25  ;;  %v6958_v25 = vld [vmem:[#allocation3 + $0x50] sm:$0xff]  }
 0x19f   : > { %2918 = vst.msk [vmem:[#allocation3 + $0x38] sm:$0xf] %vm2903_vm15, %v2812_v54  ;;  %6707 = vmatmul.mubr.msk.bf16.gmra.mxu1 %vm3108_vm4, %v6927_v61 }
 0x1a1   : > { %v2818_v62 = vpop.permute.xlu1 %2817 }
 0x1a2   : > { %v2816_v63 = vpop.permute.xlu0 %2815  ;;  %2921 = vst.msk [vmem:[#allocation3 + $0x44] sm:$0xf] %vm2903_vm15, %v2818_v62  ;;  %v6961_v62 = vld [vmem:[#allocation3 + $0x58] sm:$0xff]  }
 0x1a3   : > { %2920 = vst.msk [vmem:[#allocation3 + $0x40] sm:$0xf] %vm2903_vm15, %v2816_v63  ;;  %v6960_v63 = vld [vmem:[#allocation3 + $0x78] sm:$0xff]  }
 0x1a5   : > { %v1154_v4 = vpop.permute.xlu1 %1153 }
 0x1a6   : > { %v1152_v7 = vpop.permute.xlu0 %1151  ;;  %v6928_v59 = vld [vmem:[#allocation3 + $0x38] sm:$0xff]   ;;  %1273 = vst.msk [vmem:[#allocation3 + $0x4] sm:$0xf] %vm1271_vm6, %v1154_v4 }
 0x1a7   : > { %1272 = vst.msk [vmem:[#allocation3] sm:$0xf] %vm1271_vm6, %v1152_v7  ;;  %6690 = vmatprep.mubr.msk.bf16.mxu0 %vm3108_vm4, %v6928_v59  ;;  %v6942_v15 = vld [vmem:[#allocation3 + $0x38] sm:$0xff]   ;;  %v6962_v7 = vld [vmem:[#allocation3 + $0x80] sm:$0xff]  }
 0x1a8   : > { %v6951_v47 = vld [vmem:[#allocation3 + $0x38] sm:$0xff]  }
 0x1a9   : > { %v1578_v8 = vpop.permute.xlu1 %1577 }
 0x1aa   : > { %v1576_v44 = vpop.permute.xlu0 %1575  ;;  %v6930_v6 = vld [vmem:[#allocation3 + $0x40] sm:$0xff]   ;;  %1697 = vst.msk [vmem:[#allocation3 + $0x4] sm:$0xf] %vm1695_vm8, %v1578_v8 }
 0x1ab   : > { %1696 = vst.msk [vmem:[#allocation3] sm:$0xf] %vm1695_vm8, %v1576_v44  ;;  %6691 = vmatmul.mubr.msk.bf16.gmra.mxu0 %vm3108_vm4, %v6930_v6  ;;  %v6944_v24 = vld [vmem:[#allocation3 + $0x40] sm:$0xff]   ;;  %v6965_v6 = vld [vmem:[#allocation3 + $0x68] sm:$0xff]  }
 0x1ac   : > { %6750 = vmatprep.mubr.msk.bf16.mxu0 %vm3108_vm4, %v6931_v12  ;;  %v6953_v56 = vld [vmem:[#allocation3 + $0x40] sm:$0xff]  }
 0x1ad   : > { %v2362_v58 = vpop.permute.xlu1 %2361  ;;  %v6963_v8 = vld [vmem:[#allocation3 + $0x60] sm:$0xff]  }
 0x1ae   : > { %v2360_v53 = vpop.permute.xlu0 %2359  ;;  %2481 = vst.msk [vmem:[#allocation3 + $0x4] sm:$0xf] %vm2479_vm9, %v2362_v58  ;;  %v6966_v12 = vld [vmem:[#allocation3 + $0x20] sm:$0xff]   ;;  %v6967_v58 = vld [vmem:[#allocation3 + $0x70] sm:$0xff]  }
 0x1af   : > { %2480 = vst.msk [vmem:[#allocation3] sm:$0xf] %vm2479_vm9, %v2360_v53  ;;  %v6968_v53 = vld [vmem:[#allocation3 + $0x28] sm:$0xff]  }
 0x1b1   : > { %v2786_v19 = vpop.permute.xlu1 %2785 }
 0x1b2   : > { %v2784_v52 = vpop.permute.xlu0 %2783  ;;  %2905 = vst.msk [vmem:[#allocation3 + $0x4] sm:$0xf] %vm2903_vm15, %v2786_v19  ;;  %v6969_v19 = vld [vmem:[#allocation3 + $0x78] sm:$0xff]  }
 0x1b3   : > { %2904 = vst.msk [vmem:[#allocation3] sm:$0xf] %vm2903_vm15, %v2784_v52  ;;  %6751 = vmatmul.mubr.msk.bf16.vlgmr.msra.gmra.mxu0 %vm3108_vm4, %v6933_v13  ;;  %v6970_v52 = vld [vmem:[#allocation3 + $0x30] sm:$0xff]   ;;  %v6971_v13 = vld [vmem:[#allocation3 + $0x18] sm:$0xff]  }
 0x1b4   : > { %6754 = vmatprep.mubr.msk.bf16.mxu0 %vm3108_vm4, %v6934_v26  ;;  %6819 = vmatpush3.bf16.msra.mxu0 %v4538_v10  ;;  %v6972_v10 = vld [vmem:[#allocation3 + $0x38] sm:$0xff]   ;;  %v6974_v26 = vld [vmem:[#allocation3 + $0x40] sm:$0xff]  }
 0x1b5   : > { %v1222_v36 = vpop.permute.xlu1 %1221  ;;  %6820 = vmatprep.subr.bf16.mxu0 %v6959_v1 }
 0x1b6   : > { %v1220_v51 = vpop.permute.xlu0 %1219  ;;  %1307 = vst.msk [vmem:[#allocation3 + $0x8c] sm:$0xf] %vm1271_vm6, %v1222_v36  ;;  %v6976_v36 = vld [vmem:[#allocation3 + $0x48] sm:$0xff]  }
 0x1b7   : > { %1306 = vst.msk [vmem:[#allocation3 + $0x88] sm:$0xf] %vm1271_vm6, %v1220_v51  ;;  %v6977_v51 = vld [vmem:[#allocation3 + $0x30] sm:$0xff]  }
 0x1b8   : > { %6821 = vmatpush3.bf16.msra.mxu0 %v6959_v1  ;;  %v6973_v1 = vld [vmem:[#allocation3 + $0x20] sm:$0xff]  }
 0x1b9   : > { %v1646_v33 = vpop.permute.xlu1 %1645 }
 0x1ba   : > { %v6935_v31 = vld [vmem:[#allocation3] sm:$0xff]   ;;  %v1644_v38 = vpop.permute.xlu0 %1643  ;;  %1731 = vst.msk [vmem:[#allocation3 + $0x8c] sm:$0xf] %vm1695_vm8, %v1646_v33 }
 0x1bb   : > { %1730 = vst.msk [vmem:[#allocation3 + $0x88] sm:$0xf] %vm1695_vm8, %v1644_v38  ;;  %6714 = vmatprep.mubr.msk.bf16.mxu1 %vm3108_vm4, %v6935_v31  ;;  %6755 = vmatmul.mubr.msk.bf16.gmra.mxu0 %vm3108_vm4, %v6936_v21  ;;  %v6979_v21 = vld [vmem:[#allocation3 + $0x38] sm:$0xff]   ;;  %v6981_v33 = vld [vmem:[#allocation3 + $0x40] sm:$0xff]  }
 0x1bc   : > { %6715 = vmatmul.mubr.msk.bf16.vlgmr.msra.gmra.mxu1 %vm3108_vm4, %v6938_v22  ;;  %6758 = vmatprep.mubr.msk.bf16.mxu0 %vm3108_vm4, %v6939_v16  ;;  %v6980_v31 = vld [vmem:[#allocation3 + $0x58] sm:$0xff]   ;;  %v6982_v38 = vld [vmem:[#allocation3 + $0x60] sm:$0xff]   ;;  %v6983_v22 = vld [vmem:[#allocation3 + $0x48] sm:$0xff]  }
 0x1bd   : > { %6783 = vmatpush3.bf16.msra.mxu1 %v4169_v23  ;;  %6718 = vmatprep.mubr.msk.bf16.mxu1 %vm3108_vm4, %v6940_v34  ;;  %v2430_v45 = vpop.permute.xlu1 %2429  ;;  %v6984_v16 = vld [vmem:[#allocation3 + $0x68] sm:$0xff]   ;;  %v6985_v23 = vld [vmem:[#allocation3 + $0x50] sm:$0xff]  }
 0x1be   : > { %v2428_v42 = vpop.permute.xlu0 %2427  ;;  %6784 = vmatprep.subr.bf16.mxu1 %v4118_v5  ;;  %2515 = vst.msk [vmem:[#allocation3 + $0x8c] sm:$0xf] %vm2479_vm9, %v2430_v45  ;;  %v6986_v34 = vld [vmem:[#allocation3 + $0x70] sm:$0xff]   ;;  %v6988_v45 = vld [vmem:[#allocation3 + $0x78] sm:$0xff]  }
 0x1bf   : > { %2514 = vst.msk [vmem:[#allocation3 + $0x88] sm:$0xf] %vm2479_vm9, %v2428_v42  ;;  %v6989_v42 = vld [vmem:[#allocation3 + $0x60] sm:$0xff]  }
 0x1c1   : > { %6785 = vmatpush3.bf16.msra.mxu1 %v4118_v5  ;;  %v2854_v37 = vpop.permute.xlu1 %2853  ;;  %v6987_v5 = vld [vmem:[#allocation3 + $0x58] sm:$0xff]  }
 0x1c2   : > { %v2852_v9 = vpop.permute.xlu0 %2851  ;;  %2939 = vst.msk [vmem:[#allocation3 + $0x8c] sm:$0xf] %vm2903_vm15, %v2854_v37  ;;  %v6991_v37 = vld [vmem:[#allocation3 + $0x68] sm:$0xff]  }
 0x1c3   : > { %2938 = vst.msk [vmem:[#allocation3 + $0x88] sm:$0xf] %vm2903_vm15, %v2852_v9  ;;  %6759 = vmatmul.mubr.msk.bf16.gmra.mxu0 %vm3108_vm4, %v6942_v15  ;;  %v6990_v15 = vld [vmem:[#allocation3 + $0x80] sm:$0xff]  }
 0x1c4   : > { %6719 = vmatmul.mubr.msk.bf16.gmra.mxu1 %vm3108_vm4, %v6943_v28  ;;  %6762 = vmatprep.mubr.msk.bf16.mxu0 %vm3108_vm4, %v6944_v24  ;;  %v6993_v24 = vld [vmem:[#allocation3 + $0x70] sm:$0xff]  }
 0x1c5   : > { %6722 = vmatprep.mubr.msk.bf16.mxu1 %vm3108_vm4, %v6945_v35  ;;  %v1226_v46 = vpop.permute.xlu1 %1225  ;;  %v6994_v35 = vld [vmem:[#allocation3 + $0x78] sm:$0xff]  }
 0x1c6   : > { %1309 = vst.msk [vmem:[#allocation3 + $0x94] sm:$0xf] %vm1271_vm6, %v1226_v46  ;;  %v1224_v30 = vpop.permute.xlu0 %1223 }
 0x1c7   : > { %1308 = vst.msk [vmem:[#allocation3 + $0x90] sm:$0xf] %vm1271_vm6, %v1224_v30  ;;  %v6995_v30 = vld [vmem:[#allocation3 + $0x80] sm:$0xff]  }
 0x1c9   : > { %v1650_v32 = vpop.permute.xlu1 %1649 }
 0x1ca   : > { %1733 = vst.msk [vmem:[#allocation3 + $0x94] sm:$0xf] %vm1695_vm8, %v1650_v32  ;;  %v1648_v43 = vpop.permute.xlu0 %1647  ;;  %v6964_v44 = vld [vmem:[#allocation3 + $0x88] sm:$0xff]   ;;  %v8652_v32 = vpop.f32.mrf.mxu0 }
 0x1cb   : > { %6763 = vmatmul.mubr.msk.bf16.gmra.mxu0 %vm3108_vm4, %v6946_v29  ;;  %1732 = vst.msk [vmem:[#allocation3 + $0x90] sm:$0xf] %vm1695_vm8, %v1648_v43  ;;  %v6992_v28 = vld [vmem:[#allocation3 + $0x88] sm:$0xff]  }
 0x1cc   : > { %6723 = vmatmul.mubr.msk.bf16.gmra.mxu1 %vm3108_vm4, %v6947_v40  ;;  %6766 = vmatprep.mubr.msk.bf16.mxu0 %vm3108_vm4, %v6948_v49  ;;  %v6996_v29 = vld [vmem:[#allocation3 + $0x88] sm:$0xff]   ;;  %v8654_v40 = vpop.f32.mrf.mxu1  ;;  %v8656_v43 = vpop.f32.mrf.mxu0 }
 0x1cd   : > { %6726 = vmatprep.mubr.msk.bf16.mxu1 %vm3108_vm4, %v6949_v50  ;;  %v1230_v0 = vpop.permute.xlu1 %1229 }
 0x1ce   : > { %1311 = vst.msk [vmem:[#allocation3 + $0x9c] sm:$0xf] %vm1271_vm6, %v1230_v0  ;;  %v1228_v2 = vpop.permute.xlu0 %1227  ;;  %v8658_v50 = vpop.f32.mrf.mxu1 }
 0x1cf   : > { %1310 = vst.msk [vmem:[#allocation3 + $0x98] sm:$0xf] %vm1271_vm6, %v1228_v2  ;;  %v8660_v0 = vpop.f32.mrf.mxu0 }
 0x1d0   : > { %v8662_v2 = vpop.f32.mrf.mxu1 }
 0x1d1   : > { %v2434_v55 = vpop.permute.xlu1 %2433 }
 0x1d2   : > { %2517 = vst.msk [vmem:[#allocation3 + $0x94] sm:$0xf] %vm2479_vm9, %v2434_v55  ;;  %v2432_v39 = vpop.permute.xlu0 %2431 }
 0x1d3   : > { %6767 = vmatmul.mubr.msk.bf16.gmra.mxu0 %vm3108_vm4, %v6950_v18  ;;  %2516 = vst.msk [vmem:[#allocation3 + $0x90] sm:$0xf] %vm2479_vm9, %v2432_v39  ;;  %v8664_v18 = vpop.f32.mrf.mxu0 }
 0x1d4   : > { %6727 = vmatmul.mubr.msk.bf16.gmra.mxu1 %vm3108_vm4, %v6951_v47  ;;  %6770 = vmatprep.mubr.msk.bf16.mxu0 %vm3108_vm4, %v6952_v41  ;;  %v8666_v47 = vpop.f32.mrf.mxu1 }
 0x1d5   : > { %6730 = vmatprep.mubr.msk.bf16.mxu1 %vm3108_vm4, %v6953_v56  ;;  %v1654_v3 = vpop.permute.xlu1 %1653 }
 0x1d6   : > { %1735 = vst.msk [vmem:[#allocation3 + $0x9c] sm:$0xf] %vm1695_vm8, %v1654_v3  ;;  %v1652_v14 = vpop.permute.xlu0 %1651 }
 0x1d7   : > { %1734 = vst.msk [vmem:[#allocation3 + $0x98] sm:$0xf] %vm1695_vm8, %v1652_v14 }
 0x1d9   : > { %v2858_v48 = vpop.permute.xlu1 %2857 }
 0x1da   : > { %2941 = vst.msk [vmem:[#allocation3 + $0x94] sm:$0xf] %vm2903_vm15, %v2858_v48  ;;  %v2856_v11 = vpop.permute.xlu0 %2855 }
 0x1db   : > { %6771 = vmatmul.mubr.msk.bf16.gmra.mxu0 %vm3108_vm4, %v6954_v17  ;;  %2940 = vst.msk [vmem:[#allocation3 + $0x90] sm:$0xf] %vm2903_vm15, %v2856_v11 }
 0x1dc   : > { %6731 = vmatmul.mubr.msk.bf16.gmra.mxu1 %vm3108_vm4, %v6956_v57  ;;  %6774 = vmatprep.mubr.msk.bf16.mxu0 %vm3108_vm4, %v6957_v60 }
 0x1dd   : > { %6734 = vmatprep.mubr.msk.bf16.mxu1 %vm3108_vm4, %v6958_v25  ;;  %v2438_v54 = vpop.permute.xlu1 %2437 }
 0x1de   : > { %2519 = vst.msk [vmem:[#allocation3 + $0x9c] sm:$0xf] %vm2479_vm9, %v2438_v54  ;;  %v2436_v61 = vpop.permute.xlu0 %2435 }
 0x1df   : > { %2518 = vst.msk [vmem:[#allocation3 + $0x98] sm:$0xf] %vm2479_vm9, %v2436_v61  ;;  %v8668_v41 = vpop.f32.mrf.mxu1 }
 0x1e1   : > { %v2862_v4 = vpop.permute.xlu1 %2861  ;;  %v8670_v56 = vpop.f32.mrf.mxu1 }
 0x1e2   : > { %2943 = vst.msk [vmem:[#allocation3 + $0x9c] sm:$0xf] %vm2903_vm15, %v2862_v4  ;;  %v2860_v59 = vpop.permute.xlu0 %2859  ;;  %v6997_v9 = vld [vmem:[#allocation3 + $0x90] sm:$0xff]  }
 0x1e3   : > { %6775 = vmatmul.mubr.msk.bf16.gmra.mxu0 %vm3108_vm4, %v6960_v63  ;;  %2942 = vst.msk [vmem:[#allocation3 + $0x98] sm:$0xf] %vm2903_vm15, %v2860_v59  ;;  %v6999_v49 = vld [vmem:[#allocation3 + $0x90] sm:$0xff]   ;;  %v8672_v14 = vpop.f32.mrf.mxu1 }
 0x1e4   : > { %6735 = vmatmul.mubr.msk.bf16.gmra.mxu1 %vm3108_vm4, %v6961_v62  ;;  %6778 = vmatprep.mubr.msk.bf16.mxu0 %vm3108_vm4, %v6962_v7 }
 0x1e5   : > { %6738 = vmatprep.mubr.msk.bf16.mxu1 %vm3108_vm4, %v6963_v8  ;;  %v8674_v57 = vpop.f32.mrf.mxu1 }
 0x1ea   : > { %v6998_v46 = vld [vmem:[#allocation3 + $0x98] sm:$0xff]  }
 0x1eb   : > { %6779 = vmatmul.mubr.msk.bf16.gmra.mxu0 %vm3108_vm4, %v6964_v44  ;;  %v6684_v55 = vpop.f32.mrf.mxu0 }
 0x1ec   : > { %6739 = vmatmul.mubr.msk.bf16.gmra.mxu1 %vm3108_vm4, %v6965_v6  ;;  %6822 = vmatprep.mubr.msk.bf16.mxu0 %vm3108_vm4, %v6966_v12 }
 0x1ed   : > { %6742 = vmatprep.mubr.msk.bf16.mxu1 %vm3108_vm4, %v6967_v58  ;;  %v3211_v39 = vpop.f32.mrf.mxu0 }
 0x1ef   : > { %v6685_v3 = vpop.f32.mrf.mxu0 }
 0x1f1   : > { %v3214_v17 = vpop.f32.mrf.mxu0 }
 0x1f3   : > { %6823 = vmatmul.mubr.msk.bf16.vlgmr.msra.gmra.mxu0 %vm3108_vm4, %v6968_v53 }
 0x1f4   : > { %6743 = vmatmul.mubr.msk.bf16.gmra.mxu1 %vm3108_vm4, %v6969_v19  ;;  %6826 = vmatprep.mubr.msk.bf16.mxu0 %vm3108_vm4, %v6970_v52 }
 0x1f5   : > { %6786 = vmatprep.mubr.msk.bf16.mxu1 %vm3108_vm4, %v6971_v13 }
 0x1fb   : > { %6827 = vmatmul.mubr.msk.bf16.gmra.mxu0 %vm3108_vm4, %v6972_v10 }
 0x1fc   : > { %6787 = vmatmul.mubr.msk.bf16.vlgmr.msra.gmra.mxu1 %vm3108_vm4, %v6973_v1  ;;  %6830 = vmatprep.mubr.msk.bf16.mxu0 %vm3108_vm4, %v6974_v26 }
 0x1fd   : > { %6790 = vmatprep.mubr.msk.bf16.mxu1 %vm3108_vm4, %v6975_v20 }
 0x203   : > { %6831 = vmatmul.mubr.msk.bf16.gmra.mxu0 %vm3108_vm4, %v6976_v36 }
 0x204   : > { %6791 = vmatmul.mubr.msk.bf16.gmra.mxu1 %vm3108_vm4, %v6977_v51  ;;  %6834 = vmatprep.mubr.msk.bf16.mxu0 %vm3108_vm4, %v6978_v27 }
 0x205   : > { %6794 = vmatprep.mubr.msk.bf16.mxu1 %vm3108_vm4, %v6979_v21 }
 0x20b   : > { %6835 = vmatmul.mubr.msk.bf16.gmra.mxu0 %vm3108_vm4, %v6980_v31 }
 0x20c   : > { %6795 = vmatmul.mubr.msk.bf16.gmra.mxu1 %vm3108_vm4, %v6981_v33  ;;  %6838 = vmatprep.mubr.msk.bf16.mxu0 %vm3108_vm4, %v6982_v38 }
 0x20d   : > { %6798 = vmatprep.mubr.msk.bf16.mxu1 %vm3108_vm4, %v6983_v22 }
 0x213   : > { %6839 = vmatmul.mubr.msk.bf16.gmra.mxu0 %vm3108_vm4, %v6984_v16 }
 0x214   : > { %6799 = vmatmul.mubr.msk.bf16.gmra.mxu1 %vm3108_vm4, %v6985_v23  ;;  %6842 = vmatprep.mubr.msk.bf16.mxu0 %vm3108_vm4, %v6986_v34 }
 0x215   : > { %6802 = vmatprep.mubr.msk.bf16.mxu1 %vm3108_vm4, %v6987_v5 }
 0x21b   : > { %6843 = vmatmul.mubr.msk.bf16.gmra.mxu0 %vm3108_vm4, %v6988_v45 }
 0x21c   : > { %6803 = vmatmul.mubr.msk.bf16.gmra.mxu1 %vm3108_vm4, %v6989_v42  ;;  %6846 = vmatprep.mubr.msk.bf16.mxu0 %vm3108_vm4, %v6990_v15 }
 0x21d   : > { %6806 = vmatprep.mubr.msk.bf16.mxu1 %vm3108_vm4, %v6991_v37 }
 0x21f   : > { %v8676_v60 = vpop.f32.mrf.mxu1 }
 0x221   : > { %v8678_v25 = vpop.f32.mrf.mxu1 }
 0x223   : > { %6847 = vmatmul.mubr.msk.bf16.gmra.mxu0 %vm3108_vm4, %v6992_v28  ;;  %v8680_v61 = vpop.f32.mrf.mxu1 }
 0x224   : > { %6807 = vmatmul.mubr.msk.bf16.gmra.mxu1 %vm3108_vm4, %v6993_v24  ;;  %6850 = vmatprep.mubr.msk.bf16.mxu0 %vm3108_vm4, %v6997_v9 }
 0x225   : > { %6810 = vmatprep.mubr.msk.bf16.mxu1 %vm3108_vm4, %v6994_v35  ;;  %v8682_v4 = vpop.f32.mrf.mxu1 }
 0x22b   : > { %6851 = vmatmul.mubr.msk.bf16.gmra.mxu0 %vm3108_vm4, %v6998_v46  ;;  %v6688_v48 = vpop.f32.mrf.mxu0 }
 0x22c   : > { %6811 = vmatmul.mubr.msk.bf16.gmra.mxu1 %vm3108_vm4, %v6995_v30 }
 0x22d   : > { %6814 = vmatprep.mubr.msk.bf16.mxu1 %vm3108_vm4, %v6996_v29  ;;  %v3227_v11 = vpop.f32.mrf.mxu0 }
 0x22f   : > { %v6689_v54 = vpop.f32.mrf.mxu0 }
 0x231   : > { %v3230_v62 = vpop.f32.mrf.mxu0 }
 0x234   : > { %6815 = vmatmul.mubr.msk.bf16.gmra.mxu1 %vm3108_vm4, %v6999_v49 }
 0x25f   : > { %v8684_v59 = vpop.f32.mrf.mxu1 }
 0x261   : > { %v8686_v6 = vpop.f32.mrf.mxu1 }
 0x263   : > { %v8692_v53 = vpop.f32.mrf.mxu1 }
 0x265   : > { %v8698_v13 = vpop.f32.mrf.mxu1 }
 0x26b   : > { %v6692_v63 = vpop.f32.mrf.mxu0 }
 0x26d   : > { %v3243_v7 = vpop.f32.mrf.mxu0 }
 0x26f   : > { %v6693_v8 = vpop.f32.mrf.mxu0 }
 0x271   : > { %v3246_v44 = vpop.f32.mrf.mxu0 }
 0x273   : > { %v8688_v12 = vpop.f32.mrf.mxu0 }
 0x275   : > { %v8690_v58 = vpop.f32.mrf.mxu0 }
 0x277   : > { %v8694_v19 = vpop.f32.mrf.mxu0 }
 0x279   : > { %v8696_v52 = vpop.f32.mrf.mxu0 }
 0x27b   : > { %v6756_v10 = vpop.f32.mrf.mxu0 }
 0x27c   : > { %v8700_v1 = vpop.f32.mrf.mxu1 }
 0x27d   : > { %v3849_v26 = vpop.f32.mrf.mxu0 }
 0x27e   : > { %v8702_v20 = vpop.f32.mrf.mxu1 }
 0x27f   : > { %v6757_v36 = vpop.f32.mrf.mxu0 }
 0x280   : > { %v8704_v51 = vpop.f32.mrf.mxu1 }
 0x281   : > { %v3852_v27 = vpop.f32.mrf.mxu0 }
 0x282   : > { %v8706_v21 = vpop.f32.mrf.mxu1 }
 0x283   : > { %v6760_v31 = vpop.f32.mrf.mxu0 }
 0x284   : > { %v6720_v33 = vpop.f32.mrf.mxu1 }
 0x285   : > { %v3521_v38 = vadd.f32 %v6720_v33, %v6684_v55  ;;  %v3865_v22 = vpop.f32.mrf.mxu0 }
 0x286   : > { %v3512_v16 = vpop.f32.mrf.mxu1 }
 0x287   : > { %v3513_v23 = vadd.f32 %v3512_v16, %v3211_v39  ;;  %v6761_v34 = vpop.f32.mrf.mxu0  ;;  %v8708_v5 = vadd.f32 %v6756_v10, %v3521_v38 }
 0x288   : > { %v6721_v45 = vpop.f32.mrf.mxu1 }
 0x289   : > { %v3524_v42 = vadd.f32 %v6721_v45, %v6685_v3  ;;  %v3868_v15 = vpop.f32.mrf.mxu0  ;;  %v8710_v37 = vadd.f32 %v3849_v26, %v3513_v23 }
 0x28a   : > { %v3515_v9 = vpop.f32.mrf.mxu1 }
 0x28b   : > { %v3516_v28 = vadd.f32 %v3515_v9, %v3214_v17  ;;  %v6764_v24 = vpop.f32.mrf.mxu0  ;;  %v8712_v35 = vadd.f32 %v6757_v36, %v3524_v42 }
 0x28c   : > { %v6724_v46 = vpop.f32.mrf.mxu1 }
 0x28d   : > { %v3537_v30 = vadd.f32 %v6724_v46, %v6688_v48  ;;  %v3881_v29 = vpop.f32.mrf.mxu0  ;;  %v8714_v49 = vadd.f32 %v3852_v27, %v3516_v28 }
 0x28e   : > { %v3528_v55 = vpop.f32.mrf.mxu1 }
 0x28f   : > { %v3529_v39 = vadd.f32 %v3528_v55, %v3227_v11  ;;  %v6765_v33 = vpop.f32.mrf.mxu0  ;;  %v8716_v10 = vadd.f32 %v6760_v31, %v3537_v30 }
 0x290   : > { %v6725_v38 = vpop.f32.mrf.mxu1 }
 0x291   : > { %v3540_v3 = vadd.f32 %v6725_v38, %v6689_v54  ;;  %v3884_v16 = vpop.f32.mrf.mxu0  ;;  %v8718_v26 = vadd.f32 %v3865_v22, %v3529_v39 }
 0x292   : > { %v3531_v23 = vpop.f32.mrf.mxu1 }
 0x293   : > { %v3532_v17 = vadd.f32 %v3531_v23, %v3230_v62  ;;  %v6768_v45 = vpop.f32.mrf.mxu0  ;;  %v8720_v36 = vadd.f32 %v6761_v34, %v3540_v3 }
 0x294   : > { %v6728_v42 = vpop.f32.mrf.mxu1 }
 0x295   : > { %v3553_v48 = vadd.f32 %v6728_v42, %v6692_v63  ;;  %v3897_v9 = vpop.f32.mrf.mxu0  ;;  %v8722_v27 = vadd.f32 %v3868_v15, %v3532_v17 }
 0x296   : > { %v3544_v28 = vpop.f32.mrf.mxu1 }
 0x297   : > { %v3545_v11 = vadd.f32 %v3544_v28, %v3243_v7  ;;  %v6769_v46 = vpop.f32.mrf.mxu0  ;;  %v8724_v31 = vadd.f32 %v6764_v24, %v3553_v48 }
 0x298   : > { %v6729_v30 = vpop.f32.mrf.mxu1 }
 0x299   : > { %v3556_v54 = vadd.f32 %v6729_v30, %v6693_v8  ;;  %v3900_v55 = vpop.f32.mrf.mxu0  ;;  %v8726_v22 = vadd.f32 %v3881_v29, %v3545_v11 }
 0x29a   : > { %v3547_v39 = vpop.f32.mrf.mxu1 }
 0x29b   : > { %v3548_v62 = vadd.f32 %v3547_v39, %v3246_v44  ;;  %v6772_v38 = vpop.f32.mrf.mxu0  ;;  %v8728_v34 = vadd.f32 %v6765_v33, %v3556_v54 }
 0x29c   : > { %v6732_v3 = vpop.f32.mrf.mxu1 }
 0x29d   : > { %v3569_v63 = vadd.f32 %v6732_v3, %v8654_v40  ;;  %v3913_v15 = vpop.f32.mrf.mxu0  ;;  %v8731_v23 = vadd.f32 %v3884_v16, %v3548_v62 }
 0x29e   : > { %v3560_v7 = vpop.f32.mrf.mxu1 }
 0x29f   : > { %v3561_v24 = vadd.f32 %v3560_v7, %v8658_v50  ;;  %v6773_v17 = vpop.f32.mrf.mxu0  ;;  %v8734_v42 = vadd.f32 %v6768_v45, %v3569_v63 }
 0x2a0   : > { %v6733_v8 = vpop.f32.mrf.mxu1 }
 0x2a1   : > { %v3572_v29 = vadd.f32 %v6733_v8, %v8662_v2  ;;  %v3916_v48 = vpop.f32.mrf.mxu0  ;;  %v8737_v44 = vadd.f32 %v3897_v9, %v3561_v24 }
 0x2a2   : > { %v3563_v33 = vpop.f32.mrf.mxu1 }
 0x2a3   : > { %v3564_v28 = vadd.f32 %v3563_v33, %v8666_v47  ;;  %v6776_v11 = vpop.f32.mrf.mxu0  ;;  %v8740_v40 = vadd.f32 %v6769_v46, %v3572_v29 }
 0x2a4   : > { %v6736_v16 = vpop.f32.mrf.mxu1 }
 0x2a5   : > { %v3585_v30 = vadd.f32 %v6736_v16, %v8668_v41  ;;  %v3929_v54 = vpop.f32.mrf.mxu0  ;;  %v8743_v50 = vadd.f32 %v3900_v55, %v3564_v28 }
 0x2a6   : > { %v3576_v45 = vpop.f32.mrf.mxu1 }
 0x2a7   : > { %v3577_v39 = vadd.f32 %v3576_v45, %v8670_v56  ;;  %v6777_v62 = vpop.f32.mrf.mxu0  ;;  %v8746_v2 = vadd.f32 %v6772_v38, %v3585_v30 }
 0x2a8   : > { %v6737_v9 = vpop.f32.mrf.mxu1 }
 0x2a9   : > { %v3588_v3 = vadd.f32 %v6737_v9, %v8672_v14  ;;  %v3932_v63 = vpop.f32.mrf.mxu0  ;;  %v8749_v47 = vadd.f32 %v3913_v15, %v3577_v39 }
 0x2aa   : > { %v3579_v46 = vpop.f32.mrf.mxu1 }
 0x2ab   : > { %v3580_v7 = vadd.f32 %v3579_v46, %v8674_v57  ;;  %v6780_v24 = vpop.f32.mrf.mxu0  ;;  %v8752_v41 = vadd.f32 %v6773_v17, %v3588_v3  ;;  %v3505_v3 = vadd.f32 %v8700_v1, %v8652_v32 }
 0x2ac   : > { %v6740_v55 = vpop.f32.mrf.mxu1 }
 0x2ad   : > { %v3601_v8 = vadd.f32 %v6740_v55, %v8676_v60  ;;  %v3945_v29 = vpop.f32.mrf.mxu0  ;;  %v8755_v56 = vadd.f32 %v3916_v48, %v3580_v7  ;;  %v3962_v32 = vadd.f32 %v8688_v12, %v3505_v3 }
 0x2ae   : > { %v3592_v38 = vpop.f32.mrf.mxu1 }
 0x2af   : > { %v3593_v33 = vadd.f32 %v3592_v38, %v8678_v25  ;;  %v8758_v28 = vpop.f32.mrf.mxu0  ;;  %v8760_v14 = vadd.f32 %v6776_v11, %v3601_v8 }
 0x2b0   : > { %v6741_v15 = vpop.f32.mrf.mxu1 }
 0x2b1   : > { %v3604_v16 = vadd.f32 %v6741_v15, %v8680_v61  ;;  %v8763_v57 = vpop.f32.mrf.mxu0  ;;  %v8765_v17 = vadd.f32 %v3929_v54, %v3593_v33  ;;  %v3500_v33 = vadd.f32 %v8706_v21, %v8664_v18 }
 0x2b2   : > { %v3595_v30 = vpop.f32.mrf.mxu1 }
 0x2b3   : > { %v3596_v60 = vadd.f32 %v3595_v30, %v8682_v4  ;;  %v6824_v45 = vpop.f32.mrf.mxu0  ;;  %v8768_v48 = vadd.f32 %v6777_v62, %v3604_v16  ;;  %v3497_v4 = vadd.f32 %v8702_v20, %v8656_v43 }
 0x2b4   : > { %v6744_v39 = vpop.f32.mrf.mxu1 }
 0x2b5   : > { %v3617_v25 = vadd.f32 %v6744_v39, %v8684_v59  ;;  %v8771_v9 = vadd.f32 %v3932_v63, %v3596_v60  ;;  %v4574_v61 = vpop.f32.mrf.mxu0  ;;  %v3508_v59 = vadd.f32 %v8704_v51, %v8660_v0  ;;  %v3960_v20 = vadd.f32 %v8690_v58, %v3497_v4  ;;  %v8794_v0 = vld [vmem:[%s9143_s2] ss:$0 sm:$0xff] }
 0x2b6   : > { %v3608_v11 = vpop.f32.mrf.mxu1  ;;  %v3961_v58 = vadd.f32 %v8696_v52, %v3500_v33 }
 0x2b7   : > { %v3609_v46 = vadd.f32 %v3608_v11, %v8686_v6  ;;  %v8776_v7 = vadd.f32 %v6780_v24, %v3617_v25  ;;  %v6825_v63 = vpop.f32.mrf.mxu0  ;;  %v7068_v6 = vmov 1983009808   ;;  %v4840_v24 = vlaneseq }
 0x2b8   : > { %v6745_v54 = vpop.f32.mrf.mxu1  ;;  %v4838_v38 = vunpack.c.l.s4 %v7068_v6  ;;  %v3963_v12 = vadd.f32 %v8694_v19, %v3508_v59 }
 0x2b9   : > { %v8780_v55 = vadd.f32 %v3945_v29, %v3609_v46  ;;  %v4841_v30 = vshrl.u32 %v4840_v24, 7 }
 0x2ba   : > { %v3611_v62 = vpop.f32.mrf.mxu1  ;;  %v4839_v16 = vunpack.c.0.s8 %v4838_v38 }
 0x2bb   : > { %v8785_v8 = vadd.f32 %v3611_v62, %v8698_v13  ;;  %v4577_v13 = vpop.f32.mrf.mxu0 }
 0x2bc   : > { %v6788_v1 = vpop.f32.mrf.mxu1 }
 0x2bd   : > { %v4334_v43 = vadd.f32 %v6788_v1, %v3962_v32  ;;  %v6828_v11 = vpop.f32.mrf.mxu0 }
 0x2be   : > { %v4205_v51 = vpop.f32.mrf.mxu1 }
 0x2bf   : > { %v4703_v29 = vadd.f32 %v6824_v45, %v4334_v43  ;;  %v4332_v15 = vadd.f32 %v4205_v51, %v3960_v20  ;;  %v8800_v45 = vsub.s32 %v4839_v16, %v4841_v30  ;;  %v4590_v52 = vpop.f32.mrf.mxu0 }
 0x2c0   : > { %v6789_v60 = vpop.f32.mrf.mxu1 }
 0x2c1   : > { %v4742_v39 = vadd.f32 %v8794_v0, %v4703_v29  ;;  %v4701_v18 = vadd.f32 %v4574_v61, %v4332_v15  ;;  %v4335_v21 = vadd.f32 %v6789_v60, %v3963_v12  ;;  %v3620_v61 = vadd.f32 %v6745_v54, %v8692_v53 }
 0x2c2   : > { %v4208_v25 = vpop.f32.mrf.mxu1 }
 0x2c3   : > { %v4740_v3 = vadd.f32 %v8794_v0, %v4701_v18  ;;  %v4704_v46 = vadd.f32 %v6825_v63, %v4335_v21  ;;  %v4333_v4 = vadd.f32 %v4208_v25, %v3961_v58  ;;  %v4774_v62 = vmax.f32 %v4742_v39, 0.0 }
 0x2c4   : > { %v6792_v32 = vpop.f32.mrf.mxu1  ;;  %v8813_v54 = vadd.f32 %v8758_v28, %v3620_v61 }
 0x2c5   : > { %v4772_v19 = vmax.f32 %v4740_v3, 0.0  ;;  %v4743_v59 = vadd.f32 %v8794_v0, %v4704_v46  ;;  %v4702_v1 = vadd.f32 %v4577_v13, %v4333_v4  ;;  %v4338_v6 = vadd.f32 %v6792_v32, %v8708_v5 }
 0x2c6   : > { %v4221_v38 = vpop.f32.mrf.mxu1 }
 0x2c7   : > { %v4804_v24 = vadd.f32 %v4774_v62, %v4772_v19  ;;  %v4741_v33 = vadd.f32 %v8794_v0, %v4702_v1  ;;  %v4707_v43 = vadd.f32 %v6828_v11, %v4338_v6  ;;  %v4775_v63 = vmax.f32 %v4743_v59, 0.0 }
 0x2c8   : > { %v4336_v20 = vadd.f32 %v4221_v38, %v8710_v37  ;;  %v6793_v51 = vpop.f32.mrf.mxu1  ;;  %v6829_v37 = vpop.f32.mrf.mxu0 }
 0x2c9   : > { %v4836_v29 = vcombine.high %v4804_v24, %v4804_v24  ;;  %v4843_v15 = vrot.slane %v4804_v24, %v8800_v45  ;;  %v4773_v12 = vmax.f32 %v4741_v33, 0.0  ;;  %v8809_v13 = vadd.f32 %v8794_v0, %v4707_v43 }
 0x2ca   : > { %v4705_v5 = vadd.f32 %v4590_v52, %v4336_v20  ;;  %v4339_v53 = vadd.f32 %v6793_v51, %v8712_v35 }
 0x2cb   : > { %v4850_v16 = vrot.slane %v4836_v29, %v8800_v45  ;;  %v4851_v30 = vcombine.high %v4843_v15, %v4843_v15  ;;  %v5172_v60 = vsel %vm2640_vm3, %v4843_v15, 0.0  ;;  %v4805_v39 = vadd.f32 %v4775_v63, %v4773_v12 }
 0x2cc   : > { %v5173_v18 = vrot.slane %v5172_v60, 4  ;;  %v8819_v58 = vadd.f32 %v8794_v0, %v4705_v5  ;;  %v4708_v25 = vadd.f32 %v6829_v37, %v4339_v53 }
 0x2cd   : > { %v4852_v11 = vcombine.high %v4850_v16, %v4850_v16  ;;  %v5179_v35 = vsel %vm2640_vm3, %v4851_v30, 0.0  ;;  %v5186_v28 = vsel %vm2640_vm3, %v4850_v16, 0.0  ;;  %v4853_v3 = vcombine.high %v4805_v39, %v4805_v39 }
 0x2ce   : > { %v5174_v46 = vadd.f32 %v5173_v18, %v5172_v60  ;;  %v5180_v4 = vrot.slane %v5179_v35, 4  ;;  %v5187_v62 = vrot.slane %v5186_v28, 4  ;;  %v4860_v32 = vrot.slane %v4805_v39, %v8800_v45 }
 0x2cf   : > { %v5193_v19 = vsel %vm2640_vm3, %v4852_v11, 0.0  ;;  %v4867_v59 = vrot.slane %v4853_v3, %v8800_v45  ;;  %v4776_v1 = vmax.f32 %v8819_v58, 0.0  ;;  %v8828_v6 = vadd.f32 %v8794_v0, %v4708_v25 }
 0x2d0   : > { %v5175_v61 = vrot.slane %v5174_v46, 2  ;;  %v5181_v38 = vadd.f32 %v5180_v4, %v5179_v35  ;;  %v5188_v52 = vadd.f32 %v5187_v62, %v5186_v28  ;;  %v5194_v24 = vrot.slane %v5193_v19, 4 }
 0x2d1   : > { %v4868_v33 = vcombine.high %v4860_v32, %v4860_v32  ;;  %v4869_v43 = vcombine.high %v4867_v59, %v4867_v59  ;;  %v5200_v63 = vsel %vm2640_vm3, %v4860_v32, 0.0  ;;  %v5214_v20 = vsel %vm2640_vm3, %v4867_v59, 0.0 }
 0x2d2   : > { %v5176_v51 = vadd.f32 %v5175_v61, %v5174_v46  ;;  %v5182_v29 = vrot.slane %v5181_v38, 2  ;;  %v5189_v15 = vrot.slane %v5188_v52, 2  ;;  %v5195_v12 = vadd.f32 %v5194_v24, %v5193_v19 }
 0x2d3   : > { %v5201_v5 = vrot.slane %v5200_v63, 4  ;;  %v5207_v53 = vsel %vm2640_vm3, %v4868_v33, 0.0  ;;  %v5215_v16 = vrot.slane %v5214_v20, 4  ;;  %v5221_v30 = vsel %vm2640_vm3, %v4869_v43, 0.0 }
 0x2d4   : > { %v5177_v60 = vrot.slane %v5176_v51, 1  ;;  %v5183_v37 = vadd.f32 %v5182_v29, %v5181_v38  ;;  %v5190_v39 = vadd.f32 %v5189_v15, %v5188_v52  ;;  %v5196_v18 = vrot.slane %v5195_v12, 2 }
 0x2d5   : > { %v5202_v25 = vadd.f32 %v5201_v5, %v5200_v63  ;;  %v5208_v11 = vrot.slane %v5207_v53, 4  ;;  %v5216_v35 = vadd.f32 %v5215_v16, %v5214_v20  ;;  %v5222_v28 = vrot.slane %v5221_v30, 4 }
 0x2d6   : > { %v5178_v3 = vadd.f32 %v5177_v60, %v5176_v51  ;;  %v5184_v46 = vrot.slane %v5183_v37, 1  ;;  %v5191_v4 = vrot.slane %v5190_v39, 1  ;;  %v5197_v62 = vadd.f32 %v5196_v18, %v5195_v12 }
 0x2d7   : > { %v5203_v32 = vrot.slane %v5202_v25, 2  ;;  %v5209_v19 = vadd.f32 %v5208_v11, %v5207_v53  ;;  %v5217_v59 = vrot.slane %v5216_v35, 2  ;;  %v5223_v61 = vadd.f32 %v5222_v28, %v5221_v30 }
 0x2d8   : > { %v5185_v24 = vadd.f32 %v5184_v46, %v5183_v37  ;;  %v5192_v33 = vadd.f32 %v5191_v4, %v5190_v39  ;;  %v5198_v38 = vrot.slane %v5197_v62, 1  ;;  %v5620_v52 = vmul.f32 0.25, %v5178_v3 }
 0x2d9   : > { %v5204_v43 = vadd.f32 %v5203_v32, %v5202_v25  ;;  %v5210_v29 = vrot.slane %v5209_v19, 2  ;;  %v5218_v63 = vadd.f32 %v5217_v59, %v5216_v35  ;;  %v5224_v15 = vrot.slane %v5223_v61, 2  ;;  %v4224_v35 = vpop.f32.mrf.mxu1 }
 0x2da   : > { %v5199_v20 = vadd.f32 %v5198_v38, %v5197_v62  ;;  %v5621_v5 = vmul.f32 0.25, %v5185_v24  ;;  %v5622_v51 = vmul.f32 0.25, %v5192_v33  ;;  %v6519_v16 = vpack.c.bf16 %v5620_v52, %v5620_v52 }
 0x2db   : > { %v5205_v60 = vrot.slane %v5204_v43, 1  ;;  %v5211_v12 = vadd.f32 %v5210_v29, %v5209_v19  ;;  %v5219_v18 = vrot.slane %v5218_v63, 1  ;;  %v5225_v21 = vadd.f32 %v5224_v15, %v5223_v61  ;;  %v4593_v15 = vpop.f32.mrf.mxu0 }
 0x2dc   : > { %v5623_v53 = vmul.f32 0.25, %v5199_v20  ;;  %v6520_v11 = vpack.c.bf16 %v5621_v5, %v5621_v5  ;;  %v6521_v30 = vpack.c.bf16 %v5622_v51, %v5622_v51  ;;  %v5940_v28 = vunpack.c.l.b16 %v6519_v16  ;;  %v6796_v51 = vpop.f32.mrf.mxu1 }
 0x2dd   : > { %v5206_v37 = vadd.f32 %v5205_v60, %v5204_v43  ;;  %v5212_v39 = vrot.slane %v5211_v12, 1  ;;  %v5220_v3 = vadd.f32 %v5219_v18, %v5218_v63  ;;  %v5226_v25 = vrot.slane %v5225_v21, 1 }
 0x2de   : > { %v6522_v46 = vpack.c.bf16 %v5623_v53, %v5623_v53  ;;  %v5941_v4 = vunpack.c.l.b16 %v6520_v11  ;;  %v5942_v62 = vunpack.c.l.b16 %v6521_v30  ;;  %v9157_v32 = vmax.f32 %v8809_v13, 0.0 }
 0x2df   : > { %v5213_v59 = vadd.f32 %v5212_v39, %v5211_v12  ;;  %v5227_v61 = vadd.f32 %v5226_v25, %v5225_v21  ;;  %v5624_v24 = vmul.f32 0.25, %v5206_v37  ;;  %v5626_v33 = vmul.f32 0.25, %v5220_v3 }
 0x2e0   : > { %v4806_v19 = vadd.f32 %v9157_v32, %v4776_v1  ;;  %v5943_v38 = vunpack.c.l.b16 %v6522_v46  ;;  %v6005_v52 = vsel %vm6004_vm0, %v5941_v4, %v5940_v28  ;;  %v6832_v46 = vpop.f32.mrf.mxu0 }
 0x2e1   : > { %v6007_v63 = vsel %vm6006_vm2, %v5942_v62, %v6005_v52  ;;  %v5625_v20 = vmul.f32 0.25, %v5213_v59  ;;  %v5627_v5 = vmul.f32 0.25, %v5227_v61  ;;  %v6523_v58 = vpack.c.bf16 %v5624_v24, %v5624_v24  ;;  %v4237_v62 = vpop.f32.mrf.mxu1 }
 0x2e2   : > { %v4870_v43 = vcombine.high %v4806_v19, %v4806_v19  ;;  %v4877_v29 = vrot.slane %v4806_v19, %v8800_v45  ;;  %v6525_v13 = vpack.c.bf16 %v5626_v33, %v5626_v33  ;;  %v6009_v1 = vsel %vm6008_vm7, %v5943_v38, %v6007_v63 }
 0x2e3   : > { %v6524_v60 = vpack.c.bf16 %v5625_v20, %v5625_v20  ;;  %v6526_v12 = vpack.c.bf16 %v5627_v5, %v5627_v5  ;;  %v5944_v18 = vunpack.c.l.b16 %v6523_v58  ;;  %v4779_v61 = vmax.f32 %v8828_v6, 0.0  ;;  %v4606_v58 = vpop.f32.mrf.mxu0 }
 0x2e4   : > { %v4884_v21 = vrot.slane %v4870_v43, %v8800_v45  ;;  %v4885_v16 = vcombine.high %v4877_v29, %v4877_v29  ;;  %v5228_v53 = vsel %vm2640_vm3, %v4877_v29, 0.0  ;;  %v5946_v11 = vunpack.c.l.b16 %v6525_v13 }
 0x2e5   : > { %v5229_v28 = vrot.slane %v5228_v53, 4  ;;  %v5945_v39 = vunpack.c.l.b16 %v6524_v60  ;;  %v5947_v3 = vunpack.c.l.b16 %v6526_v12  ;;  %v6011_v25 = vsel %vm349_vm10, %v5944_v18, %v6009_v1 }
 0x2e6   : > { %v4886_v30 = vcombine.high %v4884_v21, %v4884_v21  ;;  %v5235_v37 = vsel %vm2640_vm3, %v4885_v16, 0.0  ;;  %v5242_v19 = vsel %vm2640_vm3, %v4884_v21, 0.0  ;;  %v4337_v63 = vadd.f32 %v4224_v35, %v8714_v49  ;;  %v6797_v16 = vpop.f32.mrf.mxu1 }
 0x2e7   : > { %v5236_v4 = vrot.slane %v5235_v37, 4  ;;  %v5230_v32 = vadd.f32 %v5229_v28, %v5228_v53  ;;  %v6013_v24 = vsel %vm6012_vm11, %v5945_v39, %v6011_v25  ;;  %v5243_v38 = vrot.slane %v5242_v19, 4 }
 0x2e8   : > { %v5249_v59 = vsel %vm2640_vm3, %v4886_v30, 0.0  ;;  %v6015_v43 = vsel %vm6014_vm12, %v5946_v11, %v6013_v24  ;;  %v4342_v20 = vadd.f32 %v6796_v51, %v8716_v10  ;;  %v4706_v12 = vadd.f32 %v4593_v15, %v4337_v63 }
 0x2e9   : > { %v5237_v33 = vadd.f32 %v5236_v4, %v5235_v37  ;;  %v5250_v52 = vrot.slane %v5249_v59, 4  ;;  %v5231_v29 = vrot.slane %v5230_v32, 2  ;;  %v6017_v5 = vsel %vm6016_vm13, %v5947_v3, %v6015_v43  ;;  %v6833_v3 = vpop.f32.mrf.mxu0 }
 0x2ea   : > { %v5244_v1 = vadd.f32 %v5243_v38, %v5242_v19  ;;  %v6067_v6 = vpack.c.b16 %v6017_v5, %v6017_v5  ;;  %v4711_v18 = vadd.f32 %v6832_v46, %v4342_v20  ;;  %v4340_v11 = vadd.f32 %v4237_v62, %v8718_v26  ;;  %v4240_v46 = vpop.f32.mrf.mxu1 }
 0x2eb   : > { %v5238_v13 = vrot.slane %v5237_v33, 2  ;;  %v5251_v21 = vadd.f32 %v5250_v52, %v5249_v59  ;;  %v5232_v60 = vadd.f32 %v5231_v29, %v5230_v32  ;;  %v4745_v10 = vadd.f32 %v8794_v0, %v4706_v12 }
 0x2ec   : > { %v5245_v30 = vrot.slane %v5244_v1, 2  ;;  %6083 = vst [vmem:[%s8858_s19] sm:$0xf] %v6067_v6  ;;  %v4750_v35 = vadd.f32 %v8794_v0, %v4711_v18  ;;  %v4343_v51 = vadd.f32 %v6797_v16, %v8720_v36  ;;  %v4709_v25 = vadd.f32 %v4606_v58, %v4340_v11 }
 0x2ed   : > { %v5239_v53 = vadd.f32 %v5238_v13, %v5237_v33  ;;  %v5252_v28 = vrot.slane %v5251_v21, 2  ;;  %v5233_v49 = vrot.slane %v5232_v60, 1  ;;  %v4777_v32 = vmax.f32 %v4745_v10, 0.0 }
 0x2ee   : > { %v5246_v39 = vadd.f32 %v5245_v30, %v5244_v1  ;;  %v4782_v26 = vmax.f32 %v4750_v35, 0.0  ;;  %v4712_v62 = vadd.f32 %v6833_v3, %v4343_v51  ;;  %v4748_v33 = vadd.f32 %v8794_v0, %v4709_v25 }
 0x2ef   : > { %v5240_v37 = vrot.slane %v5239_v53, 1  ;;  %v5253_v15 = vadd.f32 %v5252_v28, %v5251_v21  ;;  %v5234_v4 = vadd.f32 %v5233_v49, %v5232_v60  ;;  %v4807_v52 = vadd.f32 %v4779_v61, %v4777_v32 }
 0x2f0   : > { %v5247_v59 = vrot.slane %v5246_v39, 1  ;;  %v8866_v43 = vadd.f32 %v8794_v0, %v4712_v62  ;;  %v8869_v36 = vadd.f32 %v4240_v46, %v8722_v27  ;;  %v4780_v5 = vmax.f32 %v4748_v33, 0.0 }
 0x2f1   : > { %v5241_v19 = vadd.f32 %v5240_v37, %v5239_v53  ;;  %v5254_v24 = vrot.slane %v5253_v15, 1  ;;  %v5628_v38 = vmul.f32 0.25, %v5234_v4  ;;  %v4887_v13 = vcombine.high %v4807_v52, %v4807_v52 }
 0x2f2   : > { %v5248_v29 = vadd.f32 %v5247_v59, %v5246_v39  ;;  %v4894_v1 = vrot.slane %v4807_v52, %v8800_v45  ;;  %v4783_v21 = vmax.f32 %v8866_v43, 0.0  ;;  %v4808_v61 = vadd.f32 %v4782_v26, %v4780_v5 }
 0x2f3   : > { %v5255_v63 = vadd.f32 %v5254_v24, %v5253_v15  ;;  %v5629_v20 = vmul.f32 0.25, %v5241_v19  ;;  %v6527_v58 = vpack.c.bf16 %v5628_v38, %v5628_v38  ;;  %v4901_v18 = vrot.slane %v4887_v13, %v8800_v45  ;;  %v8884_v13 = vpop.f32.mrf.mxu1 }
 0x2f4   : > { %v5630_v16 = vmul.f32 0.25, %v5248_v29  ;;  %v4902_v53 = vcombine.high %v4894_v1, %v4894_v1  ;;  %v5256_v27 = vsel %vm2640_vm3, %v4894_v1, 0.0  ;;  %v4904_v37 = vcombine.high %v4808_v61, %v4808_v61 }
 0x2f5   : > { %v5631_v6 = vmul.f32 0.25, %v5255_v63  ;;  %v6528_v60 = vpack.c.bf16 %v5629_v20, %v5629_v20  ;;  %v5948_v12 = vunpack.c.l.b16 %v6527_v58  ;;  %v5257_v49 = vrot.slane %v5256_v27, 4 }
 0x2f6   : > { %v6529_v30 = vpack.c.bf16 %v5630_v16, %v5630_v16  ;;  %v4903_v10 = vcombine.high %v4901_v18, %v4901_v18  ;;  %v5263_v35 = vsel %vm2640_vm3, %v4902_v53, 0.0  ;;  %v5270_v51 = vsel %vm2640_vm3, %v4901_v18, 0.0 }
 0x2f7   : > { %v6530_v28 = vpack.c.bf16 %v5631_v6, %v5631_v6  ;;  %v5949_v11 = vunpack.c.l.b16 %v6528_v60  ;;  %v5258_v25 = vadd.f32 %v5257_v49, %v5256_v27  ;;  %v5264_v46 = vrot.slane %v5263_v35, 4  ;;  %v4609_v27 = vpop.f32.mrf.mxu0 }
 0x2f8   : > { %v5950_v39 = vunpack.c.l.b16 %v6529_v30  ;;  %v5271_v4 = vrot.slane %v5270_v51, 4  ;;  %v5277_v32 = vsel %vm2640_vm3, %v4903_v10, 0.0  ;;  %v4911_v26 = vrot.slane %v4808_v61, %v8800_v45 }
 0x2f9   : > { %v5951_v15 = vunpack.c.l.b16 %v6530_v28  ;;  %v6018_v3 = vsel %vm6004_vm0, %v5949_v11, %v5948_v12  ;;  %v5259_v19 = vrot.slane %v5258_v25, 2  ;;  %v5278_v59 = vrot.slane %v5277_v32, 4 }
 0x2fa   : > { %v6019_v62 = vsel %vm6006_vm2, %v5950_v39, %v6018_v3  ;;  %v4918_v24 = vrot.slane %v4904_v37, %v8800_v45  ;;  %v5265_v33 = vadd.f32 %v5264_v46, %v5263_v35  ;;  %v5272_v38 = vadd.f32 %v5271_v4, %v5270_v51  ;;  %v8889_v39 = vpop.f32.mrf.mxu1 }
 0x2fb   : > { %v6020_v52 = vsel %vm6008_vm7, %v5951_v15, %v6019_v62  ;;  %v4919_v29 = vcombine.high %v4911_v26, %v4911_v26  ;;  %v5260_v63 = vadd.f32 %v5259_v19, %v5258_v25  ;;  %v5279_v20 = vadd.f32 %v5278_v59, %v5277_v32 }
 0x2fc   : > { %v4920_v5 = vcombine.high %v4918_v24, %v4918_v24  ;;  %v5284_v58 = vsel %vm2640_vm3, %v4911_v26, 0.0  ;;  %v5266_v1 = vrot.slane %v5265_v33, 2  ;;  %v5273_v16 = vrot.slane %v5272_v38, 2 }
 0x2fd   : > { %v5285_v6 = vrot.slane %v5284_v58, 4  ;;  %v5291_v60 = vsel %vm2640_vm3, %v4919_v29, 0.0  ;;  %v5261_v61 = vrot.slane %v5260_v63, 1  ;;  %v5280_v12 = vrot.slane %v5279_v20, 2 }
 0x2fe   : > { %v5292_v18 = vrot.slane %v5291_v60, 4  ;;  %v5298_v53 = vsel %vm2640_vm3, %v4918_v24, 0.0  ;;  %v5267_v30 = vadd.f32 %v5266_v1, %v5265_v33  ;;  %v5274_v28 = vadd.f32 %v5273_v16, %v5272_v38  ;;  %v6836_v24 = vpop.f32.mrf.mxu0 }
 0x2ff   : > { %v5286_v11 = vadd.f32 %v5285_v6, %v5284_v58  ;;  %v5299_v49 = vrot.slane %v5298_v53, 4  ;;  %v5262_v10 = vadd.f32 %v5261_v61, %v5260_v63  ;;  %v5281_v35 = vadd.f32 %v5280_v12, %v5279_v20 }
 0x300   : > { %v5293_v51 = vadd.f32 %v5292_v18, %v5291_v60  ;;  %v5305_v37 = vsel %vm2640_vm3, %v4920_v5, 0.0  ;;  %v5268_v15 = vrot.slane %v5267_v30, 1  ;;  %v5275_v3 = vrot.slane %v5274_v28, 1  ;;  %v6801_v5 = vpop.f32.mrf.mxu1 }
 0x301   : > { %v5287_v25 = vrot.slane %v5286_v11, 2  ;;  %v5300_v46 = vadd.f32 %v5299_v49, %v5298_v53  ;;  %v5282_v4 = vrot.slane %v5281_v35, 1  ;;  %v5632_v32 = vmul.f32 0.25, %v5262_v10 }
 0x302   : > { %v5294_v26 = vrot.slane %v5293_v51, 2  ;;  %v5306_v62 = vrot.slane %v5305_v37, 4  ;;  %v5269_v19 = vadd.f32 %v5268_v15, %v5267_v30  ;;  %v5276_v59 = vadd.f32 %v5275_v3, %v5274_v28  ;;  %v4622_v30 = vpop.f32.mrf.mxu0 }
 0x303   : > { %v5288_v33 = vadd.f32 %v5287_v25, %v5286_v11  ;;  %v5301_v38 = vrot.slane %v5300_v46, 2  ;;  %v5283_v29 = vadd.f32 %v5282_v4, %v5281_v35  ;;  %v6531_v63 = vpack.c.bf16 %v5632_v32, %v5632_v32 }
 0x304   : > { %v5295_v20 = vadd.f32 %v5294_v26, %v5293_v51  ;;  %v5307_v58 = vadd.f32 %v5306_v62, %v5305_v37  ;;  %v5633_v1 = vmul.f32 0.25, %v5269_v19  ;;  %v5634_v16 = vmul.f32 0.25, %v5276_v59  ;;  %v4256_v37 = vpop.f32.mrf.mxu1 }
 0x305   : > { %v5289_v6 = vrot.slane %v5288_v33, 1  ;;  %v5302_v60 = vadd.f32 %v5301_v38, %v5300_v46  ;;  %v5635_v61 = vmul.f32 0.25, %v5283_v29  ;;  %v5952_v12 = vunpack.c.l.b16 %v6531_v63  ;;  %v6837_v63 = vpop.f32.mrf.mxu0 }
 0x306   : > { %v5296_v18 = vrot.slane %v5295_v20, 1  ;;  %v5308_v53 = vrot.slane %v5307_v58, 2  ;;  %v6532_v49 = vpack.c.bf16 %v5633_v1, %v5633_v1  ;;  %v6533_v10 = vpack.c.bf16 %v5634_v16, %v5634_v16 }
 0x307   : > { %v5290_v28 = vadd.f32 %v5289_v6, %v5288_v33  ;;  %v5303_v15 = vrot.slane %v5302_v60, 1  ;;  %v6534_v11 = vpack.c.bf16 %v5635_v61, %v5635_v61  ;;  %v6021_v35 = vsel %vm349_vm10, %v5952_v12, %v6020_v52  ;;  %v6804_v6 = vpop.f32.mrf.mxu1 }
 0x308   : > { %v5297_v3 = vadd.f32 %v5296_v18, %v5295_v20  ;;  %v5309_v51 = vadd.f32 %v5308_v53, %v5307_v58  ;;  %v5953_v25 = vunpack.c.l.b16 %v6532_v49  ;;  %v5954_v4 = vunpack.c.l.b16 %v6533_v10 }
 0x309   : > { %v5304_v32 = vadd.f32 %v5303_v15, %v5302_v60  ;;  %v5636_v26 = vmul.f32 0.25, %v5290_v28  ;;  %v5955_v46 = vunpack.c.l.b16 %v6534_v11  ;;  %v4710_v59 = vadd.f32 %v4609_v27, %v8869_v36  ;;  %v4625_v28 = vpop.f32.mrf.mxu0 }
 0x30a   : > { %v5310_v62 = vrot.slane %v5309_v51, 1  ;;  %v5637_v19 = vmul.f32 0.25, %v5297_v3  ;;  %v6022_v38 = vsel %vm6012_vm11, %v5953_v25, %v6021_v35  ;;  %v4346_v52 = vadd.f32 %v8884_v13, %v8724_v31 }
 0x30b   : > { %v5638_v29 = vmul.f32 0.25, %v5304_v32  ;;  %v6535_v33 = vpack.c.bf16 %v5636_v26, %v5636_v26  ;;  %v6023_v20 = vsel %vm6014_vm12, %v5954_v4, %v6022_v38  ;;  %v4749_v16 = vadd.f32 %v8794_v0, %v4710_v59 }
 0x30c   : > { %v5311_v58 = vadd.f32 %v5310_v62, %v5309_v51  ;;  %v6536_v1 = vpack.c.bf16 %v5637_v19, %v5637_v19  ;;  %v6024_v60 = vsel %vm6016_vm13, %v5955_v46, %v6023_v20  ;;  %v4715_v27 = vadd.f32 %v6836_v24, %v4346_v52  ;;  %v4269_v51 = vpop.f32.mrf.mxu1 }
 0x30d   : > { %v6537_v61 = vpack.c.bf16 %v5638_v29, %v5638_v29  ;;  %v5956_v36 = vunpack.c.l.b16 %v6535_v33  ;;  %v6068_v12 = vpack.c.b16 %v6024_v60, %v6024_v60  ;;  %v4781_v49 = vmax.f32 %v4749_v16, 0.0 }
 0x30e   : > { %v5639_v18 = vmul.f32 0.25, %v5311_v58  ;;  %v5957_v53 = vunpack.c.l.b16 %v6536_v1  ;;  %v4754_v31 = vadd.f32 %v8794_v0, %v4715_v27  ;;  %v4344_v13 = vadd.f32 %v8889_v39, %v8726_v22  ;;  %v6840_v39 = vpop.f32.mrf.mxu0 }
 0x30f   : > { %v5958_v10 = vunpack.c.l.b16 %v6537_v61  ;;  %v4347_v15 = vadd.f32 %v6801_v5, %v8728_v34  ;;  %6084 = vst [vmem:[%s8858_s19 + $0x4] sm:$0xf] %v6068_v12  ;;  %v4809_v24 = vadd.f32 %v4783_v21, %v4781_v49  ;;  %v4345_v3 = vadd.f32 %v4256_v37, %v8731_v23 }
 0x310   : > { %v6538_v11 = vpack.c.bf16 %v5639_v18, %v5639_v18  ;;  %v6025_v35 = vsel %vm6004_vm0, %v5957_v53, %v5956_v36  ;;  %v4786_v4 = vmax.f32 %v4754_v31, 0.0  ;;  %v4713_v32 = vadd.f32 %v4622_v30, %v4344_v13 }
 0x311   : > { %v6026_v25 = vsel %vm6006_vm2, %v5958_v10, %v6025_v35  ;;  %v4716_v26 = vadd.f32 %v6837_v63, %v4347_v15  ;;  %v4921_v62 = vcombine.high %v4809_v24, %v4809_v24  ;;  %v4928_v22 = vrot.slane %v4809_v24, %v8800_v45 }
 0x312   : > { %v5959_v46 = vunpack.c.l.b16 %v6538_v11  ;;  %v4714_v34 = vadd.f32 %v4625_v28, %v4345_v3  ;;  %v4752_v5 = vadd.f32 %v8794_v0, %v4713_v32  ;;  %v4350_v43 = vadd.f32 %v6804_v6, %v8734_v42  ;;  %v4638_v6 = vpop.f32.mrf.mxu0 }
 0x313   : > { %v4755_v19 = vadd.f32 %v8794_v0, %v4716_v26  ;;  %v4348_v23 = vadd.f32 %v4269_v51, %v8737_v44  ;;  %v4935_v21 = vrot.slane %v4921_v62, %v8800_v45  ;;  %v4936_v37 = vcombine.high %v4928_v22, %v4928_v22 }
 0x314   : > { %v5312_v30 = vsel %vm2640_vm3, %v4928_v22, 0.0  ;;  %v8917_v59 = vsel %vm6008_vm7, %v5959_v46, %v6026_v25  ;;  %v4784_v29 = vmax.f32 %v4752_v5, 0.0  ;;  %v4753_v63 = vadd.f32 %v8794_v0, %v4714_v34 }
 0x315   : > { %v5313_v38 = vrot.slane %v5312_v30, 4  ;;  %v4787_v33 = vmax.f32 %v4755_v19, 0.0  ;;  %v4937_v52 = vcombine.high %v4935_v21, %v4935_v21  ;;  %v5319_v20 = vsel %vm2640_vm3, %v4936_v37, 0.0 }
 0x316   : > { %v5326_v42 = vsel %vm2640_vm3, %v4935_v21, 0.0  ;;  %v4719_v58 = vadd.f32 %v6840_v39, %v4350_v43  ;;  %v5320_v1 = vrot.slane %v5319_v20, 4  ;;  %v4810_v60 = vadd.f32 %v4786_v4, %v4784_v29 }
 0x317   : > { %v5314_v44 = vadd.f32 %v5313_v38, %v5312_v30  ;;  %v5327_v16 = vrot.slane %v5326_v42, 4  ;;  %v5333_v61 = vsel %vm2640_vm3, %v4937_v52, 0.0  ;;  %v4785_v36 = vmax.f32 %v4753_v63, 0.0 }
 0x318   : > { %v8924_v27 = vadd.f32 %v8794_v0, %v4719_v58  ;;  %v8926_v12 = vadd.f32 %v4638_v6, %v4348_v23  ;;  %v5321_v53 = vadd.f32 %v5320_v1, %v5319_v20  ;;  %v5334_v10 = vrot.slane %v5333_v61, 4 }
 0x319   : > { %v5315_v18 = vrot.slane %v5314_v44, 2  ;;  %v5328_v49 = vadd.f32 %v5327_v16, %v5326_v42  ;;  %v4938_v28 = vcombine.high %v4810_v60, %v4810_v60  ;;  %v4945_v31 = vrot.slane %v4810_v60, %v8800_v45 }
 0x31a   : > { %v4811_v13 = vadd.f32 %v4787_v33, %v4785_v36  ;;  %v4790_v15 = vmax.f32 %v8924_v27, 0.0  ;;  %v5322_v35 = vrot.slane %v5321_v53, 2  ;;  %v5335_v3 = vadd.f32 %v5334_v10, %v5333_v61  ;;  %v8962_v27 = vld [vmem:[%s9143_s2] ss:$0 sm:$0xff] }
 0x31b   : > { %v5316_v11 = vadd.f32 %v5315_v18, %v5314_v44  ;;  %v5329_v24 = vrot.slane %v5328_v49, 2  ;;  %v4952_v51 = vrot.slane %v4938_v28, %v8800_v45  ;;  %v4953_v25 = vcombine.high %v4945_v31, %v4945_v31 }
 0x31c   : > { %v5340_v4 = vsel %vm2640_vm3, %v4945_v31, 0.0  ;;  %v4955_v32 = vcombine.high %v4811_v13, %v4811_v13  ;;  %v5323_v46 = vadd.f32 %v5322_v35, %v5321_v53  ;;  %v5336_v22 = vrot.slane %v5335_v3, 2 }
 0x31d   : > { %v5317_v26 = vrot.slane %v5316_v11, 1  ;;  %v5330_v62 = vadd.f32 %v5329_v24, %v5328_v49  ;;  %v4954_v34 = vcombine.high %v4952_v51, %v4952_v51  ;;  %v5341_v39 = vrot.slane %v5340_v4, 4 }
 0x31e   : > { %v5347_v5 = vsel %vm2640_vm3, %v4953_v25, 0.0  ;;  %v5354_v19 = vsel %vm2640_vm3, %v4952_v51, 0.0  ;;  %v5324_v23 = vrot.slane %v5323_v46, 1  ;;  %v5337_v37 = vadd.f32 %v5336_v22, %v5335_v3 }
 0x31f   : > { %v5318_v43 = vadd.f32 %v5317_v26, %v5316_v11  ;;  %v5331_v21 = vrot.slane %v5330_v62, 1  ;;  %v5342_v30 = vadd.f32 %v5341_v39, %v5340_v4  ;;  %v5348_v38 = vrot.slane %v5347_v5, 4 }
 0x320   : > { %v5355_v29 = vrot.slane %v5354_v19, 4  ;;  %v5361_v33 = vsel %vm2640_vm3, %v4954_v34, 0.0  ;;  %v5325_v63 = vadd.f32 %v5324_v23, %v5323_v46  ;;  %v5338_v20 = vrot.slane %v5337_v37, 1 }
 0x321   : > { %v5332_v52 = vadd.f32 %v5331_v21, %v5330_v62  ;;  %v5640_v42 = vmul.f32 0.25, %v5318_v43  ;;  %v5343_v58 = vrot.slane %v5342_v30, 2  ;;  %v5349_v44 = vadd.f32 %v5348_v38, %v5347_v5 }
 0x322   : > { %v5356_v1 = vadd.f32 %v5355_v29, %v5354_v19  ;;  %v5362_v16 = vrot.slane %v5361_v33, 4  ;;  %v5339_v6 = vadd.f32 %v5338_v20, %v5337_v37  ;;  %v5641_v60 = vmul.f32 0.25, %v5325_v63  ;;  %v6805_v20 = vpop.f32.mrf.mxu1 }
 0x323   : > { %v5642_v61 = vmul.f32 0.25, %v5332_v52  ;;  %v6539_v36 = vpack.c.bf16 %v5640_v42, %v5640_v42  ;;  %v5344_v18 = vadd.f32 %v5343_v58, %v5342_v30  ;;  %v5350_v53 = vrot.slane %v5349_v44, 2 }
 0x324   : > { %v5357_v49 = vrot.slane %v5356_v1, 2  ;;  %v5363_v10 = vadd.f32 %v5362_v16, %v5361_v33  ;;  %v5643_v28 = vmul.f32 0.25, %v5339_v6  ;;  %v6540_v31 = vpack.c.bf16 %v5641_v60, %v5641_v60 }
 0x325   : > { %v6541_v11 = vpack.c.bf16 %v5642_v61, %v5642_v61  ;;  %v5960_v35 = vunpack.c.l.b16 %v6539_v36  ;;  %v5345_v24 = vrot.slane %v5344_v18, 1  ;;  %v5351_v3 = vadd.f32 %v5350_v53, %v5349_v44 }
 0x326   : > { %v5358_v51 = vadd.f32 %v5357_v49, %v5356_v1  ;;  %v5364_v25 = vrot.slane %v5363_v10, 2  ;;  %v6542_v4 = vpack.c.bf16 %v5643_v28, %v5643_v28  ;;  %v5961_v26 = vunpack.c.l.b16 %v6540_v31  ;;  %v4272_v31 = vpop.f32.mrf.mxu1 }
 0x327   : > { %v5962_v46 = vunpack.c.l.b16 %v6541_v11  ;;  %v6028_v62 = vsel %vm349_vm10, %v5960_v35, %v8917_v59  ;;  %v5346_v22 = vadd.f32 %v5345_v24, %v5344_v18  ;;  %v5352_v34 = vrot.slane %v5351_v3, 1 }
 0x328   : > { %v5359_v39 = vrot.slane %v5358_v51, 1  ;;  %v5365_v5 = vadd.f32 %v5364_v25, %v5363_v10  ;;  %v5963_v19 = vunpack.c.l.b16 %v6542_v4  ;;  %v6029_v43 = vsel %vm6012_vm11, %v5961_v26, %v6028_v62 }
 0x329   : > { %v4962_v23 = vrot.slane %v4811_v13, %v8800_v45  ;;  %v4969_v21 = vrot.slane %v4955_v32, %v8800_v45  ;;  %v6030_v37 = vsel %vm6014_vm12, %v5962_v46, %v6029_v43  ;;  %v5353_v30 = vadd.f32 %v5352_v34, %v5351_v3 }
 0x32a   : > { %v5360_v38 = vadd.f32 %v5359_v39, %v5358_v51  ;;  %v5366_v29 = vrot.slane %v5365_v5, 1  ;;  %v6031_v33 = vsel %vm6016_vm13, %v5963_v19, %v6030_v37  ;;  %v5644_v59 = vmul.f32 0.25, %v5346_v22  ;;  %v6841_v22 = vpop.f32.mrf.mxu0 }
 0x32b   : > { %v4970_v63 = vcombine.high %v4962_v23, %v4962_v23  ;;  %v4971_v52 = vcombine.high %v4969_v21, %v4969_v21  ;;  %v6069_v42 = vpack.c.b16 %v6031_v33, %v6031_v33  ;;  %v5645_v44 = vmul.f32 0.25, %v5353_v30 }
 0x32c   : > { %v5367_v58 = vadd.f32 %v5366_v29, %v5365_v5  ;;  %v5646_v1 = vmul.f32 0.25, %v5360_v38  ;;  %v6543_v16 = vpack.c.bf16 %v5644_v59, %v5644_v59  ;;  %v5368_v13 = vsel %vm2640_vm3, %v4962_v23, 0.0 }
 0x32d   : > { %v5375_v32 = vsel %vm2640_vm3, %v4970_v63, 0.0  ;;  %v5382_v6 = vsel %vm2640_vm3, %v4969_v21, 0.0  ;;  %6085 = vst [vmem:[%s8858_s19 + $0x8] sm:$0xf] %v6069_v42  ;;  %v6544_v61 = vpack.c.bf16 %v5645_v44, %v5645_v44  ;;  %v5369_v18 = vrot.slane %v5368_v13, 4  ;;  %v6808_v21 = vpop.f32.mrf.mxu1 }
 0x32e   : > { %v5647_v60 = vmul.f32 0.25, %v5367_v58  ;;  %v6545_v36 = vpack.c.bf16 %v5646_v1, %v5646_v1  ;;  %v5964_v53 = vunpack.c.l.b16 %v6543_v16  ;;  %v5376_v49 = vrot.slane %v5375_v32, 4 }
 0x32f   : > { %v5383_v10 = vrot.slane %v5382_v6, 4  ;;  %v5389_v28 = vsel %vm2640_vm3, %v4971_v52, 0.0  ;;  %v5965_v35 = vunpack.c.l.b16 %v6544_v61  ;;  %v5370_v3 = vadd.f32 %v5369_v18, %v5368_v13  ;;  %v4641_v52 = vpop.f32.mrf.mxu0 }
 0x330   : > { %v6546_v11 = vpack.c.bf16 %v5647_v60, %v5647_v60  ;;  %v5966_v24 = vunpack.c.l.b16 %v6545_v36  ;;  %v5377_v51 = vadd.f32 %v5376_v49, %v5375_v32  ;;  %v5390_v4 = vrot.slane %v5389_v28, 4 }
 0x331   : > { %v5384_v25 = vadd.f32 %v5383_v10, %v5382_v6  ;;  %v4756_v26 = vadd.f32 %v8794_v0, %v8926_v12  ;;  %v6032_v62 = vsel %vm6004_vm0, %v5965_v35, %v5964_v53  ;;  %v5371_v34 = vrot.slane %v5370_v3, 2 }
 0x332   : > { %v5967_v46 = vunpack.c.l.b16 %v6546_v11  ;;  %v4351_v39 = vadd.f32 %v6805_v20, %v8740_v40  ;;  %v6033_v5 = vsel %vm6006_vm2, %v5966_v24, %v6032_v62  ;;  %v5378_v19 = vrot.slane %v5377_v51, 2 }
 0x333   : > { %v5385_v43 = vrot.slane %v5384_v25, 2  ;;  %v5391_v23 = vadd.f32 %v5390_v4, %v5389_v28  ;;  %v5372_v37 = vadd.f32 %v5371_v34, %v5370_v3  ;;  %v4788_v38 = vmax.f32 %v4756_v26, 0.0 }
 0x334   : > { %v6034_v30 = vsel %vm6008_vm7, %v5967_v46, %v6033_v5  ;;  %v4720_v29 = vadd.f32 %v6841_v22, %v4351_v39  ;;  %v5379_v33 = vadd.f32 %v5378_v19, %v5377_v51  ;;  %v4349_v63 = vadd.f32 %v4272_v31, %v8743_v50 }
 0x335   : > { %v5386_v12 = vadd.f32 %v5385_v43, %v5384_v25  ;;  %v5392_v59 = vrot.slane %v5391_v23, 2  ;;  %v5373_v42 = vrot.slane %v5372_v37, 1  ;;  %v4812_v40 = vadd.f32 %v4790_v15, %v4788_v38 }
 0x336   : > { %v4759_v20 = vadd.f32 %v8794_v0, %v4720_v29  ;;  %v4354_v58 = vadd.f32 %v6808_v21, %v8746_v2  ;;  %v5380_v44 = vrot.slane %v5379_v33, 1  ;;  %v4718_v13 = vadd.f32 %v4641_v52, %v4349_v63 }
 0x337   : > { %v5387_v1 = vrot.slane %v5386_v12, 1  ;;  %v5393_v16 = vadd.f32 %v5392_v59, %v5391_v23  ;;  %v5374_v32 = vadd.f32 %v5373_v42, %v5372_v37  ;;  %v4972_v6 = vcombine.high %v4812_v40, %v4812_v40  ;;  %v6844_v42 = vpop.f32.mrf.mxu0 }
 0x338   : > { %v4979_v60 = vrot.slane %v4812_v40, %v8800_v45  ;;  %v4791_v61 = vmax.f32 %v4759_v20, 0.0  ;;  %v5381_v36 = vadd.f32 %v5380_v44, %v5379_v33  ;;  %v4757_v0 = vadd.f32 %v8962_v27, %v4718_v13 }
 0x339   : > { %v5388_v50 = vadd.f32 %v5387_v1, %v5386_v12  ;;  %v5394_v18 = vrot.slane %v5393_v16, 1  ;;  %v5648_v2 = vmul.f32 0.25, %v5374_v32  ;;  %v4986_v15 = vrot.slane %v4972_v6, %v8800_v45  ;;  %v4285_v32 = vpop.f32.mrf.mxu1 }
 0x33a   : > { %v4987_v53 = vcombine.high %v4979_v60, %v4979_v60  ;;  %v5396_v49 = vsel %vm2640_vm3, %v4979_v60, 0.0  ;;  %v5649_v28 = vmul.f32 0.25, %v5381_v36  ;;  %v4789_v63 = vmax.f32 %v4757_v0, 0.0 }
 0x33b   : > { %v5395_v10 = vadd.f32 %v5394_v18, %v5393_v16  ;;  %v5650_v31 = vmul.f32 0.25, %v5388_v50  ;;  %v5397_v11 = vrot.slane %v5396_v49, 4  ;;  %v6547_v35 = vpack.c.bf16 %v5648_v2, %v5648_v2 }
 0x33c   : > { %v4988_v24 = vcombine.high %v4986_v15, %v4986_v15  ;;  %v5403_v3 = vsel %vm2640_vm3, %v4987_v53, 0.0  ;;  %v5410_v51 = vsel %vm2640_vm3, %v4986_v15, 0.0  ;;  %v6548_v4 = vpack.c.bf16 %v5649_v28, %v5649_v28 }
 0x33d   : > { %v5651_v25 = vmul.f32 0.25, %v5395_v10  ;;  %v6549_v26 = vpack.c.bf16 %v5650_v31, %v5650_v31  ;;  %v5398_v46 = vadd.f32 %v5397_v11, %v5396_v49  ;;  %v5968_v62 = vunpack.c.l.b16 %v6547_v35 }
 0x33e   : > { %v5404_v22 = vrot.slane %v5403_v3, 4  ;;  %v5411_v34 = vrot.slane %v5410_v51, 4  ;;  %v5417_v39 = vsel %vm2640_vm3, %v4988_v24, 0.0  ;;  %v5969_v19 = vunpack.c.l.b16 %v6548_v4 }
 0x33f   : > { %v6550_v5 = vpack.c.bf16 %v5651_v25, %v5651_v25  ;;  %v5970_v43 = vunpack.c.l.b16 %v6549_v26  ;;  %v5399_v23 = vrot.slane %v5398_v46, 2  ;;  %v6035_v21 = vsel %vm349_vm10, %v5968_v62, %v6034_v30  ;;  %v4654_v25 = vpop.f32.mrf.mxu0 }
 0x340   : > { %v5405_v37 = vadd.f32 %v5404_v22, %v5403_v3  ;;  %v5412_v38 = vadd.f32 %v5411_v34, %v5410_v51  ;;  %v5418_v29 = vrot.slane %v5417_v39, 4  ;;  %v6036_v12 = vsel %vm6012_vm11, %v5969_v19, %v6035_v21  ;;  %v6809_v22 = vpop.f32.mrf.mxu1 }
 0x341   : > { %v5971_v33 = vunpack.c.l.b16 %v6550_v5  ;;  %v5400_v59 = vadd.f32 %v5399_v23, %v5398_v46  ;;  %v6037_v52 = vsel %vm6014_vm12, %v5970_v43, %v6036_v12  ;;  %v4813_v13 = vadd.f32 %v4791_v61, %v4789_v63  ;;  %v6845_v12 = vpop.f32.mrf.mxu0 }
 0x342   : > { %v5406_v40 = vrot.slane %v5405_v37, 2  ;;  %v5413_v20 = vrot.slane %v5412_v38, 2  ;;  %v5419_v44 = vadd.f32 %v5418_v29, %v5417_v39  ;;  %v4723_v30 = vadd.f32 %v6844_v42, %v4354_v58 }
 0x343   : > { %v6038_v1 = vsel %vm6016_vm13, %v5971_v33, %v6037_v52  ;;  %v5401_v16 = vrot.slane %v5400_v59, 1  ;;  %v4989_v2 = vcombine.high %v4813_v13, %v4813_v13  ;;  %v4996_v0 = vrot.slane %v4813_v13, %v8800_v45 }
 0x344   : > { %v6070_v6 = vpack.c.b16 %v6038_v1, %v6038_v1  ;;  %v5407_v60 = vadd.f32 %v5406_v40, %v5405_v37  ;;  %v5414_v36 = vadd.f32 %v5413_v20, %v5412_v38  ;;  %v5420_v50 = vrot.slane %v5419_v44, 2  ;;  %v4288_v40 = vpop.f32.mrf.mxu1 }
 0x345   : > { %v5402_v18 = vadd.f32 %v5401_v16, %v5400_v59  ;;  %v8976_v15 = vadd.f32 %v8962_v27, %v4723_v30  ;;  %v4352_v28 = vadd.f32 %v4285_v32, %v8749_v47  ;;  %v5003_v58 = vrot.slane %v4989_v2, %v8800_v45 }
 0x346   : > { %6086 = vst [vmem:[%s8858_s19 + $0xc] sm:$0xf] %v6070_v6  ;;  %v5408_v53 = vrot.slane %v5407_v60, 1  ;;  %v5415_v49 = vrot.slane %v5414_v36, 1  ;;  %v5421_v10 = vadd.f32 %v5420_v50, %v5419_v44  ;;  %v5004_v31 = vcombine.high %v4996_v0, %v4996_v0 }
 0x347   : > { %v5652_v61 = vmul.f32 0.25, %v5402_v18  ;;  %v5424_v11 = vsel %vm2640_vm3, %v4996_v0, 0.0  ;;  %v5005_v26 = vcombine.high %v5003_v58, %v5003_v58  ;;  %v5438_v62 = vsel %vm2640_vm3, %v5003_v58, 0.0  ;;  %v4657_v0 = vpop.f32.mrf.mxu0 }
 0x348   : > { %v5409_v35 = vadd.f32 %v5408_v53, %v5407_v60  ;;  %v5416_v24 = vadd.f32 %v5415_v49, %v5414_v36  ;;  %v5422_v3 = vrot.slane %v5421_v10, 1  ;;  %v5425_v51 = vrot.slane %v5424_v11, 4 }
 0x349   : > { %v6551_v4 = vpack.c.bf16 %v5652_v61, %v5652_v61  ;;  %v5431_v46 = vsel %vm2640_vm3, %v5004_v31, 0.0  ;;  %v5439_v23 = vrot.slane %v5438_v62, 4  ;;  %v5445_v21 = vsel %vm2640_vm3, %v5005_v26, 0.0 }
 0x34a   : > { %v5423_v34 = vadd.f32 %v5422_v3, %v5421_v10  ;;  %v5653_v47 = vmul.f32 0.25, %v5409_v35  ;;  %v5654_v39 = vmul.f32 0.25, %v5416_v24  ;;  %v5426_v5 = vadd.f32 %v5425_v51, %v5424_v11  ;;  %v6812_v10 = vpop.f32.mrf.mxu1 }
 0x34b   : > { %v5972_v19 = vunpack.c.l.b16 %v6551_v4  ;;  %v5432_v43 = vrot.slane %v5431_v46, 4  ;;  %v5440_v63 = vadd.f32 %v5439_v23, %v5438_v62  ;;  %v5446_v52 = vrot.slane %v5445_v21, 4 }
 0x34c   : > { %v5655_v37 = vmul.f32 0.25, %v5423_v34  ;;  %v6552_v38 = vpack.c.bf16 %v5653_v47, %v5653_v47  ;;  %v6553_v29 = vpack.c.bf16 %v5654_v39, %v5654_v39  ;;  %v5427_v33 = vrot.slane %v5426_v5, 2 }
 0x34d   : > { %v5433_v59 = vadd.f32 %v5432_v43, %v5431_v46  ;;  %v4794_v42 = vmax.f32 %v8976_v15, 0.0  ;;  %v5441_v30 = vrot.slane %v5440_v63, 2  ;;  %v5447_v32 = vadd.f32 %v5446_v52, %v5445_v21 }
 0x34e   : > { %v6554_v20 = vpack.c.bf16 %v5655_v37, %v5655_v37  ;;  %v5973_v44 = vunpack.c.l.b16 %v6552_v38  ;;  %v5974_v1 = vunpack.c.l.b16 %v6553_v29  ;;  %v5428_v16 = vadd.f32 %v5427_v33, %v5426_v5 }
 0x34f   : > { %v5434_v13 = vrot.slane %v5433_v59, 2  ;;  %v4721_v6 = vadd.f32 %v4654_v25, %v4352_v28  ;;  %v4355_v18 = vadd.f32 %v6809_v22, %v8752_v41  ;;  %v5442_v15 = vadd.f32 %v5441_v30, %v5440_v63  ;;  %v6848_v22 = vpop.f32.mrf.mxu0 }
 0x350   : > { %v5975_v60 = vunpack.c.l.b16 %v6554_v20  ;;  %v6039_v36 = vsel %vm6004_vm0, %v5973_v44, %v5972_v19  ;;  %v5429_v50 = vrot.slane %v5428_v16, 1  ;;  %v5448_v49 = vrot.slane %v5447_v32, 2 }
 0x351   : > { %v6040_v2 = vsel %vm6006_vm2, %v5974_v1, %v6039_v36  ;;  %v5435_v53 = vadd.f32 %v5434_v13, %v5433_v59  ;;  %v4760_v31 = vadd.f32 %v8962_v27, %v4721_v6  ;;  %v4724_v11 = vadd.f32 %v6845_v12, %v4355_v18 }
 0x352   : > { %v5430_v61 = vadd.f32 %v5429_v50, %v5428_v16  ;;  %v6041_v58 = vsel %vm6008_vm7, %v5975_v60, %v6040_v2  ;;  %v5443_v35 = vrot.slane %v5442_v15, 1  ;;  %v5449_v24 = vadd.f32 %v5448_v49, %v5447_v32 }
 0x353   : > { %v5436_v28 = vrot.slane %v5435_v53, 1  ;;  %v4353_v3 = vadd.f32 %v4288_v40, %v8755_v56  ;;  %v4792_v41 = vmax.f32 %v4760_v31, 0.0  ;;  %v4763_v25 = vadd.f32 %v8962_v27, %v4724_v11 }
 0x354   : > { %v5656_v51 = vmul.f32 0.25, %v5430_v61  ;;  %v4358_v4 = vadd.f32 %v6812_v10, %v8760_v14  ;;  %v5444_v46 = vadd.f32 %v5443_v35, %v5442_v15  ;;  %v5450_v62 = vrot.slane %v5449_v24, 1 }
 0x355   : > { %v5437_v26 = vadd.f32 %v5436_v28, %v5435_v53  ;;  %v4722_v34 = vadd.f32 %v4657_v0, %v4353_v3  ;;  %v4814_v39 = vadd.f32 %v4794_v42, %v4792_v41  ;;  %v4795_v5 = vmax.f32 %v4763_v25, 0.0 }
 0x356   : > { %v6555_v47 = vpack.c.bf16 %v5656_v51, %v5656_v51  ;;  %v4727_v19 = vadd.f32 %v6848_v22, %v4358_v4  ;;  %v5451_v43 = vadd.f32 %v5450_v62, %v5449_v24  ;;  %v5658_v21 = vmul.f32 0.25, %v5444_v46 }
 0x357   : > { %v5657_v23 = vmul.f32 0.25, %v5437_v26  ;;  %v4761_v56 = vadd.f32 %v8962_v27, %v4722_v34  ;;  %v5006_v38 = vcombine.high %v4814_v39, %v4814_v39  ;;  %v5013_v29 = vrot.slane %v4814_v39, %v8800_v45 }
 0x358   : > { %v5976_v37 = vunpack.c.l.b16 %v6555_v47  ;;  %v8997_v14 = vadd.f32 %v8962_v27, %v4727_v19  ;;  %v5659_v33 = vmul.f32 0.25, %v5451_v43  ;;  %v6557_v59 = vpack.c.bf16 %v5658_v21, %v5658_v21 }
 0x359   : > { %v6556_v12 = vpack.c.bf16 %v5657_v23, %v5657_v23  ;;  %v4793_v63 = vmax.f32 %v4761_v56, 0.0  ;;  %v5020_v42 = vrot.slane %v5006_v38, %v8800_v45  ;;  %v5021_v40 = vcombine.high %v5013_v29, %v5013_v29 }
 0x35a   : > { %v6042_v52 = vsel %vm349_vm10, %v5976_v37, %v6041_v58  ;;  %v5452_v20 = vsel %vm2640_vm3, %v5013_v29, 0.0  ;;  %v6558_v44 = vpack.c.bf16 %v5659_v33, %v5659_v33  ;;  %v5978_v16 = vunpack.c.l.b16 %v6557_v59 }
 0x35b   : > { %v5977_v1 = vunpack.c.l.b16 %v6556_v12  ;;  %v5453_v13 = vrot.slane %v5452_v20, 4  ;;  %v5022_v30 = vcombine.high %v5020_v42, %v5020_v42  ;;  %v5459_v32 = vsel %vm2640_vm3, %v5021_v40, 0.0 }
 0x35c   : > { %v5466_v6 = vsel %vm2640_vm3, %v5020_v42, 0.0  ;;  %v4815_v60 = vadd.f32 %v4795_v5, %v4793_v63  ;;  %v5979_v36 = vunpack.c.l.b16 %v6558_v44  ;;  %v5460_v2 = vrot.slane %v5459_v32, 4  ;;  %v4301_v5 = vpop.f32.mrf.mxu1 }
 0x35d   : > { %v6043_v50 = vsel %vm6012_vm11, %v5977_v1, %v6042_v52  ;;  %v5454_v18 = vadd.f32 %v5453_v13, %v5452_v20  ;;  %v5467_v53 = vrot.slane %v5466_v6, 4  ;;  %v5473_v15 = vsel %vm2640_vm3, %v5022_v30, 0.0 }
 0x35e   : > { %v6044_v0 = vsel %vm6014_vm12, %v5978_v16, %v6043_v50  ;;  %v5023_v49 = vcombine.high %v4815_v60, %v4815_v60  ;;  %v5461_v58 = vadd.f32 %v5460_v2, %v5459_v32  ;;  %v5474_v31 = vrot.slane %v5473_v15, 4  ;;  %v6813_v44 = vpop.f32.mrf.mxu1  ;;  %v4670_v50 = vpop.f32.mrf.mxu0 }
 0x35f   : > { %v6045_v10 = vsel %vm6016_vm13, %v5979_v36, %v6044_v0  ;;  %v5455_v61 = vrot.slane %v5454_v18, 2  ;;  %v5468_v28 = vadd.f32 %v5467_v53, %v5466_v6  ;;  %v5030_v35 = vrot.slane %v4815_v60, %v8800_v45 }
 0x360   : > { %v6071_v11 = vpack.c.b16 %v6045_v10, %v6045_v10  ;;  %v5037_v24 = vrot.slane %v5023_v49, %v8800_v45  ;;  %v5462_v51 = vrot.slane %v5461_v58, 2  ;;  %v5475_v41 = vadd.f32 %v5474_v31, %v5473_v15 }
 0x361   : > { %v5456_v3 = vadd.f32 %v5455_v61, %v5454_v18  ;;  %v4798_v25 = vmax.f32 %v8997_v14, 0.0  ;;  %v5469_v4 = vrot.slane %v5468_v28, 2  ;;  %v5038_v26 = vcombine.high %v5030_v35, %v5030_v35 }
 0x362   : > { %6087 = vst [vmem:[%s8858_s19 + $0x10] sm:$0xf] %v6071_v11  ;;  %v5039_v46 = vcombine.high %v5037_v24, %v5037_v24  ;;  %v5480_v62 = vsel %vm2640_vm3, %v5030_v35, 0.0  ;;  %v5463_v34 = vadd.f32 %v5462_v51, %v5461_v58  ;;  %v5476_v47 = vrot.slane %v5475_v41, 2  ;;  %v4304_v58 = vpop.f32.mrf.mxu1 }
 0x363   : > { %v5457_v22 = vrot.slane %v5456_v3, 1  ;;  %v5481_v39 = vrot.slane %v5480_v62, 4  ;;  %v5470_v19 = vadd.f32 %v5469_v4, %v5468_v28  ;;  %v5487_v43 = vsel %vm2640_vm3, %v5038_v26, 0.0  ;;  %v6849_v26 = vpop.f32.mrf.mxu0 }
 0x364   : > { %v5494_v23 = vsel %vm2640_vm3, %v5037_v24, 0.0  ;;  %v5501_v21 = vsel %vm2640_vm3, %v5039_v46, 0.0  ;;  %v5464_v37 = vrot.slane %v5463_v34, 1  ;;  %v5477_v38 = vadd.f32 %v5476_v47, %v5475_v41 }
 0x365   : > { %v5458_v56 = vadd.f32 %v5457_v22, %v5456_v3  ;;  %v5482_v29 = vadd.f32 %v5481_v39, %v5480_v62  ;;  %v5471_v33 = vrot.slane %v5470_v19, 1  ;;  %v5488_v12 = vrot.slane %v5487_v43, 4 }
 0x366   : > { %v5495_v59 = vrot.slane %v5494_v23, 4  ;;  %v5502_v63 = vrot.slane %v5501_v21, 4  ;;  %v5465_v52 = vadd.f32 %v5464_v37, %v5463_v34  ;;  %v5478_v42 = vrot.slane %v5477_v38, 1 }
 0x367   : > { %v5660_v40 = vmul.f32 0.25, %v5458_v56  ;;  %v5483_v20 = vrot.slane %v5482_v29, 2  ;;  %v5472_v1 = vadd.f32 %v5471_v33, %v5470_v19  ;;  %v5489_v16 = vadd.f32 %v5488_v12, %v5487_v43  ;;  %v6816_v43 = vpop.f32.mrf.mxu1  ;;  %v4673_v33 = vpop.f32.mrf.mxu0 }
 0x368   : > { %v5496_v13 = vadd.f32 %v5495_v59, %v5494_v23  ;;  %v5503_v30 = vadd.f32 %v5502_v63, %v5501_v21  ;;  %v5479_v32 = vadd.f32 %v5478_v42, %v5477_v38  ;;  %v5661_v6 = vmul.f32 0.25, %v5465_v52 }
 0x369   : > { %v6559_v60 = vpack.c.bf16 %v5660_v40, %v5660_v40  ;;  %v5484_v36 = vadd.f32 %v5483_v20, %v5482_v29  ;;  %v5662_v18 = vmul.f32 0.25, %v5472_v1  ;;  %v5490_v2 = vrot.slane %v5489_v16, 2 }
 0x36a   : > { %v5497_v0 = vrot.slane %v5496_v13, 2  ;;  %v5504_v53 = vrot.slane %v5503_v30, 2  ;;  %v5663_v15 = vmul.f32 0.25, %v5479_v32  ;;  %v6560_v49 = vpack.c.bf16 %v5661_v6, %v5661_v6  ;;  %v6852_v6 = vpop.f32.mrf.mxu0 }
 0x36b   : > { %v5980_v10 = vunpack.c.l.b16 %v6559_v60  ;;  %v5485_v61 = vrot.slane %v5484_v36, 1  ;;  %v6561_v31 = vpack.c.bf16 %v5662_v18, %v5662_v18  ;;  %v5491_v11 = vadd.f32 %v5490_v2, %v5489_v16  ;;  %v4317_v16 = vpop.f32.mrf.mxu1 }
 0x36c   : > { %v5498_v28 = vadd.f32 %v5497_v0, %v5496_v13  ;;  %v5505_v35 = vadd.f32 %v5504_v53, %v5503_v30  ;;  %v6562_v24 = vpack.c.bf16 %v5663_v15, %v5663_v15  ;;  %v5981_v3 = vunpack.c.l.b16 %v6560_v49 }
 0x36d   : > { %v5486_v51 = vadd.f32 %v5485_v61, %v5484_v36  ;;  %v4356_v41 = vadd.f32 %v4301_v5, %v8765_v17  ;;  %v5982_v4 = vunpack.c.l.b16 %v6561_v31  ;;  %v5492_v46 = vrot.slane %v5491_v11, 1  ;;  %v6817_v49 = vpop.f32.mrf.mxu1 }
 0x36e   : > { %v5499_v62 = vrot.slane %v5498_v28, 1  ;;  %v5506_v22 = vrot.slane %v5505_v35, 1  ;;  %v5983_v34 = vunpack.c.l.b16 %v6562_v24  ;;  %v6046_v47 = vsel %vm6004_vm0, %v5981_v3, %v5980_v10 }
 0x36f   : > { %v5664_v39 = vmul.f32 0.25, %v5486_v51  ;;  %v4725_v19 = vadd.f32 %v4670_v50, %v4356_v41  ;;  %v6047_v23 = vsel %vm6006_vm2, %v5982_v4, %v6046_v47  ;;  %v5493_v21 = vadd.f32 %v5492_v46, %v5491_v11  ;;  %v4686_v47 = vpop.f32.mrf.mxu0 }
 0x370   : > { %v5500_v56 = vadd.f32 %v5499_v62, %v5498_v28  ;;  %v5507_v37 = vadd.f32 %v5506_v22, %v5505_v35  ;;  %v6048_v29 = vsel %vm6008_vm7, %v5983_v34, %v6047_v23  ;;  %v4359_v5 = vadd.f32 %v6813_v44, %v8768_v48 }
 0x371   : > { %v6563_v38 = vpack.c.bf16 %v5664_v39, %v5664_v39  ;;  %v4764_v17 = vadd.f32 %v8962_v27, %v4725_v19  ;;  %v5665_v12 = vmul.f32 0.25, %v5493_v21  ;;  %v4357_v52 = vadd.f32 %v4304_v58, %v8771_v9 }
 0x372   : > { %v5666_v59 = vmul.f32 0.25, %v5500_v56  ;;  %v5667_v63 = vmul.f32 0.25, %v5507_v37  ;;  %v4728_v20 = vadd.f32 %v6849_v26, %v4359_v5  ;;  %v4362_v1 = vadd.f32 %v6816_v43, %v8776_v7 }
 0x373   : > { %v5984_v42 = vunpack.c.l.b16 %v6563_v38  ;;  %v4796_v40 = vmax.f32 %v4764_v17, 0.0  ;;  %v6564_v13 = vpack.c.bf16 %v5665_v12, %v5665_v12  ;;  %v4726_v60 = vadd.f32 %v4673_v33, %v4357_v52 }
 0x374   : > { %v6565_v30 = vpack.c.bf16 %v5666_v59, %v5666_v59  ;;  %v6566_v32 = vpack.c.bf16 %v5667_v63, %v5667_v63  ;;  %v4767_v44 = vadd.f32 %v8962_v27, %v4728_v20  ;;  %v4731_v50 = vadd.f32 %v6852_v6, %v4362_v1 }
 0x375   : > { %v6049_v36 = vsel %vm349_vm10, %v5984_v42, %v6048_v29  ;;  %v4816_v48 = vadd.f32 %v4798_v25, %v4796_v40  ;;  %v5985_v9 = vunpack.c.l.b16 %v6564_v13  ;;  %v4765_v0 = vadd.f32 %v8962_v27, %v4726_v60 }
 0x376   : > { %v5986_v18 = vunpack.c.l.b16 %v6565_v30  ;;  %v5987_v2 = vunpack.c.l.b16 %v6566_v32  ;;  %v4799_v15 = vmax.f32 %v4767_v44, 0.0  ;;  %v9032_v58 = vadd.f32 %v8962_v27, %v4731_v50 }
 0x377   : > { %v5040_v7 = vcombine.high %v4816_v48, %v4816_v48  ;;  %v5047_v53 = vrot.slane %v4816_v48, %v8800_v45  ;;  %v6050_v10 = vsel %vm6012_vm11, %v5985_v9, %v6049_v36  ;;  %v4797_v61 = vmax.f32 %v4765_v0, 0.0 }
 0x378   : > { %v4360_v14 = vadd.f32 %v4317_v16, %v8780_v55  ;;  %v6051_v25 = vsel %vm6014_vm12, %v5986_v18, %v6050_v10  ;;  %v9040_v51 = vadd.f32 %v6817_v49, %v8813_v54  ;;  %v4802_v43 = vmax.f32 %v9032_v58, 0.0 }
 0x379   : > { %v5054_v31 = vrot.slane %v5040_v7, %v8800_v45  ;;  %v5055_v11 = vcombine.high %v5047_v53, %v5047_v53  ;;  %v5508_v28 = vsel %vm2640_vm3, %v5047_v53, 0.0  ;;  %v6052_v35 = vsel %vm6016_vm13, %v5987_v2, %v6051_v25 }
 0x37a   : > { %v5509_v24 = vrot.slane %v5508_v28, 4  ;;  %v4817_v3 = vadd.f32 %v4799_v15, %v4797_v61  ;;  %v6072_v41 = vpack.c.b16 %v6052_v35, %v6052_v35  ;;  %v4729_v54 = vadd.f32 %v4686_v47, %v4360_v14 }
 0x37b   : > { %v5056_v4 = vcombine.high %v5054_v31, %v5054_v31  ;;  %v5515_v26 = vsel %vm2640_vm3, %v5055_v11, 0.0  ;;  %v5522_v55 = vsel %vm2640_vm3, %v5054_v31, 0.0 }
 0x37c   : > { %v5510_v46 = vadd.f32 %v5509_v24, %v5508_v28  ;;  %v5516_v62 = vrot.slane %v5515_v26, 4  ;;  %v5523_v22 = vrot.slane %v5522_v55, 4  ;;  %v5057_v34 = vcombine.high %v4817_v3, %v4817_v3  ;;  %6088 = vst [vmem:[%s8858_s19 + $0x14] sm:$0xf] %v6072_v41 }
 0x37d   : > { %v5529_v39 = vsel %vm2640_vm3, %v5056_v4, 0.0  ;;  %v5064_v19 = vrot.slane %v4817_v3, %v8800_v45  ;;  %v4768_v5 = vadd.f32 %v8962_v27, %v4729_v54 }
 0x37e   : > { %v5511_v23 = vrot.slane %v5510_v46, 2  ;;  %v5517_v21 = vadd.f32 %v5516_v62, %v5515_v26  ;;  %v5524_v56 = vadd.f32 %v5523_v22, %v5522_v55  ;;  %v5530_v37 = vrot.slane %v5529_v39, 4 }
 0x37f   : > { %v5071_v38 = vrot.slane %v5057_v34, %v8800_v45  ;;  %v5072_v29 = vcombine.high %v5064_v19, %v5064_v19  ;;  %v5536_v17 = vsel %vm2640_vm3, %v5064_v19, 0.0 }
 0x380   : > { %v5512_v33 = vadd.f32 %v5511_v23, %v5510_v46  ;;  %v5518_v12 = vrot.slane %v5517_v21, 2  ;;  %v5525_v59 = vrot.slane %v5524_v56, 2  ;;  %v5531_v63 = vadd.f32 %v5530_v37, %v5529_v39 }
 0x381   : > { %v5073_v52 = vcombine.high %v5071_v38, %v5071_v38  ;;  %v5537_v42 = vrot.slane %v5536_v17, 4  ;;  %v5543_v40 = vsel %vm2640_vm3, %v5072_v29, 0.0  ;;  %v5550_v20 = vsel %vm2640_vm3, %v5071_v38, 0.0 }
 0x382   : > { %v5513_v1 = vrot.slane %v5512_v33, 1  ;;  %v5519_v16 = vadd.f32 %v5518_v12, %v5517_v21  ;;  %v5526_v13 = vadd.f32 %v5525_v59, %v5524_v56  ;;  %v5532_v30 = vrot.slane %v5531_v63, 2 }
 0x383   : > { %v5538_v32 = vadd.f32 %v5537_v42, %v5536_v17  ;;  %v5544_v6 = vrot.slane %v5543_v40, 4  ;;  %v5551_v60 = vrot.slane %v5550_v20, 4  ;;  %v5557_v36 = vsel %vm2640_vm3, %v5073_v52, 0.0 }
 0x384   : > { %v5514_v48 = vadd.f32 %v5513_v1, %v5512_v33  ;;  %v5520_v44 = vrot.slane %v5519_v16, 1  ;;  %v5527_v50 = vrot.slane %v5526_v13, 1  ;;  %v5533_v9 = vadd.f32 %v5532_v30, %v5531_v63 }
 0x385   : > { %v5539_v18 = vrot.slane %v5538_v32, 2  ;;  %v5545_v2 = vadd.f32 %v5544_v6, %v5543_v40  ;;  %v5552_v0 = vadd.f32 %v5551_v60, %v5550_v20  ;;  %v5558_v7 = vrot.slane %v5557_v36, 4  ;;  %v6853_v20 = vpop.f32.mrf.mxu0 }
 0x386   : > { %v5521_v53 = vadd.f32 %v5520_v44, %v5519_v16  ;;  %v5528_v15 = vadd.f32 %v5527_v50, %v5526_v13  ;;  %v5534_v49 = vrot.slane %v5533_v9, 1  ;;  %v5668_v10 = vmul.f32 0.25, %v5514_v48 }
 0x387   : > { %v5540_v61 = vadd.f32 %v5539_v18, %v5538_v32  ;;  %v5546_v14 = vrot.slane %v5545_v2, 2  ;;  %v5553_v25 = vrot.slane %v5552_v0, 2  ;;  %v5559_v31 = vadd.f32 %v5558_v7, %v5557_v36 }
 0x388   : > { %v5535_v11 = vadd.f32 %v5534_v49, %v5533_v9  ;;  %v5669_v28 = vmul.f32 0.25, %v5521_v53  ;;  %v5670_v35 = vmul.f32 0.25, %v5528_v15  ;;  %v6567_v24 = vpack.c.bf16 %v5668_v10, %v5668_v10 }
 0x389   : > { %v5541_v3 = vrot.slane %v5540_v61, 1  ;;  %v5547_v41 = vadd.f32 %v5546_v14, %v5545_v2  ;;  %v5554_v4 = vadd.f32 %v5553_v25, %v5552_v0  ;;  %v5560_v26 = vrot.slane %v5559_v31, 2 }
 0x38a   : > { %v5671_v55 = vmul.f32 0.25, %v5535_v11  ;;  %v6568_v46 = vpack.c.bf16 %v5669_v28, %v5669_v28  ;;  %v6569_v62 = vpack.c.bf16 %v5670_v35, %v5670_v35  ;;  %v5988_v22 = vunpack.c.l.b16 %v6567_v24 }
 0x38b   : > { %v5542_v34 = vadd.f32 %v5541_v3, %v5540_v61  ;;  %v5548_v47 = vrot.slane %v5547_v41, 1  ;;  %v5555_v39 = vrot.slane %v5554_v4, 1  ;;  %v5561_v19 = vadd.f32 %v5560_v26, %v5559_v31  ;;  %v4320_v61 = vpop.f32.mrf.mxu1 }
 0x38c   : > { %v6570_v54 = vpack.c.bf16 %v5671_v55, %v5671_v55  ;;  %v5989_v23 = vunpack.c.l.b16 %v6568_v46  ;;  %v5990_v21 = vunpack.c.l.b16 %v6569_v62  ;;  %v4800_v56 = vmax.f32 %v4768_v5, 0.0 }
 0x38d   : > { %v5549_v37 = vadd.f32 %v5548_v47, %v5547_v41  ;;  %v5556_v38 = vadd.f32 %v5555_v39, %v5554_v4  ;;  %v5562_v29 = vrot.slane %v5561_v19, 1  ;;  %v5672_v17 = vmul.f32 0.25, %v5542_v34 }
 0x38e   : > { %v5991_v33 = vunpack.c.l.b16 %v6570_v54  ;;  %v6053_v12 = vsel %vm6004_vm0, %v5989_v23, %v5988_v22  ;;  %v4818_v59 = vadd.f32 %v4802_v43, %v4800_v56  ;;  %v4732_v13 = vadd.f32 %v6853_v20, %v9040_v51  ;;  %v4689_v22 = vpop.f32.mrf.mxu0 }
 0x38f   : > { %v6054_v63 = vsel %vm6006_vm2, %v5990_v21, %v6053_v12  ;;  %v5563_v52 = vadd.f32 %v5562_v29, %v5561_v19  ;;  %v5673_v42 = vmul.f32 0.25, %v5549_v37  ;;  %v5674_v40 = vmul.f32 0.25, %v5556_v38 }
 0x390   : > { %v6571_v1 = vpack.c.bf16 %v5672_v17, %v5672_v17  ;;  %v5074_v16 = vcombine.high %v4818_v59, %v4818_v59  ;;  %v5081_v5 = vrot.slane %v4818_v59, %v8800_v45  ;;  %v6055_v60 = vsel %vm6008_vm7, %v5991_v33, %v6054_v63 }
 0x391   : > { %v5675_v30 = vmul.f32 0.25, %v5563_v52  ;;  %v6572_v32 = vpack.c.bf16 %v5673_v42, %v5673_v42  ;;  %v6573_v6 = vpack.c.bf16 %v5674_v40, %v5674_v40  ;;  %v3989_v11 = vadd.f32 %v8763_v57, %v8785_v8 }
 0x392   : > { %v5992_v36 = vunpack.c.l.b16 %v6571_v1  ;;  %v5088_v58 = vrot.slane %v5074_v16, %v8800_v45  ;;  %v5089_v43 = vcombine.high %v5081_v5, %v5081_v5  ;;  %v5564_v48 = vsel %vm2640_vm3, %v5081_v5, 0.0 }
 0x393   : > { %v6574_v44 = vpack.c.bf16 %v5675_v30, %v5675_v30  ;;  %v5993_v50 = vunpack.c.l.b16 %v6572_v32  ;;  %v5994_v9 = vunpack.c.l.b16 %v6573_v6  ;;  %v5565_v18 = vrot.slane %v5564_v48, 4 }
 0x394   : > { %v6056_v2 = vsel %vm349_vm10, %v5992_v36, %v6055_v60  ;;  %v5090_v0 = vcombine.high %v5088_v58, %v5088_v58  ;;  %v5571_v51 = vsel %vm2640_vm3, %v5089_v43, 0.0  ;;  %v5578_v7 = vsel %vm2640_vm3, %v5088_v58, 0.0 }
 0x395   : > { %v5995_v53 = vunpack.c.l.b16 %v6574_v44  ;;  %v6057_v15 = vsel %vm6012_vm11, %v5993_v50, %v6056_v2  ;;  %v5566_v49 = vadd.f32 %v5565_v18, %v5564_v48  ;;  %v5572_v10 = vrot.slane %v5571_v51, 4 }
 0x396   : > { %v6058_v14 = vsel %vm6014_vm12, %v5994_v9, %v6057_v15  ;;  %v5579_v25 = vrot.slane %v5578_v7, 4  ;;  %v5585_v31 = vsel %vm2640_vm3, %v5090_v0, 0.0  ;;  %v4361_v26 = vadd.f32 %v4320_v61, %v3989_v11 }
 0x397   : > { %v6059_v28 = vsel %vm6016_vm13, %v5995_v53, %v6058_v14  ;;  %v5567_v35 = vrot.slane %v5566_v49, 2  ;;  %v5573_v24 = vadd.f32 %v5572_v10, %v5571_v51  ;;  %v5586_v3 = vrot.slane %v5585_v31, 4 }
 0x398   : > { %v6073_v41 = vpack.c.b16 %v6059_v28, %v6059_v28  ;;  %v5580_v4 = vadd.f32 %v5579_v25, %v5578_v7  ;;  %v4771_v47 = vadd.f32 %v8962_v27, %v4732_v13  ;;  %v4730_v39 = vadd.f32 %v4689_v22, %v4361_v26 }
 0x399   : > { %v5568_v55 = vadd.f32 %v5567_v35, %v5566_v49  ;;  %v5574_v46 = vrot.slane %v5573_v24, 2  ;;  %v5587_v62 = vadd.f32 %v5586_v3, %v5585_v31 }
 0x39a   : > { %6089 = vst [vmem:[%s8858_s19 + $0x18] sm:$0xf] %v6073_v41  ;;  %v5581_v34 = vrot.slane %v5580_v4, 2  ;;  %v4769_v23 = vadd.f32 %v8962_v27, %v4730_v39  ;;  %v4803_v38 = vmax.f32 %v4771_v47, 0.0 }
 0x39b   : > { %v5569_v19 = vrot.slane %v5568_v55, 1  ;;  %v5575_v54 = vadd.f32 %v5574_v46, %v5573_v24  ;;  %v5588_v57 = vrot.slane %v5587_v62, 2 }
 0x39c   : > { %v5582_v8 = vadd.f32 %v5581_v34, %v5580_v4  ;;  %v4801_v29 = vmax.f32 %v4769_v23, 0.0 }
 0x39d   : > { %v5576_v21 = vrot.slane %v5575_v54, 1  ;;  %v5589_v56 = vadd.f32 %v5588_v57, %v5587_v62  ;;  %v5570_v17 = vadd.f32 %v5569_v19, %v5568_v55 }
 0x39e   : > { %v5583_v37 = vrot.slane %v5582_v8, 1  ;;  %v4819_v59 = vadd.f32 %v4803_v38, %v4801_v29 }
 0x39f   : > { %v5577_v33 = vadd.f32 %v5576_v21, %v5575_v54  ;;  %v5590_v12 = vrot.slane %v5589_v56, 1  ;;  %v5676_v20 = vmul.f32 0.25, %v5570_v17 }
 0x3a0   : > { %v5584_v63 = vadd.f32 %v5583_v37, %v5582_v8  ;;  %v5091_v42 = vcombine.high %v4819_v59, %v4819_v59  ;;  %v5098_v40 = vrot.slane %v4819_v59, %v8800_v45 }
 0x3a1   : > { %v5677_v52 = vmul.f32 0.25, %v5577_v33  ;;  %v5591_v1 = vadd.f32 %v5590_v12, %v5589_v56  ;;  %v6575_v44 = vpack.c.bf16 %v5676_v20, %v5676_v20 }
 0x3a2   : > { %v5105_v16 = vrot.slane %v5091_v42, %v8800_v45  ;;  %v5106_v5 = vcombine.high %v5098_v40, %v5098_v40  ;;  %v5592_v27 = vsel %vm2640_vm3, %v5098_v40, 0.0  ;;  %v5678_v13 = vmul.f32 0.25, %v5584_v63 }
 0x3a3   : > { %v5593_v30 = vrot.slane %v5592_v27, 4  ;;  %v6576_v32 = vpack.c.bf16 %v5677_v52, %v5677_v52  ;;  %v5679_v48 = vmul.f32 0.25, %v5591_v1  ;;  %v5996_v61 = vunpack.c.l.b16 %v6575_v44 }
 0x3a4   : > { %v5107_v6 = vcombine.high %v5105_v16, %v5105_v16  ;;  %v5599_v60 = vsel %vm2640_vm3, %v5106_v5, 0.0  ;;  %v5606_v36 = vsel %vm2640_vm3, %v5105_v16, 0.0  ;;  %v6577_v18 = vpack.c.bf16 %v5678_v13, %v5678_v13 }
 0x3a5   : > { %v5594_v58 = vadd.f32 %v5593_v30, %v5592_v27  ;;  %v5600_v43 = vrot.slane %v5599_v60, 4  ;;  %v5607_v50 = vrot.slane %v5606_v36, 4  ;;  %v5997_v51 = vunpack.c.l.b16 %v6576_v32 }
 0x3a6   : > { %v5613_v9 = vsel %vm2640_vm3, %v5107_v6, 0.0  ;;  %v6578_v10 = vpack.c.bf16 %v5679_v48, %v5679_v48  ;;  %v5998_v25 = vunpack.c.l.b16 %v6577_v18 }
 0x3a7   : > { %v5595_v45 = vrot.slane %v5594_v58, 2  ;;  %v5601_v2 = vadd.f32 %v5600_v43, %v5599_v60  ;;  %v5614_v0 = vrot.slane %v5613_v9, 4  ;;  %v5608_v7 = vadd.f32 %v5607_v50, %v5606_v36 }
 0x3a8   : > { %v6060_v35 = vsel %vm6004_vm0, %v5997_v51, %v5996_v61  ;;  %v5999_v26 = vunpack.c.l.b16 %v6578_v10 }
 0x3a9   : > { %v5596_v53 = vadd.f32 %v5595_v45, %v5594_v58  ;;  %v5602_v15 = vrot.slane %v5601_v2, 2  ;;  %v5615_v49 = vadd.f32 %v5614_v0, %v5613_v9  ;;  %v5609_v14 = vrot.slane %v5608_v7, 2 }
 0x3aa   : > { %v6061_v46 = vsel %vm6006_vm2, %v5998_v25, %v6060_v35 }
 0x3ab   : > { %v5597_v31 = vrot.slane %v5596_v53, 1  ;;  %v5603_v11 = vadd.f32 %v5602_v15, %v5601_v2  ;;  %v5616_v28 = vrot.slane %v5615_v49, 2  ;;  %v5610_v24 = vadd.f32 %v5609_v14, %v5608_v7 }
 0x3ac   : > { %v6062_v8 = vsel %vm6008_vm7, %v5999_v26, %v6061_v46 }
 0x3ad   : > { %v5598_v3 = vadd.f32 %v5597_v31, %v5596_v53  ;;  %v5604_v41 = vrot.slane %v5603_v11, 1  ;;  %v5617_v4 = vadd.f32 %v5616_v28, %v5615_v49  ;;  %v5611_v55 = vrot.slane %v5610_v24, 1 }
 0x3af   : > { %v5605_v62 = vadd.f32 %v5604_v41, %v5603_v11  ;;  %v5618_v22 = vrot.slane %v5617_v4, 1  ;;  %v5680_v34 = vmul.f32 0.25, %v5598_v3  ;;  %v5612_v47 = vadd.f32 %v5611_v55, %v5610_v24 }
 0x3b1   : > { %v5619_v39 = vadd.f32 %v5618_v22, %v5617_v4  ;;  %v5681_v19 = vmul.f32 0.25, %v5605_v62  ;;  %v6579_v54 = vpack.c.bf16 %v5680_v34, %v5680_v34  ;;  %v5682_v57 = vmul.f32 0.25, %v5612_v47 }
 0x3b3   : > { %v5683_v23 = vmul.f32 0.25, %v5619_v39  ;;  %v6580_v21 = vpack.c.bf16 %v5681_v19, %v5681_v19  ;;  %v6000_v56 = vunpack.c.l.b16 %v6579_v54  ;;  %v6581_v37 = vpack.c.bf16 %v5682_v57, %v5682_v57 }
 0x3b5   : > { %v6582_v38 = vpack.c.bf16 %v5683_v23, %v5683_v23  ;;  %v6001_v29 = vunpack.c.l.b16 %v6580_v21  ;;  %v6063_v17 = vsel %vm349_vm10, %v6000_v56, %v6062_v8  ;;  %v6002_v33 = vunpack.c.l.b16 %v6581_v37 }
 0x3b7   : > { %v6003_v12 = vunpack.c.l.b16 %v6582_v38  ;;  %v6064_v59 = vsel %vm6012_vm11, %v6001_v29, %v6063_v17 }
 0x3b8   : > { %v6065_v63 = vsel %vm6014_vm12, %v6002_v33, %v6064_v59 }
 0x3b9   : > { %v6066_v52 = vsel %vm6016_vm13, %v6003_v12, %v6065_v63 }
 0x3ba   : > { %v6074_v42 = vpack.c.b16 %v6066_v52, %v6066_v52 }
 0x3bc   : > { %6090 = vst [vmem:[%s8858_s19 + $0x1c] sm:$0xf] %v6074_v42 }
 0x3bd   : > { %7014 = shalt.err (!%p7011_p3)
}
 0x3be   : > { %s7015_s8 = scalar_lea.hbm %s9093_s6, 512  ;;  %s7019_s11 = scalar_lea.hbm %s9144_s3, 1024 }
 0x3bf   : > { %p7016_p4 = scmp.ne.s32.totalorder %s9093_s6, %s7015_s8  ;;  %p7020_p9 = scmp.lt.s32.totalorder %s9093_s6, %s9144_s3 }
 0x3c0   : > { %p7021_p10 = scmp.lt.s32.totalorder %s7019_s11, %s7015_s8 }
 0x3c1   : > { %p7017_p7 = pnand %p7016_p4, %p7129_p5 }
 0x3c2   : > { %p7022_p11 = por %p7021_p10, %p7020_p9 }
 0x3c3   : > { %p7018_p8 = pneg %p7017_p7 }
 0x3c5   : > { %p7023_p12 = pnand %p7022_p11, %p7018_p8 }
 0x3c7   : > { %7026 = shalt.err (!%p7023_p12)
}
 0x3c8   : > { %s7070_s20 = smov 64  }
 0x3c9   : > { %6864 = dma.vmem_to_hbm [thread:$0]  (%p7129_p5), %s9095_s26, 512, %s9093_s6, %s9100_s16, %s7070_s20, %s7070_s20, %s7065_s30  }
 0x3ca PF: > { %p6870_p13 = scmp.ge.s32.totalorder %s7061_s15, 2  ;;  %s6120_s24 = sand.u32 1, %s7049_s12  }
 0x3cb   : > { %s6121_s25 = scalar_lea.sflag [#allocation5], %s6120_s24 }
 0x3cc   : > { %p6867_p0 = pnand %p6870_p13, %p7133_p6 }
 0x3ce   : > { %p6868_p1 = pneg %p6867_p0 }
 0x3d0   : > { %7044 = dma.done.wait (%p6868_p1), %s6121_s25, 512  }
 0x3d1   : > { %7046 = vsyncadd (%p6868_p1), %s6121_s25, 4294966784  ;;  %p13_p2 = scmp.ge.s32.totalorder %s7116_s18, 4   ;;  %s9158_s12 = smov %s7053_s13 }
 0x3d2   : > { %s9159_s13 = smov %s7057_s14  ;;  %s9160_s14 = smov %s7127_s21 }
 0x3d3   : > { %s9161_s15 = smov %s7116_s18  ;;  %15 = sbr.rel (!%p13_p2) target bundleno = 3 (0x3), region = 73 }
 0x3d8   :  { %6126 = vsyncpa [#allocation5], 1 }
 0x3d9   :  { %6128 = vsyncpa [#allocation5 + $0x1], 1 }

</bundles_post_ra>
